<compile_context>
chip_gen: v7x
topology: tpu7x:2x2x1
jax: 0.10.0
libtpu: 0.0.40
codegen_flags: <defaults>
</compile_context>

<pallas_src>
import functools

import jax
import jax.numpy as jnp
from jax.experimental import pallas as pl
from jax.experimental.pallas import tpu as pltpu

EPS = 1e-5
LANES = 128
VMEM_LIMIT = 32 * 1024 * 1024        # explicit scoped-VMEM budget (v5e/v6e/v7x safe)
FUSE_VMEM_BUDGET = 20 * 1024 * 1024  # take the single-pass path below this estimate
FUSE_MAX_BATCH = 8                   # static unroll bound for the fused kernel


def _round_up(x, m):
    return (x + m - 1) // m * m


def _pick_row_tile(h, w, target_rows):
    """Largest divisor th of H with th*W <= max(target_rows, W)."""
    cap = max(target_rows, w)
    best = 1
    for th in range(1, h + 1):
        if h % th == 0 and th * w <= cap:
            best = th
    return best


# ------------------------------ kernels --------------------------------------
def _conv_tile(x3_ref, w3_ref, th, w_dim):
    """3x3 conv (no bias) for the current (n, row-tile) as 3 MXU matmuls.

    x3_ref : (1, (H+2)*W, 3*Cin) bf16 -- dx taps folded into channels, rows flat
    w3_ref : (3, 3*Cin, CPAD)    bf16 -- per-dy weight matrices (Cout padded)
    returns: (th*W, CPAD) f32 conv result for this tile.
    """
    mt = th * w_dim
    r0 = pl.program_id(1) * th
    acc = None
    for dy in range(3):                      # static unroll -> 3 MXU matmuls
        start = pl.multiple_of((r0 + dy) * w_dim, w_dim)
        lhs = x3_ref[0, pl.ds(start, mt), :]                    # (mt, 3*Cin) bf16
        part = jnp.dot(lhs, w3_ref[dy], preferred_element_type=jnp.float32)
        acc = part if acc is None else acc + part
    return acc


def _stats_kernel(x3_ref, w3_ref, stats_ref, *, th, w_dim):
    """Pass 1 (tiled path): conv tile + accumulate per-channel (sum, sumsq)."""

    @pl.when(jnp.logical_and(pl.program_id(0) == 0, pl.program_id(1) == 0))
    def _():
        stats_ref[...] = jnp.zeros_like(stats_ref)

    acc = _conv_tile(x3_ref, w3_ref, th, w_dim)                 # (mt, CPAD) f32
    s = jnp.sum(acc, axis=0, keepdims=True)                     # (1, CPAD)
    sq = jnp.sum(acc * acc, axis=0, keepdims=True)              # (1, CPAD)
    stats_ref[...] += jnp.concatenate([s, sq], axis=0)          # (2, CPAD)


def _norm_kernel(x3_ref, w3_ref, scale_ref, shift_ref, o_ref, *, th, w_dim):
    """Pass 2 (tiled path): conv tile + folded (scale, shift) BN affine + ReLU."""
    conv = _conv_tile(x3_ref, w3_ref, th, w_dim)
    o_ref[...] = jnp.maximum(conv * scale_ref[...] + shift_ref[...], 0.0)


def _fused_kernel(x3_ref, w3_ref, gamma_ref, beta_ref, o_ref, *, n, hw, w_dim):
    """Single-pass path: conv (whole batch) -> batch stats -> affine -> ReLU.

    Only selected when everything fits comfortably in VMEM (small feature maps).
    The conv bias cancels exactly under training-mode BN, so it is omitted.
    """
    for ni in range(n):                      # static unroll (n small on this path)
        conv = None
        for dy in range(3):
            lhs = x3_ref[ni, pl.ds(dy * w_dim, hw), :]          # (hw, 3*Cin) bf16
            part = jnp.dot(lhs, w3_ref[dy], preferred_element_type=jnp.float32)
            conv = part if conv is None else conv + part
        o_ref[ni * hw:(ni + 1) * hw, :] = conv                  # pre-BN, f32

    acc = o_ref[...]                                            # (n*hw, CPAD) f32
    m = n * hw
    mean = jnp.sum(acc, axis=0, keepdims=True) * (1.0 / m)
    var = jnp.maximum(
        jnp.sum(acc * acc, axis=0, keepdims=True) * (1.0 / m) - mean * mean, 0.0)
    scale = gamma_ref[...] * jax.lax.rsqrt(var + EPS)           # (1, CPAD)
    shift = beta_ref[...] - mean * scale
    o_ref[...] = jnp.maximum(acc * scale + shift, 0.0)


# ------------------------------ wrapper ---------------------------------------
def _conv_bn_relu_block(x_nhwc, w_hwio, bias, gamma, beta, *,
                        target_rows=512, allow_fused=True):
    del bias  # cancels exactly under training-mode BatchNorm (batch statistics)
    n, h, w, cin = x_nhwc.shape
    cout = w_hwio.shape[-1]
    cpad = _round_up(cout, LANES)
    hw = h * w
    m = n * hw

    # Zero-padded input with the 3 column (dx) taps folded into the channel /
    # matmul-K dim: (N, (H+2)*W, 3*Cin) bf16.  3x input bytes (not a 9x im2col);
    # the 3 dy taps become contiguous row windows inside the kernel.
    xb = x_nhwc.astype(jnp.bfloat16)
    xp = jnp.pad(xb, ((0, 0), (1, 1), (1, 1), (0, 0)))
    x3 = jnp.stack([xp[:, :, dx:dx + w, :] for dx in range(3)], axis=3)
    x3 = x3.reshape(n, (h + 2) * w, 3 * cin)

    # Per-dy weight matrices, output channels zero-padded to a full lane dim.
    w3 = w_hwio.reshape(3, 3 * cin, cout)
    w3 = jnp.pad(w3, ((0, 0), (0, 0), (0, cpad - cout))).astype(jnp.bfloat16)

    g_pad = jnp.pad(gamma.reshape(-1).astype(jnp.float32),
                    (0, cpad - cout)).reshape(1, cpad)
    be_pad = jnp.pad(beta.reshape(-1).astype(jnp.float32),
                     (0, cpad - cout)).reshape(1, cpad)

    # --- single-pass fused path (small feature maps) ---------------------------
    fused_bytes = x3.size * 2 + w3.size * 2 + 3 * m * cpad * 4
    if allow_fused and n <= FUSE_MAX_BATCH and fused_bytes <= FUSE_VMEM_BUDGET:
        y = pl.pallas_call(
            functools.partial(_fused_kernel, n=n, hw=hw, w_dim=w),
            out_shape=jax.ShapeDtypeStruct((m, cpad), jnp.float32),
            grid=(1,),
            in_specs=[
                pl.BlockSpec((n, (h + 2) * w, 3 * cin), lambda i: (0, 0, 0)),
                pl.BlockSpec((3, 3 * cin, cpad), lambda i: (0, 0, 0)),
                pl.BlockSpec((1, cpad), lambda i: (0, 0)),
                pl.BlockSpec((1, cpad), lambda i: (0, 0)),
            ],
            out_specs=pl.BlockSpec((m, cpad), lambda i: (0, 0)),
            compiler_params=pltpu.CompilerParams(vmem_limit_bytes=VMEM_LIMIT),
        )(x3, w3, g_pad, be_pad)
        return y[:, :cout].reshape(n, h, w, cout)

    # --- two-pass tiled fallback ----------------------------------------------
    th = _pick_row_tile(h, w, target_rows)
    mt = th * w
    grid = (n, h // th)

    x3_spec = pl.BlockSpec((1, (h + 2) * w, 3 * cin), lambda ni, hi: (ni, 0, 0))
    w3_spec = pl.BlockSpec((3, 3 * cin, cpad), lambda ni, hi: (0, 0, 0))
    vec_spec = pl.BlockSpec((1, cpad), lambda ni, hi: (0, 0))

    # pass 1: global BN statistics (accumulator output, both axes 'arbitrary')
    stats = pl.pallas_call(
        functools.partial(_stats_kernel, th=th, w_dim=w),
        out_shape=jax.ShapeDtypeStruct((2, cpad), jnp.float32),
        grid=grid,
        in_specs=[x3_spec, w3_spec],
        out_specs=pl.BlockSpec((2, cpad), lambda ni, hi: (0, 0)),
        compiler_params=pltpu.CompilerParams(
            dimension_semantics=("arbitrary", "arbitrary"),
            vmem_limit_bytes=VMEM_LIMIT),
    )(x3, w3)

    # Fold BN(mean, biased var, gamma, beta) into one per-channel (scale, shift).
    mean = stats[0] / m
    var = jnp.maximum(stats[1] / m - mean * mean, 0.0)          # guard cancellation
    scale = (g_pad[0] * jax.lax.rsqrt(var + EPS))
    shift = (be_pad[0] - mean * scale)
    scale = scale.reshape(1, cpad)
    shift = shift.reshape(1, cpad)

    # pass 2: conv recompute + affine + ReLU, lane-dense (M, 128) f32 output,
    # fully independent tiles -> 'parallel' axes (v7x megacore).
    y = pl.pallas_call(
        functools.partial(_norm_kernel, th=th, w_dim=w),
        out_shape=jax.ShapeDtypeStruct((m, cpad), jnp.float32),
        grid=grid,
        in_specs=[x3_spec, w3_spec, vec_spec, vec_spec],
        out_specs=pl.BlockSpec((mt, cpad), lambda ni, hi: (ni * (h // th) + hi, 0)),
        compiler_params=pltpu.CompilerParams(
            dimension_semantics=("parallel", "parallel"),
            vmem_limit_bytes=VMEM_LIMIT),
    )(x3, w3, scale, shift)

    return y[:, :cout].reshape(n, h, w, cout)


def double_conv_forward(x_nchw, params, *, target_rows=512, allow_fused=True):
    """Full DoubleConv forward. x_nchw: (N, C_in, H, W) float32."""
    x = jnp.transpose(x_nchw, (0, 2, 3, 1))                     # NCHW -> NHWC
    y = _conv_bn_relu_block(x, params["w1"], params["b1"], params["g1"],
                            params["be1"], target_rows=target_rows,
                            allow_fused=allow_fused)
    y = _conv_bn_relu_block(y, params["w2"], params["b2"], params["g2"],
                            params["be2"], target_rows=target_rows,
                            allow_fused=allow_fused)
    return jnp.transpose(y, (0, 3, 1, 2))                       # NHWC -> NCHW


# ------------------------- pure-JAX f32 reference ----------------------------
def _ref_block(x_nhwc, w_hwio, b, g, beta):
    y = jax.lax.conv_general_dilated(
        x_nhwc, w_hwio, window_strides=(1, 1), padding="SAME",
        dimension_numbers=("NHWC", "HWIO", "NHWC"))
    y = y + b.reshape(1, 1, 1, -1)
    mean = y.mean(axis=(0, 1, 2))
    var = y.var(axis=(0, 1, 2))
    y = (y - mean) * jax.lax.rsqrt(var + EPS)
    y = y * g.reshape(1, 1, 1, -1) + beta.reshape(1, 1, 1, -1)
    return jnp.maximum(y, 0.0)


def double_conv_reference(x_nchw, params):
    x = jnp.transpose(x_nchw, (0, 2, 3, 1))
    y = _ref_block(x, params["w1"], params["b1"][0], params["g1"][0], params["be1"][0])
    y = _ref_block(y, params["w2"], params["b2"][0], params["g2"][0], params["be2"][0])
    return jnp.transpose(y, (0, 3, 1, 2))


# ------------------------------ main ------------------------------------------
if __name__ == "__main__":
    key = jax.random.PRNGKey(0)
    ks = jax.random.split(key, 10)

    N, C_IN, C_OUT, H, W = 2, 4, 8, 16, 16

    x = jax.random.normal(ks[0], (N, C_IN, H, W), dtype=jnp.float32)

    params = {
        # conv weights stored as (kh, kw, Cin, Cout) = HWIO
        "w1": 0.1 * jax.random.normal(ks[1], (3, 3, C_IN, C_OUT), jnp.float32),
        "b1": 0.1 * jax.random.normal(ks[2], (1, C_OUT), jnp.float32),
        "g1": 1.0 + 0.1 * jax.random.normal(ks[3], (1, C_OUT), jnp.float32),
        "be1": 0.1 * jax.random.normal(ks[4], (1, C_OUT), jnp.float32),
        "w2": 0.1 * jax.random.normal(ks[5], (3, 3, C_OUT, C_OUT), jnp.float32),
        "b2": 0.1 * jax.random.normal(ks[6], (1, C_OUT), jnp.float32),
        "g2": 1.0 + 0.1 * jax.random.normal(ks[7], (1, C_OUT), jnp.float32),
        "be2": 0.1 * jax.random.normal(ks[8], (1, C_OUT), jnp.float32),
    }

    fwd = jax.jit(double_conv_forward, static_argnames=("target_rows", "allow_fused"))

    # Default: single-pass fused kernel (fits VMEM at these shapes).
    out_fused = jax.block_until_ready(fwd(x, params))
    # Also exercise the two-pass tiled fallback (128-row tiles -> real grid).
    out_tiled = jax.block_until_ready(fwd(x, params, target_rows=128, allow_fused=False))
    ref = jax.block_until_ready(double_conv_reference(x, params))

    assert out_fused.shape == (N, C_OUT, H, W), out_fused.shape
    assert out_tiled.shape == (N, C_OUT, H, W), out_tiled.shape
    err_f = float(jnp.max(jnp.abs(out_fused - ref)))
    err_t = float(jnp.max(jnp.abs(out_tiled - ref)))
    # bf16 MXU operands (f32 accumulation) through two conv+BN+ReLU blocks vs.
    # an f32 reference: budget ~1e-2 typical, 5e-2 bound.
    assert err_f < 5e-2, err_f
    assert err_t < 5e-2, err_t

    print("KERNEL_OK")
</pallas_src>

<mosaic_0001>
module attributes {stable_mosaic.version = 11 : i64} {
  func.func @_fused_kernel(%arg0: i32, %arg1: memref<2x288x12xbf16, #tpu.memory_space<vmem>>, %arg2: memref<3x12x128xbf16, #tpu.memory_space<vmem>>, %arg3: memref<1x128xf32, #tpu.memory_space<vmem>>, %arg4: memref<1x128xf32, #tpu.memory_space<vmem>>, %arg5: memref<512x128xf32, #tpu.memory_space<vmem>>) attributes {dimension_semantics = [#tpu.dimension_semantics<arbitrary>], iteration_bounds = array<i64: 1>, scalar_prefetch = 0 : i64, scratch_operands = 0 : i64, tpu.core_type = #tpu.core_type<tc>, window_params = [{pipeline_mode = #tpu.pipeline_mode<synchronous>, transform_indices = @transform_0, window_bounds = array<i64: 2, 288, 12>}, {pipeline_mode = #tpu.pipeline_mode<synchronous>, transform_indices = @transform_1, window_bounds = array<i64: 3, 12, 128>}, {pipeline_mode = #tpu.pipeline_mode<synchronous>, transform_indices = @transform_2, window_bounds = array<i64: 1, 128>}, {pipeline_mode = #tpu.pipeline_mode<synchronous>, transform_indices = @transform_3, window_bounds = array<i64: 1, 128>}, {pipeline_mode = #tpu.pipeline_mode<synchronous>, transform_indices = @transform_4, window_bounds = array<i64: 512, 128>}]} {
    %c0 = arith.constant 0 : index
    %c0_0 = arith.constant 0 : index
    %c0_1 = arith.constant 0 : index
    %0 = vector.load %arg1[%c0, %c0_0, %c0_1] : memref<2x288x12xbf16, #tpu.memory_space<vmem>>, vector<1x256x12xbf16>
    %1 = vector.shape_cast %0 : vector<1x256x12xbf16> to vector<256x12xbf16>
    %c0_2 = arith.constant 0 : index
    %c0_3 = arith.constant 0 : index
    %c0_4 = arith.constant 0 : index
    %2 = vector.load %arg2[%c0_2, %c0_3, %c0_4] : memref<3x12x128xbf16, #tpu.memory_space<vmem>>, vector<1x12x128xbf16>
    %3 = vector.shape_cast %2 : vector<1x12x128xbf16> to vector<12x128xbf16>
    %cst = arith.constant dense<0.000000e+00> : vector<256x128xf32>
    %4 = tpu.matmul %1, %3, %cst {dimension_numbers = #tpu.dot_dimension_numbers<[1], [0], [0], [1], [0, 0, 1, 1], [], []>} : vector<256x12xbf16>, vector<12x128xbf16>, vector<256x128xf32> -> vector<256x128xf32>
    %c0_5 = arith.constant 0 : index
    %c16 = arith.constant 16 : index
    %c0_6 = arith.constant 0 : index
    %5 = vector.load %arg1[%c0_5, %c16, %c0_6] : memref<2x288x12xbf16, #tpu.memory_space<vmem>>, vector<1x256x12xbf16>
    %6 = vector.shape_cast %5 : vector<1x256x12xbf16> to vector<256x12xbf16>
    %c1 = arith.constant 1 : index
    %c0_7 = arith.constant 0 : index
    %c0_8 = arith.constant 0 : index
    %7 = vector.load %arg2[%c1, %c0_7, %c0_8] : memref<3x12x128xbf16, #tpu.memory_space<vmem>>, vector<1x12x128xbf16>
    %8 = vector.shape_cast %7 : vector<1x12x128xbf16> to vector<12x128xbf16>
    %cst_9 = arith.constant dense<0.000000e+00> : vector<256x128xf32>
    %9 = tpu.matmul %6, %8, %cst_9 {dimension_numbers = #tpu.dot_dimension_numbers<[1], [0], [0], [1], [0, 0, 1, 1], [], []>} : vector<256x12xbf16>, vector<12x128xbf16>, vector<256x128xf32> -> vector<256x128xf32>
    %10 = arith.addf %4, %9 : vector<256x128xf32>
    %c0_10 = arith.constant 0 : index
    %c32 = arith.constant 32 : index
    %c0_11 = arith.constant 0 : index
    %11 = vector.load %arg1[%c0_10, %c32, %c0_11] : memref<2x288x12xbf16, #tpu.memory_space<vmem>>, vector<1x256x12xbf16>
    %12 = vector.shape_cast %11 : vector<1x256x12xbf16> to vector<256x12xbf16>
    %c2 = arith.constant 2 : index
    %c0_12 = arith.constant 0 : index
    %c0_13 = arith.constant 0 : index
    %13 = vector.load %arg2[%c2, %c0_12, %c0_13] : memref<3x12x128xbf16, #tpu.memory_space<vmem>>, vector<1x12x128xbf16>
    %14 = vector.shape_cast %13 : vector<1x12x128xbf16> to vector<12x128xbf16>
    %cst_14 = arith.constant dense<0.000000e+00> : vector<256x128xf32>
    %15 = tpu.matmul %12, %14, %cst_14 {dimension_numbers = #tpu.dot_dimension_numbers<[1], [0], [0], [1], [0, 0, 1, 1], [], []>} : vector<256x12xbf16>, vector<12x128xbf16>, vector<256x128xf32> -> vector<256x128xf32>
    %16 = arith.addf %10, %15 : vector<256x128xf32>
    %c0_15 = arith.constant 0 : index
    %c0_16 = arith.constant 0 : index
    %17 = vector.load %arg5[%c0_15, %c0_16] : memref<512x128xf32, #tpu.memory_space<vmem>>, vector<256x128xf32>
    tpu.vector_store %arg5[%c0_15, %c0_16], %16 {strides = array<i32>} : memref<512x128xf32, #tpu.memory_space<vmem>>, vector<256x128xf32>,
    %c1_17 = arith.constant 1 : index
    %c0_18 = arith.constant 0 : index
    %c0_19 = arith.constant 0 : index
    %18 = vector.load %arg1[%c1_17, %c0_18, %c0_19] : memref<2x288x12xbf16, #tpu.memory_space<vmem>>, vector<1x256x12xbf16>
    %19 = vector.shape_cast %18 : vector<1x256x12xbf16> to vector<256x12xbf16>
    %c0_20 = arith.constant 0 : index
    %c0_21 = arith.constant 0 : index
    %c0_22 = arith.constant 0 : index
    %20 = vector.load %arg2[%c0_20, %c0_21, %c0_22] : memref<3x12x128xbf16, #tpu.memory_space<vmem>>, vector<1x12x128xbf16>
    %21 = vector.shape_cast %20 : vector<1x12x128xbf16> to vector<12x128xbf16>
    %cst_23 = arith.constant dense<0.000000e+00> : vector<256x128xf32>
    %22 = tpu.matmul %19, %21, %cst_23 {dimension_numbers = #tpu.dot_dimension_numbers<[1], [0], [0], [1], [0, 0, 1, 1], [], []>} : vector<256x12xbf16>, vector<12x128xbf16>, vector<256x128xf32> -> vector<256x128xf32>
    %c1_24 = arith.constant 1 : index
    %c16_25 = arith.constant 16 : index
    %c0_26 = arith.constant 0 : index
    %23 = vector.load %arg1[%c1_24, %c16_25, %c0_26] : memref<2x288x12xbf16, #tpu.memory_space<vmem>>, vector<1x256x12xbf16>
    %24 = vector.shape_cast %23 : vector<1x256x12xbf16> to vector<256x12xbf16>
    %c1_27 = arith.constant 1 : index
    %c0_28 = arith.constant 0 : index
    %c0_29 = arith.constant 0 : index
    %25 = vector.load %arg2[%c1_27, %c0_28, %c0_29] : memref<3x12x128xbf16, #tpu.memory_space<vmem>>, vector<1x12x128xbf16>
    %26 = vector.shape_cast %25 : vector<1x12x128xbf16> to vector<12x128xbf16>
    %cst_30 = arith.constant dense<0.000000e+00> : vector<256x128xf32>
    %27 = tpu.matmul %24, %26, %cst_30 {dimension_numbers = #tpu.dot_dimension_numbers<[1], [0], [0], [1], [0, 0, 1, 1], [], []>} : vector<256x12xbf16>, vector<12x128xbf16>, vector<256x128xf32> -> vector<256x128xf32>
    %28 = arith.addf %22, %27 : vector<256x128xf32>
    %c1_31 = arith.constant 1 : index
    %c32_32 = arith.constant 32 : index
    %c0_33 = arith.constant 0 : index
    %29 = vector.load %arg1[%c1_31, %c32_32, %c0_33] : memref<2x288x12xbf16, #tpu.memory_space<vmem>>, vector<1x256x12xbf16>
    %30 = vector.shape_cast %29 : vector<1x256x12xbf16> to vector<256x12xbf16>
    %c2_34 = arith.constant 2 : index
    %c0_35 = arith.constant 0 : index
    %c0_36 = arith.constant 0 : index
    %31 = vector.load %arg2[%c2_34, %c0_35, %c0_36] : memref<3x12x128xbf16, #tpu.memory_space<vmem>>, vector<1x12x128xbf16>
    %32 = vector.shape_cast %31 : vector<1x12x128xbf16> to vector<12x128xbf16>
    %cst_37 = arith.constant dense<0.000000e+00> : vector<256x128xf32>
    %33 = tpu.matmul %30, %32, %cst_37 {dimension_numbers = #tpu.dot_dimension_numbers<[1], [0], [0], [1], [0, 0, 1, 1], [], []>} : vector<256x12xbf16>, vector<12x128xbf16>, vector<256x128xf32> -> vector<256x128xf32>
    %34 = arith.addf %28, %33 : vector<256x128xf32>
    %c256 = arith.constant 256 : index
    %c0_38 = arith.constant 0 : index
    %35 = vector.load %arg5[%c256, %c0_38] : memref<512x128xf32, #tpu.memory_space<vmem>>, vector<256x128xf32>
    tpu.vector_store %arg5[%c256, %c0_38], %34 {strides = array<i32>} : memref<512x128xf32, #tpu.memory_space<vmem>>, vector<256x128xf32>,
    %c0_39 = arith.constant 0 : index
    %c0_40 = arith.constant 0 : index
    %36 = vector.load %arg5[%c0_39, %c0_40] : memref<512x128xf32, #tpu.memory_space<vmem>>, vector<512x128xf32>
    %cst_41 = arith.constant dense<0.000000e+00> : vector<128xf32>
    %37 = vector.multi_reduction <add>, %36, %cst_41 [0] : vector<512x128xf32> to vector<128xf32>
    %38 = vector.shape_cast %37 : vector<128xf32> to vector<1x128xf32>
    %cst_42 = arith.constant 0.001953125 : f32
    %39 = vector.broadcast %cst_42 : f32 to vector<1x128xf32>
    %40 = arith.mulf %38, %39 : vector<1x128xf32>
    %41 = arith.mulf %36, %36 : vector<512x128xf32>
    %cst_43 = arith.constant dense<0.000000e+00> : vector<128xf32>
    %42 = vector.multi_reduction <add>, %41, %cst_43 [0] : vector<512x128xf32> to vector<128xf32>
    %43 = vector.shape_cast %42 : vector<128xf32> to vector<1x128xf32>
    %cst_44 = arith.constant 0.001953125 : f32
    %44 = vector.broadcast %cst_44 : f32 to vector<1x128xf32>
    %45 = arith.mulf %43, %44 : vector<1x128xf32>
    %46 = arith.mulf %40, %40 : vector<1x128xf32>
    %47 = arith.subf %45, %46 : vector<1x128xf32>
    %cst_45 = arith.constant 0.000000e+00 : f32
    %48 = vector.broadcast %cst_45 : f32 to vector<1x128xf32>
    %49 = arith.maximumf %47, %48 : vector<1x128xf32>
    %c0_46 = arith.constant 0 : index
    %c0_47 = arith.constant 0 : index
    %50 = vector.load %arg3[%c0_46, %c0_47] : memref<1x128xf32, #tpu.memory_space<vmem>>, vector<1x128xf32>
    %cst_48 = arith.constant 9.99999974E-6 : f32
    %51 = vector.broadcast %cst_48 : f32 to vector<1x128xf32>
    %52 = arith.addf %49, %51 : vector<1x128xf32>
    %53 = math.rsqrt %52 : vector<1x128xf32>
    %54 = arith.mulf %50, %53 : vector<1x128xf32>
    %c0_49 = arith.constant 0 : index
    %c0_50 = arith.constant 0 : index
    %55 = vector.load %arg4[%c0_49, %c0_50] : memref<1x128xf32, #tpu.memory_space<vmem>>, vector<1x128xf32>
    %56 = arith.mulf %40, %54 : vector<1x128xf32>
    %57 = arith.subf %55, %56 : vector<1x128xf32>
    %58 = vector.broadcast %54 : vector<1x128xf32> to vector<512x128xf32>
    %59 = arith.mulf %36, %58 : vector<512x128xf32>
    %60 = vector.broadcast %57 : vector<1x128xf32> to vector<512x128xf32>
    %61 = arith.addf %59, %60 : vector<512x128xf32>
    %cst_51 = arith.constant 0.000000e+00 : f32
    %62 = vector.broadcast %cst_51 : f32 to vector<512x128xf32>
    %63 = arith.maximumf %61, %62 : vector<512x128xf32>
    %c0_52 = arith.constant 0 : index
    %c0_53 = arith.constant 0 : index
    %64 = vector.load %arg5[%c0_52, %c0_53] : memref<512x128xf32, #tpu.memory_space<vmem>>, vector<512x128xf32>
    tpu.vector_store %arg5[%c0_52, %c0_53], %63 {strides = array<i32>} : memref<512x128xf32, #tpu.memory_space<vmem>>, vector<512x128xf32>,
    return
  }
  func.func @transform_0(%arg0: i32) -> (i32, i32, i32) {
    %c0_i32 = arith.constant 0 : i32
    %c0_i32_0 = arith.constant 0 : i32
    %c0_i32_1 = arith.constant 0 : i32
    %c0_i32_2 = arith.constant 0 : i32
    return %c0_i32, %c0_i32_0, %c0_i32_1 : i32, i32, i32
  }
  func.func @transform_1(%arg0: i32) -> (i32, i32, i32) {
    %c0_i32 = arith.constant 0 : i32
    %c0_i32_0 = arith.constant 0 : i32
    %c0_i32_1 = arith.constant 0 : i32
    %c0_i32_2 = arith.constant 0 : i32
    return %c0_i32, %c0_i32_0, %c0_i32_1 : i32, i32, i32
  }
  func.func @transform_2(%arg0: i32) -> (i32, i32) {
    %c0_i32 = arith.constant 0 : i32
    %c0_i32_0 = arith.constant 0 : i32
    %c0_i32_1 = arith.constant 0 : i32
    return %c0_i32, %c0_i32_0 : i32, i32
  }
  func.func @transform_3(%arg0: i32) -> (i32, i32) {
    %c0_i32 = arith.constant 0 : i32
    %c0_i32_0 = arith.constant 0 : i32
    %c0_i32_1 = arith.constant 0 : i32
    return %c0_i32, %c0_i32_0 : i32, i32
  }
  func.func @transform_4(%arg0: i32) -> (i32, i32) {
    %c0_i32 = arith.constant 0 : i32
    %c0_i32_0 = arith.constant 0 : i32
    %c0_i32_1 = arith.constant 0 : i32
    return %c0_i32, %c0_i32_0 : i32, i32
  }
}

module attributes {stable_mosaic.version = 11 : i64} {
  func.func @_fused_kernel(%arg0: i32, %arg1: memref<2x288x24xbf16, #tpu.memory_space<vmem>>, %arg2: memref<3x24x128xbf16, #tpu.memory_space<vmem>>, %arg3: memref<1x128xf32, #tpu.memory_space<vmem>>, %arg4: memref<1x128xf32, #tpu.memory_space<vmem>>, %arg5: memref<512x128xf32, #tpu.memory_space<vmem>>) attributes {dimension_semantics = [#tpu.dimension_semantics<arbitrary>], iteration_bounds = array<i64: 1>, scalar_prefetch = 0 : i64, scratch_operands = 0 : i64, tpu.core_type = #tpu.core_type<tc>, window_params = [{pipeline_mode = #tpu.pipeline_mode<synchronous>, transform_indices = @transform_0, window_bounds = array<i64: 2, 288, 24>}, {pipeline_mode = #tpu.pipeline_mode<synchronous>, transform_indices = @transform_1, window_bounds = array<i64: 3, 24, 128>}, {pipeline_mode = #tpu.pipeline_mode<synchronous>, transform_indices = @transform_2, window_bounds = array<i64: 1, 128>}, {pipeline_mode = #tpu.pipeline_mode<synchronous>, transform_indices = @transform_3, window_bounds = array<i64: 1, 128>}, {pipeline_mode = #tpu.pipeline_mode<synchronous>, transform_indices = @transform_4, window_bounds = array<i64: 512, 128>}]} {
    %c0 = arith.constant 0 : index
    %c0_0 = arith.constant 0 : index
    %c0_1 = arith.constant 0 : index
    %0 = vector.load %arg1[%c0, %c0_0, %c0_1] : memref<2x288x24xbf16, #tpu.memory_space<vmem>>, vector<1x256x24xbf16>
    %1 = vector.shape_cast %0 : vector<1x256x24xbf16> to vector<256x24xbf16>
    %c0_2 = arith.constant 0 : index
    %c0_3 = arith.constant 0 : index
    %c0_4 = arith.constant 0 : index
    %2 = vector.load %arg2[%c0_2, %c0_3, %c0_4] : memref<3x24x128xbf16, #tpu.memory_space<vmem>>, vector<1x24x128xbf16>
    %3 = vector.shape_cast %2 : vector<1x24x128xbf16> to vector<24x128xbf16>
    %cst = arith.constant dense<0.000000e+00> : vector<256x128xf32>
    %4 = tpu.matmul %1, %3, %cst {dimension_numbers = #tpu.dot_dimension_numbers<[1], [0], [0], [1], [0, 0, 1, 1], [], []>} : vector<256x24xbf16>, vector<24x128xbf16>, vector<256x128xf32> -> vector<256x128xf32>
    %c0_5 = arith.constant 0 : index
    %c16 = arith.constant 16 : index
    %c0_6 = arith.constant 0 : index
    %5 = vector.load %arg1[%c0_5, %c16, %c0_6] : memref<2x288x24xbf16, #tpu.memory_space<vmem>>, vector<1x256x24xbf16>
    %6 = vector.shape_cast %5 : vector<1x256x24xbf16> to vector<256x24xbf16>
    %c1 = arith.constant 1 : index
    %c0_7 = arith.constant 0 : index
    %c0_8 = arith.constant 0 : index
    %7 = vector.load %arg2[%c1, %c0_7, %c0_8] : memref<3x24x128xbf16, #tpu.memory_space<vmem>>, vector<1x24x128xbf16>
    %8 = vector.shape_cast %7 : vector<1x24x128xbf16> to vector<24x128xbf16>
    %cst_9 = arith.constant dense<0.000000e+00> : vector<256x128xf32>
    %9 = tpu.matmul %6, %8, %cst_9 {dimension_numbers = #tpu.dot_dimension_numbers<[1], [0], [0], [1], [0, 0, 1, 1], [], []>} : vector<256x24xbf16>, vector<24x128xbf16>, vector<256x128xf32> -> vector<256x128xf32>
    %10 = arith.addf %4, %9 : vector<256x128xf32>
    %c0_10 = arith.constant 0 : index
    %c32 = arith.constant 32 : index
    %c0_11 = arith.constant 0 : index
    %11 = vector.load %arg1[%c0_10, %c32, %c0_11] : memref<2x288x24xbf16, #tpu.memory_space<vmem>>, vector<1x256x24xbf16>
    %12 = vector.shape_cast %11 : vector<1x256x24xbf16> to vector<256x24xbf16>
    %c2 = arith.constant 2 : index
    %c0_12 = arith.constant 0 : index
    %c0_13 = arith.constant 0 : index
    %13 = vector.load %arg2[%c2, %c0_12, %c0_13] : memref<3x24x128xbf16, #tpu.memory_space<vmem>>, vector<1x24x128xbf16>
    %14 = vector.shape_cast %13 : vector<1x24x128xbf16> to vector<24x128xbf16>
    %cst_14 = arith.constant dense<0.000000e+00> : vector<256x128xf32>
    %15 = tpu.matmul %12, %14, %cst_14 {dimension_numbers = #tpu.dot_dimension_numbers<[1], [0], [0], [1], [0, 0, 1, 1], [], []>} : vector<256x24xbf16>, vector<24x128xbf16>, vector<256x128xf32> -> vector<256x128xf32>
    %16 = arith.addf %10, %15 : vector<256x128xf32>
    %c0_15 = arith.constant 0 : index
    %c0_16 = arith.constant 0 : index
    %17 = vector.load %arg5[%c0_15, %c0_16] : memref<512x128xf32, #tpu.memory_space<vmem>>, vector<256x128xf32>
    tpu.vector_store %arg5[%c0_15, %c0_16], %16 {strides = array<i32>} : memref<512x128xf32, #tpu.memory_space<vmem>>, vector<256x128xf32>,
    %c1_17 = arith.constant 1 : index
    %c0_18 = arith.constant 0 : index
    %c0_19 = arith.constant 0 : index
    %18 = vector.load %arg1[%c1_17, %c0_18, %c0_19] : memref<2x288x24xbf16, #tpu.memory_space<vmem>>, vector<1x256x24xbf16>
    %19 = vector.shape_cast %18 : vector<1x256x24xbf16> to vector<256x24xbf16>
    %c0_20 = arith.constant 0 : index
    %c0_21 = arith.constant 0 : index
    %c0_22 = arith.constant 0 : index
    %20 = vector.load %arg2[%c0_20, %c0_21, %c0_22] : memref<3x24x128xbf16, #tpu.memory_space<vmem>>, vector<1x24x128xbf16>
    %21 = vector.shape_cast %20 : vector<1x24x128xbf16> to vector<24x128xbf16>
    %cst_23 = arith.constant dense<0.000000e+00> : vector<256x128xf32>
    %22 = tpu.matmul %19, %21, %cst_23 {dimension_numbers = #tpu.dot_dimension_numbers<[1], [0], [0], [1], [0, 0, 1, 1], [], []>} : vector<256x24xbf16>, vector<24x128xbf16>, vector<256x128xf32> -> vector<256x128xf32>
    %c1_24 = arith.constant 1 : index
    %c16_25 = arith.constant 16 : index
    %c0_26 = arith.constant 0 : index
    %23 = vector.load %arg1[%c1_24, %c16_25, %c0_26] : memref<2x288x24xbf16, #tpu.memory_space<vmem>>, vector<1x256x24xbf16>
    %24 = vector.shape_cast %23 : vector<1x256x24xbf16> to vector<256x24xbf16>
    %c1_27 = arith.constant 1 : index
    %c0_28 = arith.constant 0 : index
    %c0_29 = arith.constant 0 : index
    %25 = vector.load %arg2[%c1_27, %c0_28, %c0_29] : memref<3x24x128xbf16, #tpu.memory_space<vmem>>, vector<1x24x128xbf16>
    %26 = vector.shape_cast %25 : vector<1x24x128xbf16> to vector<24x128xbf16>
    %cst_30 = arith.constant dense<0.000000e+00> : vector<256x128xf32>
    %27 = tpu.matmul %24, %26, %cst_30 {dimension_numbers = #tpu.dot_dimension_numbers<[1], [0], [0], [1], [0, 0, 1, 1], [], []>} : vector<256x24xbf16>, vector<24x128xbf16>, vector<256x128xf32> -> vector<256x128xf32>
    %28 = arith.addf %22, %27 : vector<256x128xf32>
    %c1_31 = arith.constant 1 : index
    %c32_32 = arith.constant 32 : index
    %c0_33 = arith.constant 0 : index
    %29 = vector.load %arg1[%c1_31, %c32_32, %c0_33] : memref<2x288x24xbf16, #tpu.memory_space<vmem>>, vector<1x256x24xbf16>
    %30 = vector.shape_cast %29 : vector<1x256x24xbf16> to vector<256x24xbf16>
    %c2_34 = arith.constant 2 : index
    %c0_35 = arith.constant 0 : index
    %c0_36 = arith.constant 0 : index
    %31 = vector.load %arg2[%c2_34, %c0_35, %c0_36] : memref<3x24x128xbf16, #tpu.memory_space<vmem>>, vector<1x24x128xbf16>
    %32 = vector.shape_cast %31 : vector<1x24x128xbf16> to vector<24x128xbf16>
    %cst_37 = arith.constant dense<0.000000e+00> : vector<256x128xf32>
    %33 = tpu.matmul %30, %32, %cst_37 {dimension_numbers = #tpu.dot_dimension_numbers<[1], [0], [0], [1], [0, 0, 1, 1], [], []>} : vector<256x24xbf16>, vector<24x128xbf16>, vector<256x128xf32> -> vector<256x128xf32>
    %34 = arith.addf %28, %33 : vector<256x128xf32>
    %c256 = arith.constant 256 : index
    %c0_38 = arith.constant 0 : index
    %35 = vector.load %arg5[%c256, %c0_38] : memref<512x128xf32, #tpu.memory_space<vmem>>, vector<256x128xf32>
    tpu.vector_store %arg5[%c256, %c0_38], %34 {strides = array<i32>} : memref<512x128xf32, #tpu.memory_space<vmem>>, vector<256x128xf32>,
    %c0_39 = arith.constant 0 : index
    %c0_40 = arith.constant 0 : index
    %36 = vector.load %arg5[%c0_39, %c0_40] : memref<512x128xf32, #tpu.memory_space<vmem>>, vector<512x128xf32>
    %cst_41 = arith.constant dense<0.000000e+00> : vector<128xf32>
    %37 = vector.multi_reduction <add>, %36, %cst_41 [0] : vector<512x128xf32> to vector<128xf32>
    %38 = vector.shape_cast %37 : vector<128xf32> to vector<1x128xf32>
    %cst_42 = arith.constant 0.001953125 : f32
    %39 = vector.broadcast %cst_42 : f32 to vector<1x128xf32>
    %40 = arith.mulf %38, %39 : vector<1x128xf32>
    %41 = arith.mulf %36, %36 : vector<512x128xf32>
    %cst_43 = arith.constant dense<0.000000e+00> : vector<128xf32>
    %42 = vector.multi_reduction <add>, %41, %cst_43 [0] : vector<512x128xf32> to vector<128xf32>
    %43 = vector.shape_cast %42 : vector<128xf32> to vector<1x128xf32>
    %cst_44 = arith.constant 0.001953125 : f32
    %44 = vector.broadcast %cst_44 : f32 to vector<1x128xf32>
    %45 = arith.mulf %43, %44 : vector<1x128xf32>
    %46 = arith.mulf %40, %40 : vector<1x128xf32>
    %47 = arith.subf %45, %46 : vector<1x128xf32>
    %cst_45 = arith.constant 0.000000e+00 : f32
    %48 = vector.broadcast %cst_45 : f32 to vector<1x128xf32>
    %49 = arith.maximumf %47, %48 : vector<1x128xf32>
    %c0_46 = arith.constant 0 : index
    %c0_47 = arith.constant 0 : index
    %50 = vector.load %arg3[%c0_46, %c0_47] : memref<1x128xf32, #tpu.memory_space<vmem>>, vector<1x128xf32>
    %cst_48 = arith.constant 9.99999974E-6 : f32
    %51 = vector.broadcast %cst_48 : f32 to vector<1x128xf32>
    %52 = arith.addf %49, %51 : vector<1x128xf32>
    %53 = math.rsqrt %52 : vector<1x128xf32>
    %54 = arith.mulf %50, %53 : vector<1x128xf32>
    %c0_49 = arith.constant 0 : index
    %c0_50 = arith.constant 0 : index
    %55 = vector.load %arg4[%c0_49, %c0_50] : memref<1x128xf32, #tpu.memory_space<vmem>>, vector<1x128xf32>
    %56 = arith.mulf %40, %54 : vector<1x128xf32>
    %57 = arith.subf %55, %56 : vector<1x128xf32>
    %58 = vector.broadcast %54 : vector<1x128xf32> to vector<512x128xf32>
    %59 = arith.mulf %36, %58 : vector<512x128xf32>
    %60 = vector.broadcast %57 : vector<1x128xf32> to vector<512x128xf32>
    %61 = arith.addf %59, %60 : vector<512x128xf32>
    %cst_51 = arith.constant 0.000000e+00 : f32
    %62 = vector.broadcast %cst_51 : f32 to vector<512x128xf32>
    %63 = arith.maximumf %61, %62 : vector<512x128xf32>
    %c0_52 = arith.constant 0 : index
    %c0_53 = arith.constant 0 : index
    %64 = vector.load %arg5[%c0_52, %c0_53] : memref<512x128xf32, #tpu.memory_space<vmem>>, vector<512x128xf32>
    tpu.vector_store %arg5[%c0_52, %c0_53], %63 {strides = array<i32>} : memref<512x128xf32, #tpu.memory_space<vmem>>, vector<512x128xf32>,
    return
  }
  func.func @transform_0(%arg0: i32) -> (i32, i32, i32) {
    %c0_i32 = arith.constant 0 : i32
    %c0_i32_0 = arith.constant 0 : i32
    %c0_i32_1 = arith.constant 0 : i32
    %c0_i32_2 = arith.constant 0 : i32
    return %c0_i32, %c0_i32_0, %c0_i32_1 : i32, i32, i32
  }
  func.func @transform_1(%arg0: i32) -> (i32, i32, i32) {
    %c0_i32 = arith.constant 0 : i32
    %c0_i32_0 = arith.constant 0 : i32
    %c0_i32_1 = arith.constant 0 : i32
    %c0_i32_2 = arith.constant 0 : i32
    return %c0_i32, %c0_i32_0, %c0_i32_1 : i32, i32, i32
  }
  func.func @transform_2(%arg0: i32) -> (i32, i32) {
    %c0_i32 = arith.constant 0 : i32
    %c0_i32_0 = arith.constant 0 : i32
    %c0_i32_1 = arith.constant 0 : i32
    return %c0_i32, %c0_i32_0 : i32, i32
  }
  func.func @transform_3(%arg0: i32) -> (i32, i32) {
    %c0_i32 = arith.constant 0 : i32
    %c0_i32_0 = arith.constant 0 : i32
    %c0_i32_1 = arith.constant 0 : i32
    return %c0_i32, %c0_i32_0 : i32, i32
  }
  func.func @transform_4(%arg0: i32) -> (i32, i32) {
    %c0_i32 = arith.constant 0 : i32
    %c0_i32_0 = arith.constant 0 : i32
    %c0_i32_1 = arith.constant 0 : i32
    return %c0_i32, %c0_i32_0 : i32, i32
  }
}

</mosaic_0001>

<bundles_post_ra>
// kernel: double_conv_forward.2
= control target key start
LH: loop header
LB: loop body
LE: loop exit
PB: predicated region body
PF: predicated region fallthrough
CT: control target
= control target key end

     0   :  { %vm191_vm0 = vcmask 1045504   ;;  %vm142_vm1 = vcmask 97280   ;;  %s4682_s1 = inlined_call_operand.vmem [shape: bf16[3,12,128], index: 1, kind: input, shape index: {}]   ;;  %s4683_s0 = inlined_call_operand.vmem [shape: bf16[2,288,12], index: 0, kind: input, shape index: {}]   ;;  %s4684_s2 = inlined_call_operand.vmem [shape: f32[1,128], index: 2, kind: input, shape index: {}]   ;;  %s4685_s3 = inlined_call_operand.vmem [shape: f32[1,128], index: 3, kind: input, shape index: {}]   ;;  %s4686_s4 = inlined_call_operand.vmem [shape: f32[512,128], index: 4, kind: output, shape index: {}]  }
   0x1   :  { %v3069_v0 = vld [vmem:[%s4682_s1 + $0x8] sm:$0x3f]   ;;  %v3186_v5 = vld [vmem:[%s4683_s0 + $0x98] sm:$0xff]   ;;  %v3193_v6 = vld [vmem:[%s4683_s0 + $0x10] sm:$0xff]  }
   0x2   :  { %v3070_v1 = vld [vmem:[%s4682_s1 + $0x8] sm:$0x3f]   ;;  %3063 = vmatprep.subr.msk.bf16.mxu0 %vm191_vm0, %v3069_v0  ;;  %v193_v2 = vsel %vm191_vm0, %v3069_v0, 0  ;;  %2835 = vmatprep.mubr.msk.bf16.mxu1 %vm142_vm1, %v3186_v5  ;;  %v3074_v7 = vld [vmem:[%s4682_s1] sm:$0x3f]   ;;  %v3212_v10 = vld [vmem:[%s4683_s0 + $0x18] sm:$0xff]  }
   0x3   :  { %v3179_v3 = vld [vmem:[%s4683_s0 + $0x8] sm:$0xff]   ;;  %3066 = vmatprep.subr.msk.bf16.mxu1 %vm191_vm0, %v3070_v1  ;;  %2732 = vmatpush3.bf16.msra.mxu0 %v193_v2  ;;  %v1102_v4 = vsel %vm191_vm0, %v3070_v1, 0  ;;  %v3205_v8 = vld [vmem:[%s4683_s0 + $0xa0] sm:$0xff]   ;;  %v370_v9 = vsel %vm191_vm0, %v3074_v7, 0  ;;  %v3238_v14 = vld [vmem:[%s4683_s0 + $0xb0] sm:$0xff]  }
   0x4   :  { %2834 = vmatpush3.bf16.msra.mxu1 %v1102_v4  ;;  %2733 = vmatprep.mubr.msk.bf16.mxu0 %vm142_vm1, %v3179_v3  ;;  %v3219_v11 = vld [vmem:[%s4683_s0 + $0xa8] sm:$0xff]   ;;  %v3228_v12 = vld [vmem:[%s4683_s0 + $0x20] sm:$0xff]   ;;  %v3243_v15 = vld [vmem:[%s4683_s0 + $0xb8] sm:$0xff]  }
   0x5   :  { %3064 = vmatprep.subr.msk.bf16.mxu0 %vm191_vm0, %v3074_v7  ;;  %v3233_v13 = vld [vmem:[%s4683_s0 + $0x28] sm:$0xff]   ;;  %v3256_v16 = vld [vmem:[%s4683_s0 + $0x30] sm:$0xff]   ;;  %v3261_v17 = vld [vmem:[%s4683_s0 + $0x38] sm:$0xff]  }
   0x6   :  { %2734 = vmatmul.mubr.msk.bf16.vlgmr.msra.gmra.mrb[0].mxu0 %vm142_vm1, %v3193_v6  ;;  %v3266_v18 = vld [vmem:[%s4683_s0 + $0xc0] sm:$0xff]   ;;  %v3271_v19 = vld [vmem:[%s4683_s0 + $0xc8] sm:$0xff]   ;;  %v3294_v22 = vld [vmem:[%s4683_s0 + $0xd0] sm:$0xff]  }
   0x7   :  { %2836 = vmatmul.mubr.msk.bf16.vlgmr.msra.gmra.mrb[0].mxu1 %vm142_vm1, %v3205_v8  ;;  %2766 = vmatpush3.bf16.msra.mxu0 %v370_v9  ;;  %v3284_v20 = vld [vmem:[%s4683_s0 + $0x40] sm:$0xff]   ;;  %v3289_v21 = vld [vmem:[%s4683_s0 + $0x48] sm:$0xff]   ;;  %v3299_v23 = vld [vmem:[%s4683_s0 + $0xd8] sm:$0xff]  }
   0x8   :  { %2737 = vmatprep.mubr.msk.bf16.mxu0 %vm142_vm1, %v3212_v10  ;;  %2839 = vmatprep.mubr.msk.bf16.mxu1 %vm142_vm1, %v3219_v11  ;;  %v3090_v24 = vld [vmem:[%s4683_s0 + $0x50] sm:$0xff]   ;;  %v3315_v25 = vld [vmem:[%s4683_s0 + $0x58] sm:$0xff]   ;;  %v3104_v26 = vld [vmem:[%s4682_s1] sm:$0x3f]  }
   0x9   :  { %v3091_v27 = vld [vmem:[%s4683_s0 + $0xe0] sm:$0xff]   ;;  %v3093_v28 = vld [vmem:[%s4683_s0 + $0xe8] sm:$0xff]   ;;  %3067 = vmatprep.subr.msk.bf16.mxu1 %vm191_vm0, %v3104_v26  ;;  %v1279_v29 = vsel %vm191_vm0, %v3104_v26, 0  ;;  %v3107_v30 = vld [vmem:[%s4682_s1 + $0x10] sm:$0x3f]  }
   0xa   :  { %2868 = vmatpush3.bf16.msra.mxu1 %v1279_v29  ;;  %v3108_v31 = vld [vmem:[%s4682_s1 + $0x10] sm:$0x3f]   ;;  %3065 = vmatprep.subr.msk.bf16.mxu0 %vm191_vm0, %v3107_v30  ;;  %v3094_v32 = vld [vmem:[%s4683_s0 + $0x60] sm:$0xff]   ;;  %v3096_v33 = vld [vmem:[%s4683_s0 + $0x68] sm:$0xff]   ;;  %v702_v44 = vsel %vm191_vm0, %v3107_v30, 0 }
   0xb   :  { %3068 = vmatprep.subr.msk.bf16.mxu1 %vm191_vm0, %v3108_v31  ;;  %v3095_v34 = vld [vmem:[%s4683_s0 + $0xf0] sm:$0xff]   ;;  %v3097_v35 = vld [vmem:[%s4683_s0 + $0xf8] sm:$0xff]   ;;  %v3099_v38 = vld [vmem:[%s4683_s0 + $0x100] sm:$0xff]   ;;  %v1610_v45 = vsel %vm191_vm0, %v3108_v31, 0 }
   0xc   :  { %v3098_v36 = vld [vmem:[%s4683_s0 + $0x70] sm:$0xff]   ;;  %v3100_v37 = vld [vmem:[%s4683_s0 + $0x78] sm:$0xff]   ;;  %v3101_v39 = vld [vmem:[%s4683_s0 + $0x108] sm:$0xff]  }
   0xd   :  { %v3102_v40 = vld [vmem:[%s4683_s0 + $0x80] sm:$0xff]   ;;  %v3103_v42 = vld [vmem:[%s4683_s0 + $0x110] sm:$0xff]   ;;  %v3111_v48 = vld [vmem:[%s4683_s0 + $0x18] sm:$0xff]  }
   0xe   :  { %2738 = vmatmul.mubr.msk.bf16.gmra.mrb[4].mxu0 %vm142_vm1, %v3228_v12  ;;  %v3105_v41 = vld [vmem:[%s4683_s0] sm:$0xff]   ;;  %v3106_v43 = vld [vmem:[%s4683_s0 + $0x90] sm:$0xff]   ;;  %v3112_v50 = vld [vmem:[%s4683_s0 + $0xa8] sm:$0xff]  }
   0xf   :  { %2741 = vmatprep.mubr.msk.bf16.mxu0 %vm142_vm1, %v3233_v13  ;;  %2840 = vmatmul.mubr.msk.bf16.gmra.mrb[4].mxu1 %vm142_vm1, %v3238_v14  ;;  %v3109_v46 = vld [vmem:[%s4683_s0 + $0x10] sm:$0xff]   ;;  %v3110_v47 = vld [vmem:[%s4683_s0 + $0xa0] sm:$0xff]   ;;  %v3115_v52 = vld [vmem:[%s4683_s0 + $0x28] sm:$0xff]  }
  0x10   :  { %2843 = vmatprep.mubr.msk.bf16.mxu1 %vm142_vm1, %v3243_v15  ;;  %v3113_v49 = vld [vmem:[%s4683_s0 + $0x20] sm:$0xff]   ;;  %v3114_v51 = vld [vmem:[%s4683_s0 + $0xb0] sm:$0xff]   ;;  %v3116_v54 = vld [vmem:[%s4683_s0 + $0xb8] sm:$0xff]  }
  0x11   :  { %v3117_v53 = vld [vmem:[%s4683_s0 + $0x30] sm:$0xff]   ;;  %v3118_v55 = vld [vmem:[%s4683_s0 + $0xc0] sm:$0xff]   ;;  %v3119_v56 = vld [vmem:[%s4683_s0 + $0x38] sm:$0xff]  }
  0x12   :  { %v3121_v57 = vld [vmem:[%s4683_s0 + $0x40] sm:$0xff]   ;;  %v3120_v58 = vld [vmem:[%s4683_s0 + $0xc8] sm:$0xff]   ;;  %v3122_v59 = vld [vmem:[%s4683_s0 + $0xd0] sm:$0xff]  }
  0x13   :  { %v3123_v60 = vld [vmem:[%s4683_s0 + $0x48] sm:$0xff]   ;;  %v3125_v61 = vld [vmem:[%s4683_s0 + $0x50] sm:$0xff]   ;;  %v3124_v62 = vld [vmem:[%s4683_s0 + $0xd8] sm:$0xff]  }
  0x14   :  { %v3126_v63 = vld [vmem:[%s4683_s0 + $0xe0] sm:$0xff]   ;;  %v3127_v0 = vld [vmem:[%s4683_s0 + $0x58] sm:$0xff]   ;;  %v3128_v2 = vld [vmem:[%s4683_s0 + $0xe8] sm:$0xff]  }
  0x15   :  { %v3129_v1 = vld [vmem:[%s4683_s0 + $0x60] sm:$0xff]   ;;  %v3131_v4 = vld [vmem:[%s4683_s0 + $0x68] sm:$0xff]  }
  0x16   :  { %2742 = vmatmul.mubr.msk.bf16.gmra.mrb[8].mxu0 %vm142_vm1, %v3256_v16  ;;  %v3134_v7 = vld [vmem:[%s4683_s0 + $0x100] sm:$0xff]  }
  0x17   :  { %2745 = vmatprep.mubr.msk.bf16.mxu0 %vm142_vm1, %v3261_v17  ;;  %2844 = vmatmul.mubr.msk.bf16.gmra.mrb[8].mxu1 %vm142_vm1, %v3266_v18  ;;  %v3137_v9 = vld [vmem:[%s4683_s0 + $0x80] sm:$0xff]  }
  0x18   :  { %2847 = vmatprep.mubr.msk.bf16.mxu1 %vm142_vm1, %v3271_v19 }
  0x1e   :  { %2746 = vmatmul.mubr.msk.bf16.gmra.mrb[12].mxu0 %vm142_vm1, %v3284_v20 }
  0x1f   :  { %2749 = vmatprep.mubr.msk.bf16.mxu0 %vm142_vm1, %v3289_v21  ;;  %2848 = vmatmul.mubr.msk.bf16.gmra.mrb[12].mxu1 %vm142_vm1, %v3294_v22 }
  0x20   :  { %2851 = vmatprep.mubr.msk.bf16.mxu1 %vm142_vm1, %v3299_v23 }
  0x26   :  { %2750 = vmatmul.mubr.msk.bf16.gmra.mrb[16].mxu0 %vm142_vm1, %v3090_v24 }
  0x27   :  { %2753 = vmatprep.mubr.msk.bf16.mxu0 %vm142_vm1, %v3315_v25  ;;  %2852 = vmatmul.mubr.msk.bf16.gmra.mrb[16].mxu1 %vm142_vm1, %v3091_v27 }
  0x28   :  { %2855 = vmatprep.mubr.msk.bf16.mxu1 %vm142_vm1, %v3093_v28 }
  0x2e   :  { %2754 = vmatmul.mubr.msk.bf16.gmra.mrb[20].mxu0 %vm142_vm1, %v3094_v32 }
  0x2f   :  { %2757 = vmatprep.mubr.msk.bf16.mxu0 %vm142_vm1, %v3096_v33  ;;  %2856 = vmatmul.mubr.msk.bf16.gmra.mrb[20].mxu1 %vm142_vm1, %v3095_v34 }
  0x30   :  { %2859 = vmatprep.mubr.msk.bf16.mxu1 %vm142_vm1, %v3097_v35 }
  0x36   :  { %2758 = vmatmul.mubr.msk.bf16.gmra.mrb[24].mxu0 %vm142_vm1, %v3098_v36 }
  0x37   :  { %2761 = vmatprep.mubr.msk.bf16.mxu0 %vm142_vm1, %v3100_v37  ;;  %2860 = vmatmul.mubr.msk.bf16.gmra.mrb[24].mxu1 %vm142_vm1, %v3099_v38 }
  0x38   :  { %2863 = vmatprep.mubr.msk.bf16.mxu1 %vm142_vm1, %v3101_v39 }
  0x3e   :  { %2762 = vmatmul.mubr.msk.bf16.gmra.mrb[28].mxu0 %vm142_vm1, %v3102_v40 }
  0x3f   :  { %2767 = vmatprep.mubr.msk.bf16.mxu0 %vm142_vm1, %v3105_v41  ;;  %2864 = vmatmul.mubr.msk.bf16.gmra.mrb[28].mxu1 %vm142_vm1, %v3103_v42 }
  0x40   :  { %2869 = vmatprep.mubr.msk.bf16.mxu1 %vm142_vm1, %v3106_v43 }
  0x46   :  { %2768 = vmatmul.mubr.msk.bf16.vlgmr.msra.gmra.mrb[0].mxu0 %vm142_vm1, %v3179_v3  ;;  %v3130_v3 = vld [vmem:[%s4683_s0 + $0xf0] sm:$0xff]  }
  0x47   :  { %2800 = vmatpush3.bf16.msra.mxu0 %v702_v44  ;;  %2771 = vmatprep.mubr.msk.bf16.mxu0 %vm142_vm1, %v3193_v6  ;;  %v3132_v6 = vld [vmem:[%s4683_s0 + $0xf8] sm:$0xff]  }
  0x48   :  { %2870 = vmatmul.mubr.msk.bf16.vlgmr.msra.gmra.mrb[0].mxu1 %vm142_vm1, %v3186_v5  ;;  %v3133_v5 = vld [vmem:[%s4683_s0 + $0x70] sm:$0xff]  }
  0x49   :  { %2873 = vmatprep.mubr.msk.bf16.mxu1 %vm142_vm1, %v3205_v8  ;;  %2902 = vmatpush3.bf16.msra.mxu1 %v1610_v45  ;;  %v3135_v8 = vld [vmem:[%s4683_s0 + $0x78] sm:$0xff]  }
  0x4e   :  { %2772 = vmatmul.mubr.msk.bf16.gmra.mrb[4].mxu0 %vm142_vm1, %v3212_v10  ;;  %v3136_v10 = vld [vmem:[%s4683_s0 + $0x108] sm:$0xff]  }
  0x4f   :  { %2775 = vmatprep.mubr.msk.bf16.mxu0 %vm142_vm1, %v3228_v12  ;;  %v3139_v12 = vld [vmem:[%s4683_s0 + $0x88] sm:$0xff]  }
  0x50   :  { %2874 = vmatmul.mubr.msk.bf16.gmra.mrb[4].mxu1 %vm142_vm1, %v3219_v11  ;;  %v3138_v11 = vld [vmem:[%s4683_s0 + $0x110] sm:$0xff]  }
  0x51   :  { %2877 = vmatprep.mubr.msk.bf16.mxu1 %vm142_vm1, %v3238_v14 }
  0x56   :  { %2776 = vmatmul.mubr.msk.bf16.gmra.mrb[8].mxu0 %vm142_vm1, %v3233_v13  ;;  %v3140_v13 = vld [vmem:[%s4683_s0 + $0x118] sm:$0xff]  }
  0x57   :  { %2779 = vmatprep.mubr.msk.bf16.mxu0 %vm142_vm1, %v3256_v16 }
  0x58   :  { %2878 = vmatmul.mubr.msk.bf16.gmra.mrb[8].mxu1 %vm142_vm1, %v3243_v15 }
  0x59   :  { %2881 = vmatprep.mubr.msk.bf16.mxu1 %vm142_vm1, %v3266_v18 }
  0x5e   :  { %2780 = vmatmul.mubr.msk.bf16.gmra.mrb[12].mxu0 %vm142_vm1, %v3261_v17 }
  0x5f   :  { %2783 = vmatprep.mubr.msk.bf16.mxu0 %vm142_vm1, %v3284_v20 }
  0x60   :  { %2882 = vmatmul.mubr.msk.bf16.gmra.mrb[12].mxu1 %vm142_vm1, %v3271_v19 }
  0x61   :  { %2885 = vmatprep.mubr.msk.bf16.mxu1 %vm142_vm1, %v3294_v22 }
  0x66   :  { %2784 = vmatmul.mubr.msk.bf16.gmra.mrb[16].mxu0 %vm142_vm1, %v3289_v21 }
  0x67   :  { %2787 = vmatprep.mubr.msk.bf16.mxu0 %vm142_vm1, %v3090_v24 }
  0x68   :  { %2886 = vmatmul.mubr.msk.bf16.gmra.mrb[16].mxu1 %vm142_vm1, %v3299_v23 }
  0x69   :  { %2889 = vmatprep.mubr.msk.bf16.mxu1 %vm142_vm1, %v3091_v27 }
  0x6e   :  { %2788 = vmatmul.mubr.msk.bf16.gmra.mrb[20].mxu0 %vm142_vm1, %v3315_v25 }
  0x6f   :  { %2791 = vmatprep.mubr.msk.bf16.mxu0 %vm142_vm1, %v3094_v32 }
  0x70   :  { %2890 = vmatmul.mubr.msk.bf16.gmra.mrb[20].mxu1 %vm142_vm1, %v3093_v28 }
  0x71   :  { %2893 = vmatprep.mubr.msk.bf16.mxu1 %vm142_vm1, %v3095_v34 }
  0x76   :  { %2792 = vmatmul.mubr.msk.bf16.gmra.mrb[24].mxu0 %vm142_vm1, %v3096_v33 }
  0x77   :  { %2795 = vmatprep.mubr.msk.bf16.mxu0 %vm142_vm1, %v3098_v36 }
  0x78   :  { %2894 = vmatmul.mubr.msk.bf16.gmra.mrb[24].mxu1 %vm142_vm1, %v3097_v35 }
  0x79   :  { %2897 = vmatprep.mubr.msk.bf16.mxu1 %vm142_vm1, %v3099_v38 }
  0x7e   :  { %2796 = vmatmul.mubr.msk.bf16.gmra.mrb[28].mxu0 %vm142_vm1, %v3100_v37 }
  0x7f   :  { %2801 = vmatprep.mubr.msk.bf16.mxu0 %vm142_vm1, %v3109_v46 }
  0x80   :  { %2898 = vmatmul.mubr.msk.bf16.gmra.mrb[28].mxu1 %vm142_vm1, %v3101_v39 }
  0x81   :  { %2903 = vmatprep.mubr.msk.bf16.mxu1 %vm142_vm1, %v3110_v47 }
  0x86   :  { %2802 = vmatmul.mubr.msk.bf16.vlgmr.msra.gmra.mrb[0].mxu0 %vm142_vm1, %v3111_v48 }
  0x87   :  { %2805 = vmatprep.mubr.msk.bf16.mxu0 %vm142_vm1, %v3113_v49 }
  0x88   :  { %2904 = vmatmul.mubr.msk.bf16.vlgmr.msra.gmra.mrb[0].mxu1 %vm142_vm1, %v3112_v50 }
  0x89   :  { %2907 = vmatprep.mubr.msk.bf16.mxu1 %vm142_vm1, %v3114_v51 }
  0x8e   :  { %2806 = vmatmul.mubr.msk.bf16.gmra.mrb[4].mxu0 %vm142_vm1, %v3115_v52 }
  0x8f   :  { %2809 = vmatprep.mubr.msk.bf16.mxu0 %vm142_vm1, %v3117_v53 }
  0x90   :  { %2908 = vmatmul.mubr.msk.bf16.gmra.mrb[4].mxu1 %vm142_vm1, %v3116_v54 }
  0x91   :  { %2911 = vmatprep.mubr.msk.bf16.mxu1 %vm142_vm1, %v3118_v55 }
  0x96   :  { %2810 = vmatmul.mubr.msk.bf16.gmra.mrb[8].mxu0 %vm142_vm1, %v3119_v56 }
  0x97   :  { %2813 = vmatprep.mubr.msk.bf16.mxu0 %vm142_vm1, %v3121_v57 }
  0x98   :  { %2912 = vmatmul.mubr.msk.bf16.gmra.mrb[8].mxu1 %vm142_vm1, %v3120_v58 }
  0x99   :  { %2915 = vmatprep.mubr.msk.bf16.mxu1 %vm142_vm1, %v3122_v59 }
  0x9e   :  { %2814 = vmatmul.mubr.msk.bf16.gmra.mrb[12].mxu0 %vm142_vm1, %v3123_v60 }
  0x9f   :  { %2817 = vmatprep.mubr.msk.bf16.mxu0 %vm142_vm1, %v3125_v61 }
  0xa0   :  { %2916 = vmatmul.mubr.msk.bf16.gmra.mrb[12].mxu1 %vm142_vm1, %v3124_v62 }
  0xa1   :  { %2919 = vmatprep.mubr.msk.bf16.mxu1 %vm142_vm1, %v3126_v63 }
  0xa6   :  { %2818 = vmatmul.mubr.msk.bf16.gmra.mrb[16].mxu0 %vm142_vm1, %v3127_v0 }
  0xa7   :  { %2821 = vmatprep.mubr.msk.bf16.mxu0 %vm142_vm1, %v3129_v1 }
  0xa8   :  { %2920 = vmatmul.mubr.msk.bf16.gmra.mrb[16].mxu1 %vm142_vm1, %v3128_v2 }
  0xa9   :  { %2923 = vmatprep.mubr.msk.bf16.mxu1 %vm142_vm1, %v3130_v3 }
  0xae   :  { %2822 = vmatmul.mubr.msk.bf16.gmra.mrb[20].mxu0 %vm142_vm1, %v3131_v4 }
  0xaf   :  { %2825 = vmatprep.mubr.msk.bf16.mxu0 %vm142_vm1, %v3133_v5 }
  0xb0   :  { %2924 = vmatmul.mubr.msk.bf16.gmra.mrb[20].mxu1 %vm142_vm1, %v3132_v6 }
  0xb1   :  { %2927 = vmatprep.mubr.msk.bf16.mxu1 %vm142_vm1, %v3134_v7 }
  0xb6   :  { %2826 = vmatmul.mubr.msk.bf16.gmra.mrb[24].mxu0 %vm142_vm1, %v3135_v8 }
  0xb7   :  { %2829 = vmatprep.mubr.msk.bf16.mxu0 %vm142_vm1, %v3137_v9 }
  0xb8   :  { %2928 = vmatmul.mubr.msk.bf16.gmra.mrb[24].mxu1 %vm142_vm1, %v3136_v10 }
  0xb9   :  { %2931 = vmatprep.mubr.msk.bf16.mxu1 %vm142_vm1, %v3138_v11 }
  0xbe   :  { %2830 = vmatmul.mubr.msk.bf16.gmra.mrb[28].mxu0 %vm142_vm1, %v3139_v12 }
  0xc0   :  { %2932 = vmatmul.mubr.msk.bf16.gmra.mrb[28].mxu1 %vm142_vm1, %v3140_v13 }
 0x159   :  { %v3568_v14 = vpop.f32.mrb[0].mxu0 }
 0x15a   :  { %v3570_v15 = vpop.f32.mrb[1].mxu0  ;;  %v1973_v25 = vmul.f32 %v3568_v14, %v3568_v14 }
 0x15b   :  { %v3572_v16 = vpop.f32.mrb[0].mxu1  ;;  %v3574_v17 = vpop.f32.mrb[2].mxu0  ;;  %v1971_v20 = vmul.f32 %v3570_v15, %v3570_v15 }
 0x15c   :  { %v3576_v18 = vpop.f32.mrb[1].mxu1  ;;  %v3578_v19 = vpop.f32.mrb[3].mxu0  ;;  %v1974_v28 = vmul.f32 %v3574_v17, %v3574_v17 }
 0x15d   :  { %v3582_v21 = vpop.f32.mrb[2].mxu1  ;;  %v1901_v22 = vadd.f32 %v3578_v19, %v3570_v15  ;;  %v1972_v23 = vmul.f32 %v3578_v19, %v3578_v19 }
 0x15e   :  { %v3588_v24 = vpop.f32.mrb[3].mxu1 }
 0x15f   :  { %v1902_v26 = vadd.f32 %v3568_v14, %v1901_v22  ;;  %v2035_v27 = vadd.f32 %v1972_v23, %v1971_v20 }
 0x161   :  { %v2036_v29 = vadd.f32 %v2035_v27, %v1973_v25  ;;  %v3595_v30 = vpop.f32.mrb[4].mxu0  ;;  %v1903_v31 = vadd.f32 %v3574_v17, %v1902_v26 }
 0x162   :  { %v3598_v32 = vpop.f32.mrb[5].mxu0  ;;  %v1977_v45 = vmul.f32 %v3595_v30, %v3595_v30 }
 0x163   :  { %v3600_v33 = vpop.f32.mrb[4].mxu1  ;;  %v1904_v34 = vadd.f32 %v1903_v31, %v3598_v32  ;;  %v1975_v35 = vmul.f32 %v3598_v32, %v3598_v32  ;;  %v2037_v36 = vadd.f32 %v2036_v29, %v1974_v28  ;;  %v3605_v37 = vpop.f32.mrb[6].mxu0 }
 0x164   :  { %v3607_v38 = vpop.f32.mrb[5].mxu1  ;;  %v3609_v39 = vpop.f32.mrb[7].mxu0  ;;  %v1978_v48 = vmul.f32 %v3605_v37, %v3605_v37 }
 0x165   :  { %v2038_v40 = vadd.f32 %v2037_v36, %v1975_v35  ;;  %v3611_v41 = vpop.f32.mrb[6].mxu1  ;;  %v1905_v42 = vadd.f32 %v1904_v34, %v3609_v39  ;;  %v1976_v43 = vmul.f32 %v3609_v39, %v3609_v39 }
 0x166   :  { %v3616_v44 = vpop.f32.mrb[7].mxu1 }
 0x167   :  { %v1906_v46 = vadd.f32 %v3595_v30, %v1905_v42  ;;  %v2039_v47 = vadd.f32 %v2038_v40, %v1976_v43 }
 0x169   :  { %v2040_v49 = vadd.f32 %v2039_v47, %v1977_v45  ;;  %v3623_v50 = vpop.f32.mrb[8].mxu0  ;;  %v1907_v51 = vadd.f32 %v3605_v37, %v1906_v46 }
 0x16a   :  { %v3626_v52 = vpop.f32.mrb[9].mxu0  ;;  %v1981_v1 = vmul.f32 %v3623_v50, %v3623_v50 }
 0x16b   :  { %v3628_v53 = vpop.f32.mrb[8].mxu1  ;;  %v1908_v54 = vadd.f32 %v1907_v51, %v3626_v52  ;;  %v1979_v55 = vmul.f32 %v3626_v52, %v3626_v52  ;;  %v2041_v56 = vadd.f32 %v2040_v49, %v1978_v48  ;;  %v3633_v57 = vpop.f32.mrb[10].mxu0 }
 0x16c   :  { %v3635_v58 = vpop.f32.mrb[9].mxu1  ;;  %v3637_v59 = vpop.f32.mrb[11].mxu0  ;;  %v1982_v4 = vmul.f32 %v3633_v57, %v3633_v57 }
 0x16d   :  { %v2042_v60 = vadd.f32 %v2041_v56, %v1979_v55  ;;  %v3639_v61 = vpop.f32.mrb[10].mxu1  ;;  %v1909_v62 = vadd.f32 %v1908_v54, %v3637_v59  ;;  %v1980_v63 = vmul.f32 %v3637_v59, %v3637_v59 }
 0x16e   :  { %v3644_v0 = vpop.f32.mrb[11].mxu1 }
 0x16f   :  { %v1910_v2 = vadd.f32 %v3623_v50, %v1909_v62  ;;  %v2043_v3 = vadd.f32 %v2042_v60, %v1980_v63 }
 0x171   :  { %v2044_v5 = vadd.f32 %v2043_v3, %v1981_v1  ;;  %v3651_v6 = vpop.f32.mrb[12].mxu0  ;;  %v1911_v7 = vadd.f32 %v3633_v57, %v1910_v2 }
 0x172   :  { %v3654_v8 = vpop.f32.mrb[13].mxu0  ;;  %v1985_v29 = vmul.f32 %v3651_v6, %v3651_v6 }
 0x173   :  { %v3656_v9 = vpop.f32.mrb[12].mxu1  ;;  %v1912_v10 = vadd.f32 %v1911_v7, %v3654_v8  ;;  %v1983_v11 = vmul.f32 %v3654_v8, %v3654_v8  ;;  %v2045_v12 = vadd.f32 %v2044_v5, %v1982_v4  ;;  %v3661_v13 = vpop.f32.mrb[14].mxu0 }
 0x174   :  { %4712 = vst [vmem:[#allocation2_spill] sm:$0xff] %v3661_v13  ;;  %v3663_v20 = vpop.f32.mrb[13].mxu1  ;;  %v3665_v22 = vpop.f32.mrb[15].mxu0  ;;  %v1986_v35 = vmul.f32 %v3661_v13, %v3661_v13 }
 0x175   :  { %v2046_v23 = vadd.f32 %v2045_v12, %v1983_v11  ;;  %v3667_v25 = vpop.f32.mrb[14].mxu1  ;;  %v1913_v26 = vadd.f32 %v1912_v10, %v3665_v22  ;;  %v1984_v27 = vmul.f32 %v3665_v22, %v3665_v22 }
 0x176   :  { %v3672_v28 = vpop.f32.mrb[15].mxu1 }
 0x177   :  { %v1914_v31 = vadd.f32 %v3651_v6, %v1913_v26  ;;  %v2047_v34 = vadd.f32 %v2046_v23, %v1984_v27 }
 0x179   :  { %v2048_v36 = vadd.f32 %v2047_v34, %v1985_v29  ;;  %v3679_v40 = vpop.f32.mrb[16].mxu0  ;;  %v1915_v42 = vadd.f32 %v3661_v13, %v1914_v31 }
 0x17a   :  { %4713 = vst [vmem:[#allocation3_spill] sm:$0xff] %v3679_v40  ;;  %v3682_v43 = vpop.f32.mrb[17].mxu0  ;;  %v1989_v1 = vmul.f32 %v3679_v40, %v3679_v40 }
 0x17b   :  { %4714 = vst [vmem:[#allocation4_spill] sm:$0xff] %v3682_v43  ;;  %v3684_v45 = vpop.f32.mrb[16].mxu1  ;;  %v1916_v46 = vadd.f32 %v1915_v42, %v3682_v43  ;;  %v1987_v47 = vmul.f32 %v3682_v43, %v3682_v43  ;;  %v2049_v48 = vadd.f32 %v2048_v36, %v1986_v35  ;;  %v3689_v49 = vpop.f32.mrb[18].mxu0 }
 0x17c   :  { %4715 = vst [vmem:[#allocation5_spill] sm:$0xff] %v3689_v49  ;;  %v3691_v51 = vpop.f32.mrb[17].mxu1  ;;  %v3693_v54 = vpop.f32.mrb[19].mxu0  ;;  %v1990_v4 = vmul.f32 %v3689_v49, %v3689_v49 }
 0x17d   :  { %4716 = vst [vmem:[#allocation6_spill] sm:$0xff] %v3693_v54  ;;  %v2050_v55 = vadd.f32 %v2049_v48, %v1987_v47  ;;  %v3695_v56 = vpop.f32.mrb[18].mxu1  ;;  %v1917_v60 = vadd.f32 %v1916_v46, %v3693_v54  ;;  %v1988_v62 = vmul.f32 %v3693_v54, %v3693_v54  ;;  %v2004_v54 = vmul.f32 %v3588_v24, %v3588_v24 }
 0x17e   :  { %v3700_v63 = vpop.f32.mrb[19].mxu1 }
 0x17f   :  { %v1918_v2 = vadd.f32 %v3679_v40, %v1917_v60  ;;  %v2051_v3 = vadd.f32 %v2050_v55, %v1988_v62 }
 0x181   :  { %v2052_v5 = vadd.f32 %v2051_v3, %v1989_v1  ;;  %v3707_v7 = vpop.f32.mrb[20].mxu0  ;;  %v1919_v10 = vadd.f32 %v3689_v49, %v1918_v2 }
 0x182   :  { %4717 = vst [vmem:[#allocation7_spill] sm:$0xff] %v3707_v7  ;;  %v3710_v11 = vpop.f32.mrb[21].mxu0  ;;  %v1993_v48 = vmul.f32 %v3707_v7, %v3707_v7 }
 0x183   :  { %4718 = vst [vmem:[#allocation8_spill] sm:$0xff] %v3710_v11  ;;  %v3712_v12 = vpop.f32.mrb[20].mxu1  ;;  %v1920_v23 = vadd.f32 %v1919_v10, %v3710_v11  ;;  %v1991_v26 = vmul.f32 %v3710_v11, %v3710_v11  ;;  %v2053_v27 = vadd.f32 %v2052_v5, %v1990_v4  ;;  %v3717_v29 = vpop.f32.mrb[22].mxu0 }
 0x184   :  { %4719 = vst [vmem:[#allocation9_spill] sm:$0xff] %v3717_v29  ;;  %v3719_v31 = vpop.f32.mrb[21].mxu1  ;;  %v3721_v34 = vpop.f32.mrb[23].mxu0  ;;  %v1994_v62 = vmul.f32 %v3717_v29, %v3717_v29 }
 0x185   :  { %4720 = vst [vmem:[#allocation10_spill] sm:$0xff] %v3721_v34  ;;  %v2054_v35 = vadd.f32 %v2053_v27, %v1991_v26  ;;  %v3723_v36 = vpop.f32.mrb[22].mxu1  ;;  %v1921_v42 = vadd.f32 %v1920_v23, %v3721_v34  ;;  %v1992_v46 = vmul.f32 %v3721_v34, %v3721_v34 }
 0x186   :  { %4721 = vst [vmem:[#allocation11_spill] sm:$0xff] %v3723_v36  ;;  %v3728_v47 = vpop.f32.mrb[23].mxu1 }
 0x187   :  { %v1922_v55 = vadd.f32 %v3707_v7, %v1921_v42  ;;  %v2055_v60 = vadd.f32 %v2054_v35, %v1992_v46 }
 0x189   :  { %v2056_v1 = vadd.f32 %v2055_v60, %v1993_v48  ;;  %v3735_v2 = vpop.f32.mrb[24].mxu0  ;;  %v1923_v3 = vadd.f32 %v3717_v29, %v1922_v55 }
 0x18a   :  { %4722 = vst [vmem:[#allocation12_spill] sm:$0xff] %v3735_v2  ;;  %v3738_v4 = vpop.f32.mrb[25].mxu0 }
 0x18b   :  { %4723 = vst [vmem:[#allocation13_spill] sm:$0xff] %v3738_v4  ;;  %v3740_v5 = vpop.f32.mrb[24].mxu1  ;;  %v1924_v10 = vadd.f32 %v1923_v3, %v3738_v4  ;;  %v1995_v23 = vmul.f32 %v3738_v4, %v3738_v4  ;;  %v2057_v26 = vadd.f32 %v2056_v1, %v1994_v62  ;;  %v3745_v27 = vpop.f32.mrb[26].mxu0  ;;  %v1997_v3 = vmul.f32 %v3735_v2, %v3735_v2 }
 0x18c   :  { %4724 = vst [vmem:[#allocation14_spill] sm:$0xff] %v3740_v5  ;;  %4725 = vst [vmem:[#allocation15_spill] sm:$0xff] %v3745_v27  ;;  %v3747_v35 = vpop.f32.mrb[25].mxu1  ;;  %v3749_v42 = vpop.f32.mrb[27].mxu0  ;;  %v1998_v4 = vmul.f32 %v3745_v27, %v3745_v27 }
 0x18d   :  { %4726 = vst [vmem:[#allocation16_spill] sm:$0xff] %v3747_v35  ;;  %4727 = vst [vmem:[#allocation17_spill] sm:$0xff] %v3749_v42  ;;  %v2058_v46 = vadd.f32 %v2057_v26, %v1995_v23  ;;  %v3751_v48 = vpop.f32.mrb[26].mxu1  ;;  %v1925_v55 = vadd.f32 %v1924_v10, %v3749_v42  ;;  %v1996_v60 = vmul.f32 %v3749_v42, %v3749_v42 }
 0x18e   :  { %4728 = vst [vmem:[#allocation18_spill] sm:$0xff] %v3751_v48  ;;  %v3756_v29 = vpop.f32.mrb[27].mxu1 }
 0x18f   :  { %4729 = vst [vmem:[#allocation19_spill] sm:$0xff] %v3756_v29  ;;  %v1926_v62 = vadd.f32 %v3735_v2, %v1925_v55  ;;  %v2059_v1 = vadd.f32 %v2058_v46, %v1996_v60 }
 0x191   :  { %v2060_v7 = vadd.f32 %v2059_v1, %v1997_v3  ;;  %v3763_v23 = vpop.f32.mrb[28].mxu0  ;;  %v1927_v26 = vadd.f32 %v3745_v27, %v1926_v62 }
 0x192   :  { %v3766_v10 = vpop.f32.mrb[29].mxu0 }
 0x193   :  { %4730 = vst [vmem:[#allocation20_spill] sm:$0xff] %v3766_v10  ;;  %v3768_v34 = vpop.f32.mrb[28].mxu1  ;;  %v1928_v42 = vadd.f32 %v1927_v26, %v3766_v10  ;;  %v1999_v11 = vmul.f32 %v3766_v10, %v3766_v10  ;;  %v2061_v49 = vadd.f32 %v2060_v7, %v1998_v4  ;;  %v3773_v55 = vpop.f32.mrb[30].mxu0  ;;  %v2001_v26 = vmul.f32 %v3763_v23, %v3763_v23 }
 0x194   :  { %4731 = vst [vmem:[#allocation21_spill] sm:$0xff] %v3768_v34  ;;  %v3775_v46 = vpop.f32.mrb[29].mxu1  ;;  %v3777_v60 = vpop.f32.mrb[31].mxu0  ;;  %v2002_v10 = vmul.f32 %v3773_v55, %v3773_v55 }
 0x195   :  { %4732 = vst [vmem:[#allocation22_spill] sm:$0xff] %v3775_v46  ;;  %4733 = vst [vmem:[#allocation23_spill] sm:$0xff] %v3777_v60  ;;  %v2062_v3 = vadd.f32 %v2061_v49, %v1999_v11  ;;  %v3779_v1 = vpop.f32.mrb[30].mxu1  ;;  %v1929_v62 = vadd.f32 %v1928_v42, %v3777_v60  ;;  %v2000_v27 = vmul.f32 %v3777_v60, %v3777_v60 }
 0x196   :  { %4734 = vst [vmem:[#allocation24_spill] sm:$0xff] %v3779_v1  ;;  %v3784_v2 = vpop.f32.mrb[31].mxu1  ;;  %v2003_v42 = vmul.f32 %v3576_v18, %v3576_v18 }
 0x197   :  { %4735 = vst [vmem:[#allocation25_spill] sm:$0xff] %v3784_v2  ;;  %v1930_v7 = vadd.f32 %v3763_v23, %v1929_v62  ;;  %v2063_v4 = vadd.f32 %v2062_v3, %v2000_v27  ;;  %v2005_v27 = vmul.f32 %v3572_v16, %v3572_v16 }
 0x199   :  { %v1931_v49 = vadd.f32 %v3773_v55, %v1930_v7  ;;  %v2064_v11 = vadd.f32 %v2063_v4, %v2001_v26  ;;  %v2006_v26 = vmul.f32 %v3582_v21, %v3582_v21 }
 0x19b   :  { %v1932_v40 = vadd.f32 %v1931_v49, %v3576_v18  ;;  %v2065_v60 = vadd.f32 %v2064_v11, %v2002_v10  ;;  %v2007_v10 = vmul.f32 %v3607_v38, %v3607_v38 }
 0x19d   :  { %v1933_v43 = vadd.f32 %v1932_v40, %v3588_v24  ;;  %v2066_v13 = vadd.f32 %v2065_v60, %v2003_v42  ;;  %v2008_v40 = vmul.f32 %v3616_v44, %v3616_v44 }
 0x19f   :  { %v1934_v3 = vadd.f32 %v3572_v16, %v1933_v43  ;;  %v2067_v62 = vadd.f32 %v2066_v13, %v2004_v54  ;;  %v2009_v13 = vmul.f32 %v3600_v33, %v3600_v33 }
 0x1a1   :  { %v1935_v7 = vadd.f32 %v3582_v21, %v1934_v3  ;;  %v2068_v4 = vadd.f32 %v2067_v62, %v2005_v27  ;;  %v2010_v27 = vmul.f32 %v3611_v41, %v3611_v41 }
 0x1a3   :  { %v1936_v49 = vadd.f32 %v1935_v7, %v3607_v38  ;;  %v2069_v11 = vadd.f32 %v2068_v4, %v2006_v26  ;;  %v2011_v26 = vmul.f32 %v3635_v58, %v3635_v58 }
 0x1a5   :  { %v1937_v60 = vadd.f32 %v1936_v49, %v3616_v44  ;;  %v2070_v42 = vadd.f32 %v2069_v11, %v2007_v10  ;;  %v2012_v10 = vmul.f32 %v3644_v0, %v3644_v0 }
 0x1a7   :  { %v1938_v43 = vadd.f32 %v3600_v33, %v1937_v60  ;;  %v2071_v54 = vadd.f32 %v2070_v42, %v2008_v40  ;;  %v2013_v40 = vmul.f32 %v3628_v53, %v3628_v53 }
 0x1a9   :  { %v2072_v3 = vadd.f32 %v2071_v54, %v2009_v13  ;;  %v1939_v62 = vadd.f32 %v3611_v41, %v1938_v43  ;;  %v2014_v13 = vmul.f32 %v3639_v61, %v3639_v61 }
 0x1ab   :  { %v1940_v7 = vadd.f32 %v1939_v62, %v3635_v58  ;;  %v2073_v4 = vadd.f32 %v2072_v3, %v2010_v27  ;;  %v2015_v27 = vmul.f32 %v3663_v20, %v3663_v20 }
 0x1ad   :  { %v1941_v49 = vadd.f32 %v1940_v7, %v3644_v0  ;;  %v2074_v11 = vadd.f32 %v2073_v4, %v2011_v26  ;;  %v2016_v26 = vmul.f32 %v3672_v28, %v3672_v28 }
 0x1af   :  { %v1942_v60 = vadd.f32 %v3628_v53, %v1941_v49  ;;  %v2075_v42 = vadd.f32 %v2074_v11, %v2012_v10  ;;  %v2017_v10 = vmul.f32 %v3656_v9, %v3656_v9 }
 0x1b1   :  { %v1943_v43 = vadd.f32 %v3639_v61, %v1942_v60  ;;  %v2076_v54 = vadd.f32 %v2075_v42, %v2013_v40  ;;  %v2018_v40 = vmul.f32 %v3667_v25, %v3667_v25 }
 0x1b3   :  { %v1944_v3 = vadd.f32 %v1943_v43, %v3663_v20  ;;  %v2077_v62 = vadd.f32 %v2076_v54, %v2014_v13  ;;  %v2019_v13 = vmul.f32 %v3691_v51, %v3691_v51 }
 0x1b5   :  { %v1945_v7 = vadd.f32 %v1944_v3, %v3672_v28  ;;  %v2078_v4 = vadd.f32 %v2077_v62, %v2015_v27  ;;  %v2020_v27 = vmul.f32 %v3700_v63, %v3700_v63 }
 0x1b7   :  { %v1946_v49 = vadd.f32 %v3656_v9, %v1945_v7  ;;  %v2079_v11 = vadd.f32 %v2078_v4, %v2016_v26  ;;  %v2021_v26 = vmul.f32 %v3684_v45, %v3684_v45 }
 0x1b9   :  { %v1947_v60 = vadd.f32 %v3667_v25, %v1946_v49  ;;  %v2080_v42 = vadd.f32 %v2079_v11, %v2017_v10  ;;  %v2022_v49 = vmul.f32 %v3695_v56, %v3695_v56 }
 0x1bb   :  { %v1948_v43 = vadd.f32 %v1947_v60, %v3691_v51  ;;  %v2081_v54 = vadd.f32 %v2080_v42, %v2018_v40  ;;  %v2023_v60 = vmul.f32 %v3719_v31, %v3719_v31 }
 0x1bd   :  { %v1949_v3 = vadd.f32 %v1948_v43, %v3700_v63  ;;  %v2082_v62 = vadd.f32 %v2081_v54, %v2019_v13  ;;  %v2024_v43 = vmul.f32 %v3728_v47, %v3728_v47 }
 0x1bf   :  { %v1950_v7 = vadd.f32 %v3684_v45, %v1949_v3  ;;  %v2083_v4 = vadd.f32 %v2082_v62, %v2020_v27  ;;  %v2025_v3 = vmul.f32 %v3712_v12, %v3712_v12 }
 0x1c1   :  { %v1951_v10 = vadd.f32 %v3695_v56, %v1950_v7  ;;  %v2084_v11 = vadd.f32 %v2083_v4, %v2021_v26  ;;  %v2026_v7 = vmul.f32 %v3723_v36, %v3723_v36 }
 0x1c3   :  { %v1952_v40 = vadd.f32 %v1951_v10, %v3719_v31  ;;  %v2085_v42 = vadd.f32 %v2084_v11, %v2022_v49  ;;  %v2027_v49 = vmul.f32 %v3747_v35, %v3747_v35 }
 0x1c5   :  { %v1953_v13 = vadd.f32 %v1952_v40, %v3728_v47  ;;  %v2086_v54 = vadd.f32 %v2085_v42, %v2023_v60  ;;  %v2028_v60 = vmul.f32 %v3756_v29, %v3756_v29 }
 0x1c7   :  { %v1954_v27 = vadd.f32 %v3712_v12, %v1953_v13  ;;  %v2087_v62 = vadd.f32 %v2086_v54, %v2024_v43  ;;  %v2029_v43 = vmul.f32 %v3740_v5, %v3740_v5 }
 0x1c9   :  { %v1955_v26 = vadd.f32 %v3723_v36, %v1954_v27  ;;  %v2088_v4 = vadd.f32 %v2087_v62, %v2025_v3  ;;  %v2030_v3 = vmul.f32 %v3751_v48, %v3751_v48 }
 0x1cb   :  { %v1956_v10 = vadd.f32 %v1955_v26, %v3747_v35  ;;  %v2089_v11 = vadd.f32 %v2088_v4, %v2026_v7  ;;  %v2031_v7 = vmul.f32 %v3775_v46, %v3775_v46 }
 0x1cd   :  { %v1957_v40 = vadd.f32 %v1956_v10, %v3756_v29  ;;  %v2090_v42 = vadd.f32 %v2089_v11, %v2027_v49  ;;  %v2032_v49 = vmul.f32 %v3784_v2, %v3784_v2 }
 0x1cf   :  { %v1958_v13 = vadd.f32 %v3740_v5, %v1957_v40  ;;  %v2091_v54 = vadd.f32 %v2090_v42, %v2028_v60  ;;  %v2033_v60 = vmul.f32 %v3768_v34, %v3768_v34 }
 0x1d1   :  { %v1959_v27 = vadd.f32 %v3751_v48, %v1958_v13  ;;  %v2092_v62 = vadd.f32 %v2091_v54, %v2029_v43  ;;  %v2034_v43 = vmul.f32 %v3779_v1, %v3779_v1 }
 0x1d3   :  { %v1960_v26 = vadd.f32 %v1959_v27, %v3775_v46  ;;  %v2093_v4 = vadd.f32 %v2092_v62, %v2030_v3 }
 0x1d5   :  { %v1961_v10 = vadd.f32 %v1960_v26, %v3784_v2  ;;  %v2094_v11 = vadd.f32 %v2093_v4, %v2031_v7 }
 0x1d7   :  { %v1962_v40 = vadd.f32 %v3768_v34, %v1961_v10  ;;  %v2095_v42 = vadd.f32 %v2094_v11, %v2032_v49 }
 0x1d9   :  { %v1963_v13 = vadd.f32 %v3779_v1, %v1962_v40  ;;  %v2096_v54 = vadd.f32 %v2095_v42, %v2033_v60  ;;  %v2116_v60 = vlaneseq }
 0x1db   :  { %v1964_v27 = vrot.slane %v1963_v13, 4  ;;  %v2097_v3 = vadd.f32 %v2096_v54, %v2034_v43  ;;  %v3888_v42 = vshrl.u32 %v2116_v60, 7  ;;  %v4743_v60 = vld [vmem:[#allocation7_spill] sm:$0xff] }
 0x1dd   :  { %v1965_v62 = vadd.f32 %v1964_v27, %v1963_v13  ;;  %v2098_v26 = vrot.slane %v2097_v3, 4  ;;  %v4711_v13 = vsub.s32 0, %v3888_v42 }
 0x1df   :  { %v1966_v46 = vrot.slane %v1965_v62, 2  ;;  %v2099_v48 = vadd.f32 %v2098_v26, %v2097_v3  ;;  %v4736_v3 = vld [vmem:[#allocation2_spill] sm:$0xff] }
 0x1e0   :  { %v4738_v26 = vld [vmem:[#allocation6_spill] sm:$0xff] }
 0x1e1   :  { %v1967_v2 = vadd.f32 %v1966_v46, %v1965_v62  ;;  %v2100_v7 = vrot.slane %v2099_v48, 2  ;;  %v2108_v46 = vld [vmem:[%s4684_s2] sm:$0x1]  ;;  %v4737_v62 = vld [vmem:[#allocation4_spill] sm:$0xff] }
 0x1e3   :  { %v1968_v4 = vrot.slane %v1967_v2, 1  ;;  %v2101_v10 = vadd.f32 %v2100_v7, %v2099_v48  ;;  %v4739_v7 = vld [vmem:[#allocation3_spill] sm:$0xff] }
 0x1e5   :  { %v1969_v5 = vadd.f32 %v1968_v4, %v1967_v2  ;;  %v2102_v29 = vrot.slane %v2101_v10, 1  ;;  %v4740_v4 = vld [vmem:[#allocation5_spill] sm:$0xff] }
 0x1e7   :  { %v1970_v34 = vmul.f32 0.001953125, %v1969_v5  ;;  %v2103_v49 = vadd.f32 %v2102_v29, %v2101_v10  ;;  %v3897_v29 = vld [vmem:[%s4685_s3] sm:$0x1]  ;;  %v4741_v10 = vld [vmem:[#allocation8_spill] sm:$0xff] }
 0x1e9   :  { %v2104_v11 = vmul.f32 0.001953125, %v2103_v49  ;;  %v2105_v40 = vmul.f32 %v1970_v34, %v1970_v34 }
 0x1eb   :  { %v2106_v35 = vsub.f32 %v2104_v11, %v2105_v40  ;;  %v4742_v11 = vld [vmem:[#allocation10_spill] sm:$0xff] }
 0x1ed   :  { %v2107_v36 = vmax.f32 %v2106_v35, 0.0  ;;  %v4749_v35 = vld [vmem:[#allocation20_spill] sm:$0xff] }
 0x1ef   :  { %v2109_v1 = vadd.f32 1e-05, %v2107_v36 }
 0x1f1   :  { %3141 = vrsqrt.f32 %v2109_v1 }
 0x1fb   :  { %v3142_v48 = vpop.eup %3141 }
 0x1fc   :  { %v2111_v2 = vmul.f32 %v3142_v48, %v2108_v46  ;;  %v4744_v48 = vld [vmem:[#allocation9_spill] sm:$0xff] }
 0x1fe   :  { %v3899_v5 = vmul.f32 %v2111_v2, %v1970_v34  ;;  %v3903_v36 = vrot.slane %v2111_v2, %v4711_v13  ;;  %v4750_v13 = vld [vmem:[#allocation23_spill] sm:$0xff] }
 0x200   :  { %v3909_v1 = vmul.f32 %v3903_v36, %v3570_v15  ;;  %v3913_v43 = vmul.f32 %v3903_v36, %v3578_v19  ;;  %v3917_v54 = vmul.f32 %v3568_v14, %v3903_v36  ;;  %v3921_v34 = vmul.f32 %v3574_v17, %v3903_v36 }
 0x201   :  { %v3925_v27 = vmul.f32 %v3903_v36, %v3598_v32  ;;  %v3929_v15 = vmul.f32 %v3903_v36, %v3609_v39  ;;  %v3933_v19 = vmul.f32 %v3595_v30, %v3903_v36  ;;  %v3937_v14 = vmul.f32 %v3605_v37, %v3903_v36 }
 0x202   :  { %v3941_v17 = vmul.f32 %v3903_v36, %v3626_v52  ;;  %v3945_v32 = vmul.f32 %v3903_v36, %v3637_v59  ;;  %v3949_v39 = vmul.f32 %v3623_v50, %v3903_v36  ;;  %v3953_v30 = vmul.f32 %v3633_v57, %v3903_v36 }
 0x203   :  { %v3957_v37 = vmul.f32 %v3903_v36, %v3654_v8  ;;  %v3961_v52 = vmul.f32 %v3903_v36, %v3665_v22  ;;  %v3965_v59 = vmul.f32 %v3651_v6, %v3903_v36  ;;  %v3969_v50 = vmul.f32 %v4736_v3, %v3903_v36  ;;  %v4745_v3 = vld [vmem:[#allocation13_spill] sm:$0xff] }
 0x204   :  { %v3973_v57 = vmul.f32 %v3903_v36, %v4737_v62  ;;  %v3977_v8 = vmul.f32 %v3903_v36, %v4738_v26  ;;  %v3981_v22 = vmul.f32 %v4739_v7, %v3903_v36  ;;  %v3985_v6 = vmul.f32 %v4740_v4, %v3903_v36  ;;  %v4746_v26 = vld [vmem:[#allocation17_spill] sm:$0xff]  ;;  %v4747_v4 = vld [vmem:[#allocation12_spill] sm:$0xff] }
 0x205   :  { %v3989_v49 = vmul.f32 %v3903_v36, %v4741_v10  ;;  %v3993_v40 = vmul.f32 %v3903_v36, %v4742_v11  ;;  %v3997_v46 = vmul.f32 %v4743_v60, %v3903_v36  ;;  %v4001_v2 = vmul.f32 %v4744_v48, %v3903_v36  ;;  %v4748_v11 = vld [vmem:[#allocation15_spill] sm:$0xff] }
 0x206   :  { %v4005_v62 = vmul.f32 %v3903_v36, %v4745_v3  ;;  %v4009_v7 = vmul.f32 %v3903_v36, %v4746_v26  ;;  %v4013_v10 = vmul.f32 %v4747_v4, %v3903_v36  ;;  %v4017_v60 = vmul.f32 %v4748_v11, %v3903_v36 }
 0x207   :  { %v4021_v48 = vmul.f32 %v3903_v36, %v4749_v35  ;;  %v4025_v3 = vmul.f32 %v3903_v36, %v4750_v13  ;;  %v4029_v26 = vmul.f32 %v3763_v23, %v3903_v36  ;;  %v4033_v4 = vmul.f32 %v3773_v55, %v3903_v36 }
 0x208   :  { %v4037_v11 = vmul.f32 %v3903_v36, %v3576_v18  ;;  %v4041_v35 = vmul.f32 %v3903_v36, %v3588_v24  ;;  %v4045_v13 = vmul.f32 %v3572_v16, %v3903_v36  ;;  %v4049_v23 = vmul.f32 %v3582_v21, %v3903_v36 }
 0x209   :  { %v4053_v55 = vmul.f32 %v3903_v36, %v3607_v38  ;;  %v4057_v18 = vmul.f32 %v3903_v36, %v3616_v44  ;;  %v4061_v24 = vmul.f32 %v3600_v33, %v3903_v36  ;;  %v4065_v16 = vmul.f32 %v3611_v41, %v3903_v36 }
 0x20a   :  { %v4069_v21 = vmul.f32 %v3903_v36, %v3635_v58  ;;  %v4073_v38 = vmul.f32 %v3903_v36, %v3644_v0  ;;  %v4077_v44 = vmul.f32 %v3628_v53, %v3903_v36  ;;  %v4081_v33 = vmul.f32 %v3639_v61, %v3903_v36 }
 0x20b   :  { %v4085_v41 = vmul.f32 %v3903_v36, %v3663_v20  ;;  %v4089_v58 = vmul.f32 %v3903_v36, %v3672_v28  ;;  %v4093_v0 = vmul.f32 %v3656_v9, %v3903_v36  ;;  %v4097_v53 = vmul.f32 %v3667_v25, %v3903_v36 }
 0x20c   :  { %v4101_v61 = vmul.f32 %v3903_v36, %v3691_v51  ;;  %v4105_v20 = vmul.f32 %v3903_v36, %v3700_v63  ;;  %v4109_v28 = vmul.f32 %v3684_v45, %v3903_v36  ;;  %v4113_v9 = vmul.f32 %v3695_v56, %v3903_v36 }
 0x20d   :  { %v4117_v25 = vmul.f32 %v3903_v36, %v3719_v31  ;;  %v4121_v51 = vmul.f32 %v3903_v36, %v3728_v47  ;;  %v4125_v63 = vmul.f32 %v3712_v12, %v3903_v36 }
 0x20e   :  { %4751 = vst [vmem:[#allocation2_spill] sm:$0xff] %v4105_v20  ;;  %4752 = vst [vmem:[#allocation4_spill] sm:$0xff] %v4109_v28  ;;  %v4757_v20 = vld [vmem:[#allocation11_spill] sm:$0xff]  ;;  %v4759_v28 = vld [vmem:[#allocation16_spill] sm:$0xff] }
 0x20f   :  { %4753 = vst [vmem:[#allocation6_spill] sm:$0xff] %v4113_v9  ;;  %4754 = vst [vmem:[#allocation3_spill] sm:$0xff] %v4117_v25  ;;  %v4129_v45 = vmul.f32 %v4757_v20, %v3903_v36  ;;  %v4133_v56 = vmul.f32 %v3903_v36, %v4759_v28  ;;  %v4761_v9 = vld [vmem:[#allocation19_spill] sm:$0xff]  ;;  %v4763_v25 = vld [vmem:[#allocation14_spill] sm:$0xff] }
 0x210   :  { %4755 = vst [vmem:[#allocation5_spill] sm:$0xff] %v4121_v51  ;;  %4756 = vst [vmem:[#allocation8_spill] sm:$0xff] %v4125_v63  ;;  %v4137_v31 = vmul.f32 %v3903_v36, %v4761_v9  ;;  %v4141_v47 = vmul.f32 %v4763_v25, %v3903_v36  ;;  %v4765_v51 = vld [vmem:[#allocation18_spill] sm:$0xff] }
 0x211   :  { %4758 = vst [vmem:[#allocation10_spill] sm:$0xff] %v4129_v45  ;;  %4760 = vst [vmem:[#allocation7_spill] sm:$0xff] %v4133_v56  ;;  %v4145_v12 = vmul.f32 %v4765_v51, %v3903_v36  ;;  %v4767_v63 = vld [vmem:[#allocation22_spill] sm:$0xff]  ;;  %v4768_v45 = vld [vmem:[#allocation25_spill] sm:$0xff]  ;;  %v4772_v51 = vsub.f32 %v3897_v29, %v3899_v5 }
 0x212   :  { %4762 = vst [vmem:[#allocation9_spill] sm:$0xff] %v4137_v31  ;;  %4764 = vst [vmem:[#allocation13_spill] sm:$0xff] %v4141_v47  ;;  %v4149_v20 = vmul.f32 %v3903_v36, %v4767_v63  ;;  %v4153_v28 = vmul.f32 %v3903_v36, %v4768_v45  ;;  %v4769_v56 = vld [vmem:[#allocation21_spill] sm:$0xff]  ;;  %v4770_v31 = vld [vmem:[#allocation24_spill] sm:$0xff]  ;;  %v4771_v47 = vsub.s32 0, %v3888_v42 }
 0x213   :  { %4766 = vst [vmem:[#allocation17_spill] sm:$0xff] %v4145_v12  ;;  %v4157_v9 = vmul.f32 %v4769_v56, %v3903_v36  ;;  %v4161_v25 = vmul.f32 %v4770_v31, %v3903_v36 }
 0x214   :  { %v4168_v12 = vrot.slane %v4772_v51, %v4771_v47 }
 0x216   :  { %v4172_v63 = vadd.f32 %v4168_v12, %v3909_v1  ;;  %v4176_v45 = vadd.f32 %v4168_v12, %v3913_v43  ;;  %v4180_v56 = vadd.f32 %v4168_v12, %v3917_v54  ;;  %v4184_v42 = vadd.f32 %v4168_v12, %v3921_v34  ;;  %v4778_v31 = vld [vmem:[#allocation6_spill] sm:$0xff]  ;;  %v4780_v47 = vld [vmem:[#allocation3_spill] sm:$0xff] }
 0x217   :  { %v4188_v29 = vadd.f32 %v4168_v12, %v3925_v27  ;;  %v4192_v5 = vadd.f32 %v4168_v12, %v3929_v15  ;;  %v4196_v36 = vadd.f32 %v4168_v12, %v3933_v19  ;;  %v4200_v1 = vadd.f32 %v4168_v12, %v3937_v14  ;;  %v4782_v51 = vld [vmem:[#allocation5_spill] sm:$0xff] }
 0x218   :  { %v4204_v43 = vadd.f32 %v4168_v12, %v3941_v17  ;;  %v4208_v54 = vadd.f32 %v4168_v12, %v3945_v32  ;;  %v4212_v34 = vadd.f32 %v4168_v12, %v3949_v39  ;;  %v4216_v27 = vadd.f32 %v4168_v12, %v3953_v30 }
 0x219   :  { %v4220_v15 = vadd.f32 %v4168_v12, %v3957_v37  ;;  %v4224_v19 = vadd.f32 %v4168_v12, %v3961_v52  ;;  %v4228_v14 = vadd.f32 %v4168_v12, %v3965_v59  ;;  %v4232_v17 = vadd.f32 %v4168_v12, %v3969_v50 }
 0x21a   :  { %v4236_v32 = vadd.f32 %v4168_v12, %v3973_v57  ;;  %v4240_v39 = vadd.f32 %v4168_v12, %v3977_v8  ;;  %v4244_v30 = vadd.f32 %v4168_v12, %v3981_v22  ;;  %v4248_v37 = vadd.f32 %v4168_v12, %v3985_v6 }
 0x21b   :  { %v4252_v52 = vadd.f32 %v4168_v12, %v3989_v49  ;;  %v4256_v59 = vadd.f32 %v4168_v12, %v3993_v40  ;;  %v4260_v50 = vadd.f32 %v4168_v12, %v3997_v46  ;;  %v4264_v57 = vadd.f32 %v4168_v12, %v4001_v2 }
 0x21c   :  { %v4268_v8 = vadd.f32 %v4168_v12, %v4005_v62  ;;  %v4272_v22 = vadd.f32 %v4168_v12, %v4009_v7  ;;  %v4276_v6 = vadd.f32 %v4168_v12, %v4013_v10  ;;  %v4280_v49 = vadd.f32 %v4168_v12, %v4017_v60 }
 0x21d   :  { %v4284_v40 = vadd.f32 %v4168_v12, %v4021_v48  ;;  %v4288_v46 = vadd.f32 %v4168_v12, %v4025_v3  ;;  %v4292_v2 = vadd.f32 %v4168_v12, %v4029_v26  ;;  %v4296_v62 = vadd.f32 %v4168_v12, %v4033_v4 }
 0x21e   :  { %v4300_v7 = vadd.f32 %v4168_v12, %v4037_v11  ;;  %v4304_v10 = vadd.f32 %v4168_v12, %v4041_v35  ;;  %v4308_v60 = vadd.f32 %v4168_v12, %v4045_v13  ;;  %v4312_v48 = vadd.f32 %v4168_v12, %v4049_v23 }
 0x21f   :  { %v4316_v3 = vadd.f32 %v4168_v12, %v4053_v55  ;;  %v4320_v26 = vadd.f32 %v4168_v12, %v4057_v18  ;;  %v4324_v4 = vadd.f32 %v4168_v12, %v4061_v24  ;;  %v4328_v11 = vadd.f32 %v4168_v12, %v4065_v16 }
 0x220   :  { %v4332_v35 = vadd.f32 %v4168_v12, %v4069_v21  ;;  %v4336_v13 = vadd.f32 %v4168_v12, %v4073_v38  ;;  %v4340_v23 = vadd.f32 %v4168_v12, %v4077_v44  ;;  %v4344_v55 = vadd.f32 %v4168_v12, %v4081_v33  ;;  %v4774_v44 = vld [vmem:[#allocation2_spill] sm:$0xff] }
 0x221   :  { %v4348_v18 = vadd.f32 %v4168_v12, %v4085_v41  ;;  %v4352_v24 = vadd.f32 %v4168_v12, %v4089_v58  ;;  %v4356_v16 = vadd.f32 %v4168_v12, %v4093_v0  ;;  %v4360_v21 = vadd.f32 %v4168_v12, %v4097_v53  ;;  %v4776_v41 = vld [vmem:[#allocation4_spill] sm:$0xff] }
 0x222   :  { %v4364_v38 = vadd.f32 %v4168_v12, %v4101_v61  ;;  %v4368_v33 = vadd.f32 %v4168_v12, %v4774_v44  ;;  %v4372_v58 = vadd.f32 %v4168_v12, %v4776_v41  ;;  %v4376_v0 = vadd.f32 %v4168_v12, %v4778_v31 }
 0x223   :  { %v4380_v53 = vadd.f32 %v4168_v12, %v4780_v47  ;;  %v4384_v61 = vadd.f32 %v4168_v12, %v4782_v51 }
 0x224   :  { %4773 = vst [vmem:[#allocation12_spill] sm:$0xff] %v4364_v38  ;;  %4775 = vst [vmem:[#allocation15_spill] sm:$0xff] %v4368_v33  ;;  %v4784_v38 = vld [vmem:[#allocation8_spill] sm:$0xff]  ;;  %v4785_v33 = vld [vmem:[#allocation10_spill] sm:$0xff] }
 0x225   :  { %4777 = vst [vmem:[#allocation20_spill] sm:$0xff] %v4372_v58  ;;  %4779 = vst [vmem:[#allocation23_spill] sm:$0xff] %v4376_v0  ;;  %v4388_v44 = vadd.f32 %v4168_v12, %v4784_v38  ;;  %v4392_v41 = vadd.f32 %v4168_v12, %v4785_v33  ;;  %v4786_v58 = vld [vmem:[#allocation7_spill] sm:$0xff]  ;;  %v4787_v0 = vld [vmem:[#allocation9_spill] sm:$0xff]  ;;  %v4412_v33 = vadd.f32 %v4168_v12, %v4149_v20  ;;  %v2258_v20 = vmax.f32 %v4184_v42, 0.0 }
 0x226   :  { %4781 = vst [vmem:[#allocation11_spill] sm:$0xff] %v4380_v53  ;;  %4783 = vst [vmem:[#allocation16_spill] sm:$0xff] %v4384_v61  ;;  %v4396_v31 = vadd.f32 %v4168_v12, %v4786_v58  ;;  %v4400_v47 = vadd.f32 %v4168_v12, %v4787_v0  ;;  %v4788_v53 = vld [vmem:[#allocation13_spill] sm:$0xff]  ;;  %v4416_v58 = vadd.f32 %v4168_v12, %v4153_v28  ;;  %v2260_v28 = vmax.f32 %v4192_v5, 0.0 }
 0x227   :  { %v4404_v51 = vadd.f32 %v4168_v12, %v4788_v53  ;;  %v4790_v61 = vld [vmem:[#allocation17_spill] sm:$0xff]  ;;  %4792 = vst [vmem:[#allocation18_spill] sm:$0xff] %v4412_v33  ;;  %v4420_v0 = vadd.f32 %v4168_v12, %v4157_v9  ;;  %v4424_v53 = vadd.f32 %v4168_v12, %v4161_v25  ;;  %v2259_v33 = vmax.f32 %v4188_v29, 0.0  ;;  %2322 = vst [vmem:[%s4686_s4 + $0x18] sm:$0xff] %v2258_v20 }
 0x228   :  { %v4408_v38 = vadd.f32 %v4168_v12, %v4790_v61  ;;  %4793 = vst [vmem:[#allocation22_spill] sm:$0xff] %v4416_v58  ;;  %v2256_v61 = vmax.f32 %v4176_v45, 0.0  ;;  %v2261_v58 = vmax.f32 %v4196_v36, 0.0  ;;  %v2262_v9 = vmax.f32 %v4200_v1, 0.0  ;;  %2324 = vst [vmem:[%s4686_s4 + $0x28] sm:$0xff] %v2260_v28 }
 0x229   :  { %4789 = vst [vmem:[#allocation19_spill] sm:$0xff] %v4404_v51  ;;  %4794 = vst [vmem:[#allocation25_spill] sm:$0xff] %v4420_v0  ;;  %v2255_v51 = vmax.f32 %v4172_v63, 0.0  ;;  %v2263_v0 = vmax.f32 %v4204_v43, 0.0  ;;  %v2264_v12 = vmax.f32 %v4208_v54, 0.0  ;;  %v2265_v25 = vmax.f32 %v4212_v34, 0.0 }
 0x22a   :  { %4791 = vst [vmem:[#allocation14_spill] sm:$0xff] %v4408_v38  ;;  %v2257_v38 = vmax.f32 %v4180_v56, 0.0  ;;  %v2266_v63 = vmax.f32 %v4216_v27, 0.0  ;;  %2320 = vst [vmem:[%s4686_s4 + $0x8] sm:$0xff] %v2256_v61  ;;  %v2267_v45 = vmax.f32 %v4220_v15, 0.0  ;;  %v2268_v56 = vmax.f32 %v4224_v19, 0.0 }
 0x22b   :  { %2319 = vst [vmem:[%s4686_s4] sm:$0xff] %v2255_v51  ;;  %v2269_v42 = vmax.f32 %v4228_v14, 0.0  ;;  %v2270_v29 = vmax.f32 %v4232_v17, 0.0  ;;  %2323 = vst [vmem:[%s4686_s4 + $0x20] sm:$0xff] %v2259_v33  ;;  %v2271_v5 = vmax.f32 %v4236_v32, 0.0  ;;  %v2272_v36 = vmax.f32 %v4240_v39, 0.0 }
 0x22c   :  { %2321 = vst [vmem:[%s4686_s4 + $0x10] sm:$0xff] %v2257_v38  ;;  %2325 = vst [vmem:[%s4686_s4 + $0x30] sm:$0xff] %v2261_v58  ;;  %v2273_v1 = vmax.f32 %v4244_v30, 0.0  ;;  %v2274_v43 = vmax.f32 %v4248_v37, 0.0  ;;  %v2275_v54 = vmax.f32 %v4252_v52, 0.0  ;;  %v2276_v34 = vmax.f32 %v4256_v59, 0.0 }
 0x22d   :  { %2326 = vst [vmem:[%s4686_s4 + $0x38] sm:$0xff] %v2262_v9  ;;  %2327 = vst [vmem:[%s4686_s4 + $0x40] sm:$0xff] %v2263_v0  ;;  %v2277_v27 = vmax.f32 %v4260_v50, 0.0  ;;  %v2278_v15 = vmax.f32 %v4264_v57, 0.0  ;;  %v2279_v19 = vmax.f32 %v4268_v8, 0.0  ;;  %v2280_v14 = vmax.f32 %v4272_v22, 0.0 }
 0x22e   :  { %2328 = vst [vmem:[%s4686_s4 + $0x48] sm:$0xff] %v2264_v12  ;;  %2329 = vst [vmem:[%s4686_s4 + $0x50] sm:$0xff] %v2265_v25  ;;  %v2281_v17 = vmax.f32 %v4276_v6, 0.0  ;;  %v2282_v32 = vmax.f32 %v4280_v49, 0.0  ;;  %v2283_v39 = vmax.f32 %v4284_v40, 0.0  ;;  %v2284_v30 = vmax.f32 %v4288_v46, 0.0 }
 0x22f   :  { %2330 = vst [vmem:[%s4686_s4 + $0x58] sm:$0xff] %v2266_v63  ;;  %2331 = vst [vmem:[%s4686_s4 + $0x60] sm:$0xff] %v2267_v45  ;;  %v2285_v37 = vmax.f32 %v4292_v2, 0.0  ;;  %v2286_v52 = vmax.f32 %v4296_v62, 0.0  ;;  %v2287_v59 = vmax.f32 %v4300_v7, 0.0  ;;  %v2288_v50 = vmax.f32 %v4304_v10, 0.0 }
 0x230   :  { %2332 = vst [vmem:[%s4686_s4 + $0x68] sm:$0xff] %v2268_v56  ;;  %2333 = vst [vmem:[%s4686_s4 + $0x70] sm:$0xff] %v2269_v42  ;;  %v2289_v57 = vmax.f32 %v4308_v60, 0.0  ;;  %v2290_v8 = vmax.f32 %v4312_v48, 0.0  ;;  %v2291_v22 = vmax.f32 %v4316_v3, 0.0  ;;  %v2292_v6 = vmax.f32 %v4320_v26, 0.0 }
 0x231   :  { %2334 = vst [vmem:[%s4686_s4 + $0x78] sm:$0xff] %v2270_v29  ;;  %2335 = vst [vmem:[%s4686_s4 + $0x80] sm:$0xff] %v2271_v5  ;;  %v2293_v49 = vmax.f32 %v4324_v4, 0.0  ;;  %v2294_v40 = vmax.f32 %v4328_v11, 0.0  ;;  %v2295_v46 = vmax.f32 %v4332_v35, 0.0  ;;  %v2296_v2 = vmax.f32 %v4336_v13, 0.0 }
 0x232   :  { %2336 = vst [vmem:[%s4686_s4 + $0x88] sm:$0xff] %v2272_v36  ;;  %2337 = vst [vmem:[%s4686_s4 + $0x90] sm:$0xff] %v2273_v1  ;;  %v2297_v62 = vmax.f32 %v4340_v23, 0.0  ;;  %v2298_v7 = vmax.f32 %v4344_v55, 0.0  ;;  %v2299_v10 = vmax.f32 %v4348_v18, 0.0  ;;  %v2300_v60 = vmax.f32 %v4352_v24, 0.0 }
 0x233   :  { %2338 = vst [vmem:[%s4686_s4 + $0x98] sm:$0xff] %v2274_v43  ;;  %2339 = vst [vmem:[%s4686_s4 + $0xa0] sm:$0xff] %v2275_v54  ;;  %v2301_v48 = vmax.f32 %v4356_v16, 0.0  ;;  %v2302_v3 = vmax.f32 %v4360_v21, 0.0  ;;  %v4795_v26 = vld [vmem:[#allocation12_spill] sm:$0xff]  ;;  %v4796_v11 = vld [vmem:[#allocation15_spill] sm:$0xff] }
 0x234   :  { %2340 = vst [vmem:[%s4686_s4 + $0xa8] sm:$0xff] %v2276_v34  ;;  %2341 = vst [vmem:[%s4686_s4 + $0xb0] sm:$0xff] %v2277_v27  ;;  %v2303_v4 = vmax.f32 %v4795_v26, 0.0  ;;  %v2304_v35 = vmax.f32 %v4796_v11, 0.0  ;;  %v4797_v13 = vld [vmem:[#allocation20_spill] sm:$0xff]  ;;  %v4798_v55 = vld [vmem:[#allocation23_spill] sm:$0xff] }
 0x235   :  { %2342 = vst [vmem:[%s4686_s4 + $0xb8] sm:$0xff] %v2278_v15  ;;  %2343 = vst [vmem:[%s4686_s4 + $0xc0] sm:$0xff] %v2279_v19  ;;  %v2305_v23 = vmax.f32 %v4797_v13, 0.0  ;;  %v2306_v18 = vmax.f32 %v4798_v55, 0.0  ;;  %v4799_v24 = vld [vmem:[#allocation11_spill] sm:$0xff]  ;;  %v4800_v21 = vld [vmem:[#allocation16_spill] sm:$0xff] }
 0x236   :  { %2344 = vst [vmem:[%s4686_s4 + $0xc8] sm:$0xff] %v2280_v14  ;;  %2345 = vst [vmem:[%s4686_s4 + $0xd0] sm:$0xff] %v2281_v17  ;;  %v2307_v16 = vmax.f32 %v4799_v24, 0.0  ;;  %v2308_v51 = vmax.f32 %v4800_v21, 0.0  ;;  %v2309_v38 = vmax.f32 %v4388_v44, 0.0  ;;  %v2310_v33 = vmax.f32 %v4392_v41, 0.0 }
 0x237   :  { %2346 = vst [vmem:[%s4686_s4 + $0xd8] sm:$0xff] %v2282_v32  ;;  %2347 = vst [vmem:[%s4686_s4 + $0xe0] sm:$0xff] %v2283_v39  ;;  %v2311_v44 = vmax.f32 %v4396_v31, 0.0  ;;  %v2312_v41 = vmax.f32 %v4400_v47, 0.0  ;;  %v4801_v58 = vld [vmem:[#allocation19_spill] sm:$0xff]  ;;  %v4802_v61 = vld [vmem:[#allocation14_spill] sm:$0xff] }
 0x238   :  { %2348 = vst [vmem:[%s4686_s4 + $0xe8] sm:$0xff] %v2284_v30  ;;  %2349 = vst [vmem:[%s4686_s4 + $0xf0] sm:$0xff] %v2285_v37  ;;  %v2313_v0 = vmax.f32 %v4801_v58, 0.0  ;;  %v2314_v20 = vmax.f32 %v4802_v61, 0.0  ;;  %v4803_v31 = vld [vmem:[#allocation18_spill] sm:$0xff]  ;;  %v4805_v12 = vld [vmem:[#allocation25_spill] sm:$0xff] }
 0x239   :  { %2350 = vst [vmem:[%s4686_s4 + $0xf8] sm:$0xff] %v2286_v52  ;;  %2351 = vst [vmem:[%s4686_s4 + $0x100] sm:$0xff] %v2287_v59  ;;  %v2315_v47 = vmax.f32 %v4803_v31, 0.0  ;;  %v4804_v28 = vld [vmem:[#allocation22_spill] sm:$0xff]  ;;  %v2317_v25 = vmax.f32 %v4805_v12, 0.0  ;;  %v2318_v63 = vmax.f32 %v4424_v53, 0.0 }
 0x23a   :  { %2352 = vst [vmem:[%s4686_s4 + $0x108] sm:$0xff] %v2288_v50  ;;  %2353 = vst [vmem:[%s4686_s4 + $0x110] sm:$0xff] %v2289_v57  ;;  %v2316_v9 = vmax.f32 %v4804_v28, 0.0 }
 0x23b   :  { %2354 = vst [vmem:[%s4686_s4 + $0x118] sm:$0xff] %v2290_v8  ;;  %2355 = vst [vmem:[%s4686_s4 + $0x120] sm:$0xff] %v2291_v22 }
 0x23c   :  { %2356 = vst [vmem:[%s4686_s4 + $0x128] sm:$0xff] %v2292_v6  ;;  %2357 = vst [vmem:[%s4686_s4 + $0x130] sm:$0xff] %v2293_v49 }
 0x23d   :  { %2358 = vst [vmem:[%s4686_s4 + $0x138] sm:$0xff] %v2294_v40  ;;  %2359 = vst [vmem:[%s4686_s4 + $0x140] sm:$0xff] %v2295_v46 }
 0x23e   :  { %2360 = vst [vmem:[%s4686_s4 + $0x148] sm:$0xff] %v2296_v2  ;;  %2361 = vst [vmem:[%s4686_s4 + $0x150] sm:$0xff] %v2297_v62 }
 0x23f   :  { %2362 = vst [vmem:[%s4686_s4 + $0x158] sm:$0xff] %v2298_v7  ;;  %2363 = vst [vmem:[%s4686_s4 + $0x160] sm:$0xff] %v2299_v10 }
 0x240   :  { %2364 = vst [vmem:[%s4686_s4 + $0x168] sm:$0xff] %v2300_v60  ;;  %2365 = vst [vmem:[%s4686_s4 + $0x170] sm:$0xff] %v2301_v48 }
 0x241   :  { %2366 = vst [vmem:[%s4686_s4 + $0x178] sm:$0xff] %v2302_v3  ;;  %2367 = vst [vmem:[%s4686_s4 + $0x180] sm:$0xff] %v2303_v4 }
 0x242   :  { %2368 = vst [vmem:[%s4686_s4 + $0x188] sm:$0xff] %v2304_v35  ;;  %2369 = vst [vmem:[%s4686_s4 + $0x190] sm:$0xff] %v2305_v23 }
 0x243   :  { %2370 = vst [vmem:[%s4686_s4 + $0x198] sm:$0xff] %v2306_v18  ;;  %2371 = vst [vmem:[%s4686_s4 + $0x1a0] sm:$0xff] %v2307_v16 }
 0x244   :  { %2372 = vst [vmem:[%s4686_s4 + $0x1a8] sm:$0xff] %v2308_v51  ;;  %2373 = vst [vmem:[%s4686_s4 + $0x1b0] sm:$0xff] %v2309_v38 }
 0x245   :  { %2374 = vst [vmem:[%s4686_s4 + $0x1b8] sm:$0xff] %v2310_v33  ;;  %2375 = vst [vmem:[%s4686_s4 + $0x1c0] sm:$0xff] %v2311_v44 }
 0x246   :  { %2376 = vst [vmem:[%s4686_s4 + $0x1c8] sm:$0xff] %v2312_v41  ;;  %2377 = vst [vmem:[%s4686_s4 + $0x1d0] sm:$0xff] %v2313_v0 }
 0x247   :  { %2378 = vst [vmem:[%s4686_s4 + $0x1d8] sm:$0xff] %v2314_v20  ;;  %2379 = vst [vmem:[%s4686_s4 + $0x1e0] sm:$0xff] %v2315_v47 }
 0x248   :  { %2380 = vst [vmem:[%s4686_s4 + $0x1e8] sm:$0xff] %v2316_v9  ;;  %2381 = vst [vmem:[%s4686_s4 + $0x1f0] sm:$0xff] %v2317_v25 }
 0x249   :  { %2382 = vst [vmem:[%s4686_s4 + $0x1f8] sm:$0xff] %v2318_v63 }

// kernel: double_conv_forward.3
= control target key start
LH: loop header
LB: loop body
LE: loop exit
PB: predicated region body
PF: predicated region fallthrough
CT: control target
= control target key end

     0   :  { %vm197_vm0 = vcmask 1043456   ;;  %vm148_vm1 = vcmask 195584   ;;  %s4776_s1 = inlined_call_operand.vmem [shape: bf16[3,24,128], index: 1, kind: input, shape index: {}]   ;;  %s4777_s0 = inlined_call_operand.vmem [shape: bf16[2,288,24], index: 0, kind: input, shape index: {}]   ;;  %s4778_s2 = inlined_call_operand.vmem [shape: f32[1,128], index: 2, kind: input, shape index: {}]   ;;  %s4779_s3 = inlined_call_operand.vmem [shape: f32[1,128], index: 3, kind: input, shape index: {}]   ;;  %s4780_s4 = inlined_call_operand.vmem [shape: f32[512,128], index: 4, kind: output, shape index: {}]  }
   0x1   :  { %v3127_v0 = vld [vmem:[%s4776_s1 + $0xc] sm:$0xff]   ;;  %v3129_v2 = vld [vmem:[%s4776_s1 + $0x14] ss:$0 sps:$4 sm:$0xff]   ;;  %v3256_v7 = vld [vmem:[%s4777_s0 + $0x98] sm:$0xff]  }
   0x2   :  { %v3128_v1 = vld [vmem:[%s4776_s1 + $0xc] sm:$0xff]   ;;  %2777 = vmatprep.subr.bf16.mxu0 %v3127_v0  ;;  %v3130_v3 = vld [vmem:[%s4776_s1 + $0x14] ss:$0 sps:$4 sm:$0xff]   ;;  %v199_v4 = vsel %vm197_vm0, %v3129_v2, 0  ;;  %2889 = vmatprep.mubr.msk.bf16.mxu1 %vm148_vm1, %v3256_v7  ;;  %v3134_v9 = vld [vmem:[%s4776_s1] sm:$0xff]  }
   0x3   :  { %2885 = vmatprep.subr.bf16.mxu1 %v3128_v1  ;;  %2778 = vmatpush3.bf16.msra.mxu0 %v3127_v0  ;;  %v3249_v5 = vld [vmem:[%s4777_s0 + $0x8] sm:$0xff]   ;;  %v1123_v6 = vsel %vm197_vm0, %v3130_v3, 0  ;;  %v3263_v8 = vld [vmem:[%s4777_s0 + $0x10] sm:$0xff]   ;;  %v3273_v10 = vld [vmem:[%s4777_s0 + $0xa0] sm:$0xff]  }
   0x4   :  { %2886 = vmatpush3.bf16.msra.mxu1 %v3128_v1  ;;  %3121 = vmatprep.subr.msk.bf16.mxu0 %vm197_vm0, %v3129_v2  ;;  %v3278_v11 = vld [vmem:[%s4777_s0 + $0x18] sm:$0xff]   ;;  %v3285_v12 = vld [vmem:[%s4777_s0 + $0xa8] sm:$0xff]   ;;  %v3296_v13 = vld [vmem:[%s4777_s0 + $0x20] sm:$0xff]  }
   0x5   :  { %3124 = vmatprep.subr.msk.bf16.mxu1 %vm197_vm0, %v3130_v3  ;;  %2781 = vmatprep.mubr.msk.bf16.mxu0 %vm148_vm1, %v3249_v5  ;;  %v3301_v14 = vld [vmem:[%s4777_s0 + $0xb0] sm:$0xff]   ;;  %v3306_v15 = vld [vmem:[%s4777_s0 + $0x28] sm:$0xff]   ;;  %v3311_v16 = vld [vmem:[%s4777_s0 + $0xb8] sm:$0xff]  }
   0x6   :  { %v3324_v17 = vld [vmem:[%s4777_s0 + $0x30] sm:$0xff]   ;;  %v3329_v18 = vld [vmem:[%s4777_s0 + $0xc0] sm:$0xff]   ;;  %v3334_v19 = vld [vmem:[%s4777_s0 + $0x38] sm:$0xff]  }
   0x7   :  { %2780 = vmatpush3.bf16.msra.mxu0 %v199_v4  ;;  %v3151_v20 = vld [vmem:[%s4776_s1 + $0x8] ss:$0 sps:$4 sm:$0xff]   ;;  %v3357_v23 = vld [vmem:[%s4777_s0 + $0x40] sm:$0xff]   ;;  %v3362_v24 = vld [vmem:[%s4777_s0 + $0xd0] sm:$0xff]  }
   0x8   :  { %2888 = vmatpush3.bf16.msra.mxu1 %v1123_v6  ;;  %2813 = vmatprep.subr.bf16.mxu0 %v3134_v9  ;;  %v3342_v21 = vld [vmem:[%s4777_s0 + $0xc8] sm:$0xff]   ;;  %v380_v22 = vsel %vm197_vm0, %v3151_v20, 0  ;;  %v3372_v26 = vld [vmem:[%s4777_s0 + $0xd8] sm:$0xff]   ;;  %v3385_v27 = vld [vmem:[%s4777_s0 + $0x50] sm:$0xff]  }
   0x9   :  { %v3367_v25 = vld [vmem:[%s4777_s0 + $0x48] sm:$0xff]   ;;  %v3390_v28 = vld [vmem:[%s4777_s0 + $0xe0] sm:$0xff]   ;;  %v3401_v31 = vld [vmem:[%s4777_s0 + $0x58] sm:$0xff]  }
   0xa   :  { %2782 = vmatmul.mubr.msk.bf16.vlgmr.msra.gmra.mrb[0].mxu0 %vm148_vm1, %v3263_v8  ;;  %v3165_v29 = vld [vmem:[%s4776_s1] sm:$0xff]   ;;  %v3166_v30 = vld [vmem:[%s4776_s1 + $0x8] ss:$0 sps:$4 sm:$0xff]   ;;  %v3169_v34 = vld [vmem:[%s4776_s1 + $0x18] sm:$0xff]  }
   0xb   :  { %2890 = vmatmul.mubr.msk.bf16.vlgmr.msra.gmra.mrb[0].mxu1 %vm148_vm1, %v3273_v10  ;;  %2814 = vmatpush3.bf16.msra.mxu0 %v3134_v9  ;;  %v3406_v32 = vld [vmem:[%s4777_s0 + $0xe8] sm:$0xff]   ;;  %v1304_v33 = vsel %vm197_vm0, %v3166_v30, 0  ;;  %v3171_v35 = vld [vmem:[%s4776_s1 + $0x18] sm:$0xff]   ;;  %v3155_v36 = vld [vmem:[%s4777_s0 + $0x60] sm:$0xff]  }
   0xc   :  { %2785 = vmatprep.mubr.msk.bf16.mxu0 %vm148_vm1, %v3278_v11  ;;  %2893 = vmatprep.mubr.msk.bf16.mxu1 %vm148_vm1, %v3285_v12  ;;  %v3156_v37 = vld [vmem:[%s4777_s0 + $0xf0] sm:$0xff]   ;;  %v3157_v38 = vld [vmem:[%s4777_s0 + $0x68] sm:$0xff]   ;;  %v3158_v39 = vld [vmem:[%s4777_s0 + $0xf8] sm:$0xff]  }
   0xd   :  { %3122 = vmatprep.subr.msk.bf16.mxu0 %vm197_vm0, %v3151_v20  ;;  %2921 = vmatprep.subr.bf16.mxu1 %v3165_v29  ;;  %v3159_v40 = vld [vmem:[%s4777_s0 + $0x70] sm:$0xff]   ;;  %v3160_v41 = vld [vmem:[%s4777_s0 + $0x100] sm:$0xff]   ;;  %v3161_v42 = vld [vmem:[%s4777_s0 + $0x78] sm:$0xff]  }
   0xe   :  { %2922 = vmatpush3.bf16.msra.mxu1 %v3165_v29  ;;  %v3162_v43 = vld [vmem:[%s4777_s0 + $0x108] sm:$0xff]   ;;  %v3163_v44 = vld [vmem:[%s4777_s0 + $0x80] sm:$0xff]   ;;  %v3164_v45 = vld [vmem:[%s4777_s0 + $0x110] sm:$0xff]  }
   0xf   :  { %2816 = vmatpush3.bf16.msra.mxu0 %v380_v22  ;;  %3125 = vmatprep.subr.msk.bf16.mxu1 %vm197_vm0, %v3166_v30  ;;  %v3167_v46 = vld [vmem:[%s4777_s0] sm:$0xff]   ;;  %v3168_v47 = vld [vmem:[%s4777_s0 + $0x90] sm:$0xff]   ;;  %v3175_v54 = vld [vmem:[%s4777_s0 + $0x18] sm:$0xff]  }
  0x10   :  { %2849 = vmatprep.subr.bf16.mxu0 %v3169_v34  ;;  %v3170_v48 = vld [vmem:[%s4776_s1 + $0x20] ss:$0 sps:$4 sm:$0xff]   ;;  %v3173_v52 = vld [vmem:[%s4777_s0 + $0x10] sm:$0xff]   ;;  %v3176_v55 = vld [vmem:[%s4777_s0 + $0xa8] sm:$0xff]  }
  0x11   :  { %v3172_v49 = vld [vmem:[%s4776_s1 + $0x20] ss:$0 sps:$4 sm:$0xff]   ;;  %v717_v50 = vsel %vm197_vm0, %v3170_v48, 0  ;;  %v3178_v57 = vld [vmem:[%s4777_s0 + $0xb0] sm:$0xff]   ;;  %v3179_v58 = vld [vmem:[%s4777_s0 + $0x28] sm:$0xff]  }
  0x12   :  { %2786 = vmatmul.mubr.msk.bf16.gmra.mrb[4].mxu0 %vm148_vm1, %v3296_v13  ;;  %2924 = vmatpush3.bf16.msra.mxu1 %v1304_v33  ;;  %v1640_v51 = vsel %vm197_vm0, %v3172_v49, 0  ;;  %v3174_v53 = vld [vmem:[%s4777_s0 + $0xa0] sm:$0xff]   ;;  %v3180_v59 = vld [vmem:[%s4777_s0 + $0xb8] sm:$0xff]   ;;  %v3181_v60 = vld [vmem:[%s4777_s0 + $0x30] sm:$0xff]  }
  0x13   :  { %2894 = vmatmul.mubr.msk.bf16.gmra.mrb[4].mxu1 %vm148_vm1, %v3301_v14  ;;  %2789 = vmatprep.mubr.msk.bf16.mxu0 %vm148_vm1, %v3306_v15  ;;  %v3177_v56 = vld [vmem:[%s4777_s0 + $0x20] sm:$0xff]   ;;  %v3183_v62 = vld [vmem:[%s4777_s0 + $0x38] sm:$0xff]   ;;  %v3184_v63 = vld [vmem:[%s4777_s0 + $0xc8] sm:$0xff]  }
  0x14   :  { %2897 = vmatprep.mubr.msk.bf16.mxu1 %vm148_vm1, %v3311_v16  ;;  %2957 = vmatprep.subr.bf16.mxu1 %v3171_v35  ;;  %v3182_v61 = vld [vmem:[%s4777_s0 + $0xc0] sm:$0xff]   ;;  %v3186_v1 = vld [vmem:[%s4777_s0 + $0xd0] sm:$0xff]   ;;  %v3187_v2 = vld [vmem:[%s4777_s0 + $0x48] sm:$0xff]  }
  0x15   :  { %v3185_v0 = vld [vmem:[%s4777_s0 + $0x40] sm:$0xff]   ;;  %v3188_v3 = vld [vmem:[%s4777_s0 + $0xd8] sm:$0xff]   ;;  %v3189_v4 = vld [vmem:[%s4777_s0 + $0x50] sm:$0xff]  }
  0x16   :  { %v3191_v6 = vld [vmem:[%s4777_s0 + $0x58] sm:$0xff]   ;;  %v3194_v9 = vld [vmem:[%s4777_s0 + $0xf0] sm:$0xff]  }
  0x1a   :  { %2790 = vmatmul.mubr.msk.bf16.gmra.mrb[8].mxu0 %vm148_vm1, %v3324_v17 }
  0x1b   :  { %2898 = vmatmul.mubr.msk.bf16.gmra.mrb[8].mxu1 %vm148_vm1, %v3329_v18  ;;  %2793 = vmatprep.mubr.msk.bf16.mxu0 %vm148_vm1, %v3334_v19 }
  0x1c   :  { %2901 = vmatprep.mubr.msk.bf16.mxu1 %vm148_vm1, %v3342_v21 }
  0x22   :  { %2794 = vmatmul.mubr.msk.bf16.gmra.mrb[12].mxu0 %vm148_vm1, %v3357_v23 }
  0x23   :  { %2902 = vmatmul.mubr.msk.bf16.gmra.mrb[12].mxu1 %vm148_vm1, %v3362_v24  ;;  %2797 = vmatprep.mubr.msk.bf16.mxu0 %vm148_vm1, %v3367_v25 }
  0x24   :  { %2905 = vmatprep.mubr.msk.bf16.mxu1 %vm148_vm1, %v3372_v26 }
  0x2a   :  { %2798 = vmatmul.mubr.msk.bf16.gmra.mrb[16].mxu0 %vm148_vm1, %v3385_v27 }
  0x2b   :  { %2906 = vmatmul.mubr.msk.bf16.gmra.mrb[16].mxu1 %vm148_vm1, %v3390_v28  ;;  %2801 = vmatprep.mubr.msk.bf16.mxu0 %vm148_vm1, %v3401_v31 }
  0x2c   :  { %2909 = vmatprep.mubr.msk.bf16.mxu1 %vm148_vm1, %v3406_v32 }
  0x32   :  { %2802 = vmatmul.mubr.msk.bf16.gmra.mrb[20].mxu0 %vm148_vm1, %v3155_v36 }
  0x33   :  { %2910 = vmatmul.mubr.msk.bf16.gmra.mrb[20].mxu1 %vm148_vm1, %v3156_v37  ;;  %2805 = vmatprep.mubr.msk.bf16.mxu0 %vm148_vm1, %v3157_v38 }
  0x34   :  { %2913 = vmatprep.mubr.msk.bf16.mxu1 %vm148_vm1, %v3158_v39 }
  0x3a   :  { %2806 = vmatmul.mubr.msk.bf16.gmra.mrb[24].mxu0 %vm148_vm1, %v3159_v40 }
  0x3b   :  { %2914 = vmatmul.mubr.msk.bf16.gmra.mrb[24].mxu1 %vm148_vm1, %v3160_v41  ;;  %2809 = vmatprep.mubr.msk.bf16.mxu0 %vm148_vm1, %v3161_v42 }
  0x3c   :  { %2917 = vmatprep.mubr.msk.bf16.mxu1 %vm148_vm1, %v3162_v43 }
  0x42   :  { %2810 = vmatmul.mubr.msk.bf16.gmra.mrb[28].mxu0 %vm148_vm1, %v3163_v44 }
  0x43   :  { %2918 = vmatmul.mubr.msk.bf16.gmra.mrb[28].mxu1 %vm148_vm1, %v3164_v45  ;;  %2817 = vmatprep.mubr.msk.bf16.mxu0 %vm148_vm1, %v3167_v46 }
  0x44   :  { %2925 = vmatprep.mubr.msk.bf16.mxu1 %vm148_vm1, %v3168_v47 }
  0x4a   :  { %2818 = vmatmul.mubr.msk.bf16.vlgmr.msra.gmra.mrb[0].mxu0 %vm148_vm1, %v3249_v5  ;;  %v3190_v5 = vld [vmem:[%s4777_s0 + $0xe0] sm:$0xff]  }
  0x4b   :  { %2926 = vmatmul.mubr.msk.bf16.vlgmr.msra.gmra.mrb[0].mxu1 %vm148_vm1, %v3256_v7  ;;  %2850 = vmatpush3.bf16.msra.mxu0 %v3169_v34  ;;  %v3192_v7 = vld [vmem:[%s4777_s0 + $0xe8] sm:$0xff]  }
  0x4c   :  { %2821 = vmatprep.mubr.msk.bf16.mxu0 %vm148_vm1, %v3263_v8  ;;  %2929 = vmatprep.mubr.msk.bf16.mxu1 %vm148_vm1, %v3273_v10  ;;  %v3193_v8 = vld [vmem:[%s4777_s0 + $0x60] sm:$0xff]   ;;  %v3195_v10 = vld [vmem:[%s4777_s0 + $0x68] sm:$0xff]  }
  0x4d   :  { %3123 = vmatprep.subr.msk.bf16.mxu0 %vm197_vm0, %v3170_v48  ;;  %2958 = vmatpush3.bf16.msra.mxu1 %v3171_v35 }
  0x4e   :  { %3126 = vmatprep.subr.msk.bf16.mxu1 %vm197_vm0, %v3172_v49 }
  0x4f   :  { %2852 = vmatpush3.bf16.msra.mxu0 %v717_v50 }
  0x51   :  { %2960 = vmatpush3.bf16.msra.mxu1 %v1640_v51 }
  0x52   :  { %2822 = vmatmul.mubr.msk.bf16.gmra.mrb[4].mxu0 %vm148_vm1, %v3278_v11  ;;  %v3196_v11 = vld [vmem:[%s4777_s0 + $0xf8] sm:$0xff]  }
  0x53   :  { %2930 = vmatmul.mubr.msk.bf16.gmra.mrb[4].mxu1 %vm148_vm1, %v3285_v12  ;;  %2825 = vmatprep.mubr.msk.bf16.mxu0 %vm148_vm1, %v3296_v13  ;;  %v3197_v12 = vld [vmem:[%s4777_s0 + $0x70] sm:$0xff]   ;;  %v3198_v13 = vld [vmem:[%s4777_s0 + $0x100] sm:$0xff]  }
  0x54   :  { %2933 = vmatprep.mubr.msk.bf16.mxu1 %vm148_vm1, %v3301_v14  ;;  %v3199_v14 = vld [vmem:[%s4777_s0 + $0x78] sm:$0xff]  }
  0x5a   :  { %2826 = vmatmul.mubr.msk.bf16.gmra.mrb[8].mxu0 %vm148_vm1, %v3306_v15  ;;  %v3200_v15 = vld [vmem:[%s4777_s0 + $0x108] sm:$0xff]  }
  0x5b   :  { %2934 = vmatmul.mubr.msk.bf16.gmra.mrb[8].mxu1 %vm148_vm1, %v3311_v16  ;;  %2829 = vmatprep.mubr.msk.bf16.mxu0 %vm148_vm1, %v3324_v17  ;;  %v3201_v16 = vld [vmem:[%s4777_s0 + $0x80] sm:$0xff]   ;;  %v3202_v17 = vld [vmem:[%s4777_s0 + $0x110] sm:$0xff]  }
  0x5c   :  { %2937 = vmatprep.mubr.msk.bf16.mxu1 %vm148_vm1, %v3329_v18  ;;  %v3203_v18 = vld [vmem:[%s4777_s0 + $0x88] sm:$0xff]  }
  0x62   :  { %2830 = vmatmul.mubr.msk.bf16.gmra.mrb[12].mxu0 %vm148_vm1, %v3334_v19  ;;  %v3204_v19 = vld [vmem:[%s4777_s0 + $0x118] sm:$0xff]  }
  0x63   :  { %2938 = vmatmul.mubr.msk.bf16.gmra.mrb[12].mxu1 %vm148_vm1, %v3342_v21  ;;  %2833 = vmatprep.mubr.msk.bf16.mxu0 %vm148_vm1, %v3357_v23 }
  0x64   :  { %2941 = vmatprep.mubr.msk.bf16.mxu1 %vm148_vm1, %v3362_v24 }
  0x6a   :  { %2834 = vmatmul.mubr.msk.bf16.gmra.mrb[16].mxu0 %vm148_vm1, %v3367_v25 }
  0x6b   :  { %2942 = vmatmul.mubr.msk.bf16.gmra.mrb[16].mxu1 %vm148_vm1, %v3372_v26  ;;  %2837 = vmatprep.mubr.msk.bf16.mxu0 %vm148_vm1, %v3385_v27 }
  0x6c   :  { %2945 = vmatprep.mubr.msk.bf16.mxu1 %vm148_vm1, %v3390_v28 }
  0x72   :  { %2838 = vmatmul.mubr.msk.bf16.gmra.mrb[20].mxu0 %vm148_vm1, %v3401_v31 }
  0x73   :  { %2946 = vmatmul.mubr.msk.bf16.gmra.mrb[20].mxu1 %vm148_vm1, %v3406_v32  ;;  %2841 = vmatprep.mubr.msk.bf16.mxu0 %vm148_vm1, %v3155_v36 }
  0x74   :  { %2949 = vmatprep.mubr.msk.bf16.mxu1 %vm148_vm1, %v3156_v37 }
  0x7a   :  { %2842 = vmatmul.mubr.msk.bf16.gmra.mrb[24].mxu0 %vm148_vm1, %v3157_v38 }
  0x7b   :  { %2950 = vmatmul.mubr.msk.bf16.gmra.mrb[24].mxu1 %vm148_vm1, %v3158_v39  ;;  %2845 = vmatprep.mubr.msk.bf16.mxu0 %vm148_vm1, %v3159_v40 }
  0x7c   :  { %2953 = vmatprep.mubr.msk.bf16.mxu1 %vm148_vm1, %v3160_v41 }
  0x82   :  { %2846 = vmatmul.mubr.msk.bf16.gmra.mrb[28].mxu0 %vm148_vm1, %v3161_v42 }
  0x83   :  { %2954 = vmatmul.mubr.msk.bf16.gmra.mrb[28].mxu1 %vm148_vm1, %v3162_v43  ;;  %2853 = vmatprep.mubr.msk.bf16.mxu0 %vm148_vm1, %v3173_v52 }
  0x84   :  { %2961 = vmatprep.mubr.msk.bf16.mxu1 %vm148_vm1, %v3174_v53 }
  0x8a   :  { %2854 = vmatmul.mubr.msk.bf16.vlgmr.msra.gmra.mrb[0].mxu0 %vm148_vm1, %v3175_v54 }
  0x8b   :  { %2962 = vmatmul.mubr.msk.bf16.vlgmr.msra.gmra.mrb[0].mxu1 %vm148_vm1, %v3176_v55  ;;  %2857 = vmatprep.mubr.msk.bf16.mxu0 %vm148_vm1, %v3177_v56 }
  0x8c   :  { %2965 = vmatprep.mubr.msk.bf16.mxu1 %vm148_vm1, %v3178_v57 }
  0x92   :  { %2858 = vmatmul.mubr.msk.bf16.gmra.mrb[4].mxu0 %vm148_vm1, %v3179_v58 }
  0x93   :  { %2966 = vmatmul.mubr.msk.bf16.gmra.mrb[4].mxu1 %vm148_vm1, %v3180_v59  ;;  %2861 = vmatprep.mubr.msk.bf16.mxu0 %vm148_vm1, %v3181_v60 }
  0x94   :  { %2969 = vmatprep.mubr.msk.bf16.mxu1 %vm148_vm1, %v3182_v61 }
  0x9a   :  { %2862 = vmatmul.mubr.msk.bf16.gmra.mrb[8].mxu0 %vm148_vm1, %v3183_v62 }
  0x9b   :  { %2970 = vmatmul.mubr.msk.bf16.gmra.mrb[8].mxu1 %vm148_vm1, %v3184_v63  ;;  %2865 = vmatprep.mubr.msk.bf16.mxu0 %vm148_vm1, %v3185_v0 }
  0x9c   :  { %2973 = vmatprep.mubr.msk.bf16.mxu1 %vm148_vm1, %v3186_v1 }
  0xa2   :  { %2866 = vmatmul.mubr.msk.bf16.gmra.mrb[12].mxu0 %vm148_vm1, %v3187_v2 }
  0xa3   :  { %2974 = vmatmul.mubr.msk.bf16.gmra.mrb[12].mxu1 %vm148_vm1, %v3188_v3  ;;  %2869 = vmatprep.mubr.msk.bf16.mxu0 %vm148_vm1, %v3189_v4 }
  0xa4   :  { %2977 = vmatprep.mubr.msk.bf16.mxu1 %vm148_vm1, %v3190_v5 }
  0xaa   :  { %2870 = vmatmul.mubr.msk.bf16.gmra.mrb[16].mxu0 %vm148_vm1, %v3191_v6 }
  0xab   :  { %2978 = vmatmul.mubr.msk.bf16.gmra.mrb[16].mxu1 %vm148_vm1, %v3192_v7  ;;  %2873 = vmatprep.mubr.msk.bf16.mxu0 %vm148_vm1, %v3193_v8 }
  0xac   :  { %2981 = vmatprep.mubr.msk.bf16.mxu1 %vm148_vm1, %v3194_v9 }
  0xb2   :  { %2874 = vmatmul.mubr.msk.bf16.gmra.mrb[20].mxu0 %vm148_vm1, %v3195_v10 }
  0xb3   :  { %2982 = vmatmul.mubr.msk.bf16.gmra.mrb[20].mxu1 %vm148_vm1, %v3196_v11  ;;  %2877 = vmatprep.mubr.msk.bf16.mxu0 %vm148_vm1, %v3197_v12 }
  0xb4   :  { %2985 = vmatprep.mubr.msk.bf16.mxu1 %vm148_vm1, %v3198_v13 }
  0xba   :  { %2878 = vmatmul.mubr.msk.bf16.gmra.mrb[24].mxu0 %vm148_vm1, %v3199_v14 }
  0xbb   :  { %2986 = vmatmul.mubr.msk.bf16.gmra.mrb[24].mxu1 %vm148_vm1, %v3200_v15  ;;  %2881 = vmatprep.mubr.msk.bf16.mxu0 %vm148_vm1, %v3201_v16 }
  0xbc   :  { %2989 = vmatprep.mubr.msk.bf16.mxu1 %vm148_vm1, %v3202_v17 }
  0xc2   :  { %2882 = vmatmul.mubr.msk.bf16.gmra.mrb[28].mxu0 %vm148_vm1, %v3203_v18 }
  0xc3   :  { %2990 = vmatmul.mubr.msk.bf16.gmra.mrb[28].mxu1 %vm148_vm1, %v3204_v19 }
 0x15d   :  { %v3662_v20 = vpop.f32.mrb[0].mxu0 }
 0x15e   :  { %v3664_v21 = vpop.f32.mrb[0].mxu1  ;;  %v3666_v22 = vpop.f32.mrb[1].mxu0  ;;  %v2003_v31 = vmul.f32 %v3662_v20, %v3662_v20 }
 0x15f   :  { %v3668_v23 = vpop.f32.mrb[1].mxu1  ;;  %v3670_v24 = vpop.f32.mrb[2].mxu0  ;;  %v2001_v27 = vmul.f32 %v3666_v22, %v3666_v22 }
 0x160   :  { %v3672_v25 = vpop.f32.mrb[2].mxu1  ;;  %v3674_v26 = vpop.f32.mrb[3].mxu0  ;;  %v2004_v34 = vmul.f32 %v3670_v24, %v3670_v24 }
 0x161   :  { %v1931_v28 = vadd.f32 %v3674_v26, %v3666_v22  ;;  %v2002_v29 = vmul.f32 %v3674_v26, %v3674_v26  ;;  %v3682_v30 = vpop.f32.mrb[3].mxu1 }
 0x163   :  { %v1932_v32 = vadd.f32 %v3662_v20, %v1931_v28  ;;  %v2065_v33 = vadd.f32 %v2002_v29, %v2001_v27 }
 0x165   :  { %v2066_v35 = vadd.f32 %v2065_v33, %v2003_v31  ;;  %v3689_v36 = vpop.f32.mrb[4].mxu0  ;;  %v1933_v37 = vadd.f32 %v3670_v24, %v1932_v32 }
 0x166   :  { %v3692_v38 = vpop.f32.mrb[4].mxu1  ;;  %v3694_v39 = vpop.f32.mrb[5].mxu0  ;;  %v2007_v51 = vmul.f32 %v3689_v36, %v3689_v36 }
 0x167   :  { %v1934_v40 = vadd.f32 %v1933_v37, %v3694_v39  ;;  %v2005_v41 = vmul.f32 %v3694_v39, %v3694_v39  ;;  %v2067_v42 = vadd.f32 %v2066_v35, %v2004_v34  ;;  %v3699_v43 = vpop.f32.mrb[5].mxu1  ;;  %v3701_v44 = vpop.f32.mrb[6].mxu0 }
 0x168   :  { %v3703_v45 = vpop.f32.mrb[6].mxu1  ;;  %v3705_v46 = vpop.f32.mrb[7].mxu0  ;;  %v2008_v54 = vmul.f32 %v3701_v44, %v3701_v44 }
 0x169   :  { %v2068_v47 = vadd.f32 %v2067_v42, %v2005_v41  ;;  %v1935_v48 = vadd.f32 %v1934_v40, %v3705_v46  ;;  %v2006_v49 = vmul.f32 %v3705_v46, %v3705_v46  ;;  %v3710_v50 = vpop.f32.mrb[7].mxu1 }
 0x16b   :  { %v1936_v52 = vadd.f32 %v3689_v36, %v1935_v48  ;;  %v2069_v53 = vadd.f32 %v2068_v47, %v2006_v49 }
 0x16d   :  { %v2070_v55 = vadd.f32 %v2069_v53, %v2007_v51  ;;  %v3717_v56 = vpop.f32.mrb[8].mxu0  ;;  %v1937_v57 = vadd.f32 %v3701_v44, %v1936_v52 }
 0x16e   :  { %v3720_v58 = vpop.f32.mrb[8].mxu1  ;;  %v3722_v59 = vpop.f32.mrb[9].mxu0  ;;  %v2011_v7 = vmul.f32 %v3717_v56, %v3717_v56 }
 0x16f   :  { %v1938_v60 = vadd.f32 %v1937_v57, %v3722_v59  ;;  %v2009_v61 = vmul.f32 %v3722_v59, %v3722_v59  ;;  %v2071_v62 = vadd.f32 %v2070_v55, %v2008_v54  ;;  %v3727_v63 = vpop.f32.mrb[9].mxu1  ;;  %v3729_v0 = vpop.f32.mrb[10].mxu0 }
 0x170   :  { %v3731_v1 = vpop.f32.mrb[10].mxu1  ;;  %v3733_v2 = vpop.f32.mrb[11].mxu0  ;;  %v2012_v10 = vmul.f32 %v3729_v0, %v3729_v0 }
 0x171   :  { %v2072_v3 = vadd.f32 %v2071_v62, %v2009_v61  ;;  %v1939_v4 = vadd.f32 %v1938_v60, %v3733_v2  ;;  %v2010_v5 = vmul.f32 %v3733_v2, %v3733_v2  ;;  %v3738_v6 = vpop.f32.mrb[11].mxu1 }
 0x173   :  { %v1940_v8 = vadd.f32 %v3717_v56, %v1939_v4  ;;  %v2073_v9 = vadd.f32 %v2072_v3, %v2010_v5 }
 0x175   :  { %v2074_v11 = vadd.f32 %v2073_v9, %v2011_v7  ;;  %v3745_v12 = vpop.f32.mrb[12].mxu0  ;;  %v1941_v13 = vadd.f32 %v3729_v0, %v1940_v8 }
 0x176   :  { %v3748_v14 = vpop.f32.mrb[12].mxu1  ;;  %v3750_v15 = vpop.f32.mrb[13].mxu0  ;;  %v2015_v35 = vmul.f32 %v3745_v12, %v3745_v12 }
 0x177   :  { %v1942_v16 = vadd.f32 %v1941_v13, %v3750_v15  ;;  %v2013_v17 = vmul.f32 %v3750_v15, %v3750_v15  ;;  %v2075_v18 = vadd.f32 %v2074_v11, %v2012_v10  ;;  %v3755_v19 = vpop.f32.mrb[13].mxu1  ;;  %v3757_v27 = vpop.f32.mrb[14].mxu0 }
 0x178   :  { %4806 = vst [vmem:[#allocation2_spill] sm:$0xff] %v3757_v27  ;;  %v3759_v28 = vpop.f32.mrb[14].mxu1  ;;  %v3761_v29 = vpop.f32.mrb[15].mxu0  ;;  %v2016_v41 = vmul.f32 %v3757_v27, %v3757_v27 }
 0x179   :  { %v2076_v31 = vadd.f32 %v2075_v18, %v2013_v17  ;;  %v1943_v32 = vadd.f32 %v1942_v16, %v3761_v29  ;;  %v2014_v33 = vmul.f32 %v3761_v29, %v3761_v29  ;;  %v3766_v34 = vpop.f32.mrb[15].mxu1 }
 0x17b   :  { %v1944_v37 = vadd.f32 %v3745_v12, %v1943_v32  ;;  %v2077_v40 = vadd.f32 %v2076_v31, %v2014_v33 }
 0x17d   :  { %v2078_v42 = vadd.f32 %v2077_v40, %v2015_v35  ;;  %v3773_v47 = vpop.f32.mrb[16].mxu0  ;;  %v1945_v48 = vadd.f32 %v3757_v27, %v1944_v37 }
 0x17e   :  { %4807 = vst [vmem:[#allocation3_spill] sm:$0xff] %v3773_v47  ;;  %v3776_v49 = vpop.f32.mrb[16].mxu1  ;;  %v3778_v51 = vpop.f32.mrb[17].mxu0  ;;  %v2019_v7 = vmul.f32 %v3773_v47, %v3773_v47 }
 0x17f   :  { %4808 = vst [vmem:[#allocation4_spill] sm:$0xff] %v3778_v51  ;;  %v1946_v52 = vadd.f32 %v1945_v48, %v3778_v51  ;;  %v2017_v53 = vmul.f32 %v3778_v51, %v3778_v51  ;;  %v2079_v54 = vadd.f32 %v2078_v42, %v2016_v41  ;;  %v3783_v55 = vpop.f32.mrb[17].mxu1  ;;  %v3785_v57 = vpop.f32.mrb[18].mxu0 }
 0x180   :  { %4809 = vst [vmem:[#allocation5_spill] sm:$0xff] %v3785_v57  ;;  %v3787_v60 = vpop.f32.mrb[18].mxu1  ;;  %v3789_v61 = vpop.f32.mrb[19].mxu0  ;;  %v2020_v10 = vmul.f32 %v3785_v57, %v3785_v57 }
 0x181   :  { %4810 = vst [vmem:[#allocation6_spill] sm:$0xff] %v3789_v61  ;;  %v2080_v62 = vadd.f32 %v2079_v54, %v2017_v53  ;;  %v1947_v3 = vadd.f32 %v1946_v52, %v3789_v61  ;;  %v2018_v4 = vmul.f32 %v3789_v61, %v3789_v61  ;;  %v3794_v5 = vpop.f32.mrb[19].mxu1 }
 0x183   :  { %v1948_v8 = vadd.f32 %v3773_v47, %v1947_v3  ;;  %v2081_v9 = vadd.f32 %v2080_v62, %v2018_v4 }
 0x185   :  { %v2082_v11 = vadd.f32 %v2081_v9, %v2019_v7  ;;  %v3801_v13 = vpop.f32.mrb[20].mxu0  ;;  %v1949_v16 = vadd.f32 %v3785_v57, %v1948_v8 }
 0x186   :  { %4811 = vst [vmem:[#allocation7_spill] sm:$0xff] %v3801_v13  ;;  %v3804_v17 = vpop.f32.mrb[20].mxu1  ;;  %v3806_v18 = vpop.f32.mrb[21].mxu0  ;;  %v2023_v54 = vmul.f32 %v3801_v13, %v3801_v13 }
 0x187   :  { %4812 = vst [vmem:[#allocation8_spill] sm:$0xff] %v3806_v18  ;;  %v1950_v31 = vadd.f32 %v1949_v16, %v3806_v18  ;;  %v2021_v32 = vmul.f32 %v3806_v18, %v3806_v18  ;;  %v2083_v33 = vadd.f32 %v2082_v11, %v2020_v10  ;;  %v3811_v35 = vpop.f32.mrb[21].mxu1  ;;  %v3813_v37 = vpop.f32.mrb[22].mxu0 }
 0x188   :  { %4813 = vst [vmem:[#allocation9_spill] sm:$0xff] %v3813_v37  ;;  %v3815_v40 = vpop.f32.mrb[22].mxu1  ;;  %v3817_v41 = vpop.f32.mrb[23].mxu0  ;;  %v2024_v4 = vmul.f32 %v3813_v37, %v3813_v37 }
 0x189   :  { %4814 = vst [vmem:[#allocation10_spill] sm:$0xff] %v3815_v40  ;;  %4815 = vst [vmem:[#allocation11_spill] sm:$0xff] %v3817_v41  ;;  %v2084_v42 = vadd.f32 %v2083_v33, %v2021_v32  ;;  %v1951_v48 = vadd.f32 %v1950_v31, %v3817_v41  ;;  %v2022_v52 = vmul.f32 %v3817_v41, %v3817_v41  ;;  %v3822_v53 = vpop.f32.mrb[23].mxu1 }
 0x18b   :  { %v1952_v62 = vadd.f32 %v3801_v13, %v1951_v48  ;;  %v2085_v3 = vadd.f32 %v2084_v42, %v2022_v52 }
 0x18d   :  { %v2086_v7 = vadd.f32 %v2085_v3, %v2023_v54  ;;  %v3829_v8 = vpop.f32.mrb[24].mxu0  ;;  %v1953_v9 = vadd.f32 %v3813_v37, %v1952_v62 }
 0x18e   :  { %4816 = vst [vmem:[#allocation12_spill] sm:$0xff] %v3829_v8  ;;  %v3832_v10 = vpop.f32.mrb[24].mxu1  ;;  %v3834_v11 = vpop.f32.mrb[25].mxu0 }
 0x18f   :  { %4817 = vst [vmem:[#allocation13_spill] sm:$0xff] %v3832_v10  ;;  %4818 = vst [vmem:[#allocation14_spill] sm:$0xff] %v3834_v11  ;;  %v1954_v16 = vadd.f32 %v1953_v9, %v3834_v11  ;;  %v2025_v31 = vmul.f32 %v3834_v11, %v3834_v11  ;;  %v2087_v32 = vadd.f32 %v2086_v7, %v2024_v4  ;;  %v3839_v33 = vpop.f32.mrb[25].mxu1  ;;  %v3841_v42 = vpop.f32.mrb[26].mxu0 }
 0x190   :  { %4819 = vst [vmem:[#allocation15_spill] sm:$0xff] %v3839_v33  ;;  %4820 = vst [vmem:[#allocation16_spill] sm:$0xff] %v3841_v42  ;;  %v3843_v48 = vpop.f32.mrb[26].mxu1  ;;  %v3845_v52 = vpop.f32.mrb[27].mxu0  ;;  %v2027_v9 = vmul.f32 %v3829_v8, %v3829_v8  ;;  %v2028_v11 = vmul.f32 %v3841_v42, %v3841_v42 }
 0x191   :  { %4821 = vst [vmem:[#allocation17_spill] sm:$0xff] %v3843_v48  ;;  %4822 = vst [vmem:[#allocation18_spill] sm:$0xff] %v3845_v52  ;;  %v2088_v54 = vadd.f32 %v2087_v32, %v2025_v31  ;;  %v1955_v62 = vadd.f32 %v1954_v16, %v3845_v52  ;;  %v2026_v3 = vmul.f32 %v3845_v52, %v3845_v52  ;;  %v3850_v37 = vpop.f32.mrb[27].mxu1 }
 0x192   :  { %4823 = vst [vmem:[#allocation19_spill] sm:$0xff] %v3850_v37 }
 0x193   :  { %v1956_v4 = vadd.f32 %v3829_v8, %v1955_v62  ;;  %v2089_v7 = vadd.f32 %v2088_v54, %v2026_v3 }
 0x195   :  { %v2090_v13 = vadd.f32 %v2089_v7, %v2027_v9  ;;  %v3857_v41 = vpop.f32.mrb[28].mxu0  ;;  %v1957_v31 = vadd.f32 %v3841_v42, %v1956_v4 }
 0x196   :  { %v3860_v16 = vpop.f32.mrb[28].mxu1  ;;  %v3862_v32 = vpop.f32.mrb[29].mxu0 }
 0x197   :  { %4824 = vst [vmem:[#allocation20_spill] sm:$0xff] %v3860_v16  ;;  %4825 = vst [vmem:[#allocation21_spill] sm:$0xff] %v3862_v32  ;;  %v1958_v52 = vadd.f32 %v1957_v31, %v3862_v32  ;;  %v2029_v18 = vmul.f32 %v3862_v32, %v3862_v32  ;;  %v2091_v57 = vadd.f32 %v2090_v13, %v2028_v11  ;;  %v3867_v62 = vpop.f32.mrb[29].mxu1  ;;  %v3869_v54 = vpop.f32.mrb[30].mxu0 }
 0x198   :  { %4826 = vst [vmem:[#allocation22_spill] sm:$0xff] %v3867_v62  ;;  %v3871_v3 = vpop.f32.mrb[30].mxu1  ;;  %v3873_v9 = vpop.f32.mrb[31].mxu0  ;;  %v2031_v31 = vmul.f32 %v3857_v41, %v3857_v41  ;;  %v2032_v32 = vmul.f32 %v3869_v54, %v3869_v54 }
 0x199   :  { %4827 = vst [vmem:[#allocation23_spill] sm:$0xff] %v3871_v3  ;;  %4828 = vst [vmem:[#allocation24_spill] sm:$0xff] %v3873_v9  ;;  %v2092_v7 = vadd.f32 %v2091_v57, %v2029_v18  ;;  %v1959_v4 = vadd.f32 %v1958_v52, %v3873_v9  ;;  %v2030_v42 = vmul.f32 %v3873_v9, %v3873_v9  ;;  %v3878_v8 = vpop.f32.mrb[31].mxu1 }
 0x19a   :  { %4829 = vst [vmem:[#allocation25_spill] sm:$0xff] %v3878_v8  ;;  %v2033_v57 = vmul.f32 %v3668_v23, %v3668_v23  ;;  %v2034_v9 = vmul.f32 %v3682_v30, %v3682_v30 }
 0x19b   :  { %v1960_v13 = vadd.f32 %v3857_v41, %v1959_v4  ;;  %v2093_v11 = vadd.f32 %v2092_v7, %v2030_v42  ;;  %v2035_v42 = vmul.f32 %v3664_v21, %v3664_v21 }
 0x19d   :  { %v1961_v47 = vadd.f32 %v3869_v54, %v1960_v13  ;;  %v2094_v61 = vadd.f32 %v2093_v11, %v2031_v31  ;;  %v2036_v31 = vmul.f32 %v3672_v25, %v3672_v25 }
 0x19f   :  { %v1962_v18 = vadd.f32 %v1961_v47, %v3668_v23  ;;  %v2095_v52 = vadd.f32 %v2094_v61, %v2032_v32  ;;  %v2037_v47 = vmul.f32 %v3699_v43, %v3699_v43 }
 0x1a1   :  { %v1963_v51 = vadd.f32 %v1962_v18, %v3682_v30  ;;  %v2096_v27 = vadd.f32 %v2095_v52, %v2033_v57  ;;  %v2038_v57 = vmul.f32 %v3710_v50, %v3710_v50 }
 0x1a3   :  { %v1964_v7 = vadd.f32 %v3664_v21, %v1963_v51  ;;  %v2097_v4 = vadd.f32 %v2096_v27, %v2034_v9  ;;  %v2039_v27 = vmul.f32 %v3692_v38, %v3692_v38 }
 0x1a5   :  { %v1965_v13 = vadd.f32 %v3672_v25, %v1964_v7  ;;  %v2098_v11 = vadd.f32 %v2097_v4, %v2035_v42  ;;  %v2040_v42 = vmul.f32 %v3703_v45, %v3703_v45 }
 0x1a7   :  { %v1966_v61 = vadd.f32 %v1965_v13, %v3699_v43  ;;  %v2099_v32 = vadd.f32 %v2098_v11, %v2036_v31  ;;  %v2041_v31 = vmul.f32 %v3727_v63, %v3727_v63 }
 0x1a9   :  { %v1967_v18 = vadd.f32 %v1966_v61, %v3710_v50  ;;  %v2100_v52 = vadd.f32 %v2099_v32, %v2037_v47  ;;  %v2042_v47 = vmul.f32 %v3738_v6, %v3738_v6 }
 0x1ab   :  { %v1968_v51 = vadd.f32 %v3692_v38, %v1967_v18  ;;  %v2101_v9 = vadd.f32 %v2100_v52, %v2038_v57  ;;  %v2043_v57 = vmul.f32 %v3720_v58, %v3720_v58 }
 0x1ad   :  { %v2102_v7 = vadd.f32 %v2101_v9, %v2039_v27  ;;  %v1969_v4 = vadd.f32 %v3703_v45, %v1968_v51  ;;  %v2044_v27 = vmul.f32 %v3731_v1, %v3731_v1 }
 0x1af   :  { %v1970_v13 = vadd.f32 %v1969_v4, %v3727_v63  ;;  %v2103_v11 = vadd.f32 %v2102_v7, %v2040_v42  ;;  %v2045_v42 = vmul.f32 %v3755_v19, %v3755_v19 }
 0x1b1   :  { %v1971_v61 = vadd.f32 %v1970_v13, %v3738_v6  ;;  %v2104_v32 = vadd.f32 %v2103_v11, %v2041_v31  ;;  %v2046_v31 = vmul.f32 %v3766_v34, %v3766_v34 }
 0x1b3   :  { %v1972_v18 = vadd.f32 %v3720_v58, %v1971_v61  ;;  %v2105_v52 = vadd.f32 %v2104_v32, %v2042_v47  ;;  %v2047_v47 = vmul.f32 %v3748_v14, %v3748_v14 }
 0x1b5   :  { %v1973_v51 = vadd.f32 %v3731_v1, %v1972_v18  ;;  %v2106_v9 = vadd.f32 %v2105_v52, %v2043_v57  ;;  %v2048_v57 = vmul.f32 %v3759_v28, %v3759_v28 }
 0x1b7   :  { %v1974_v7 = vadd.f32 %v1973_v51, %v3755_v19  ;;  %v2107_v4 = vadd.f32 %v2106_v9, %v2044_v27  ;;  %v2049_v27 = vmul.f32 %v3783_v55, %v3783_v55 }
 0x1b9   :  { %v1975_v13 = vadd.f32 %v1974_v7, %v3766_v34  ;;  %v2108_v11 = vadd.f32 %v2107_v4, %v2045_v42  ;;  %v2050_v42 = vmul.f32 %v3794_v5, %v3794_v5 }
 0x1bb   :  { %v1976_v61 = vadd.f32 %v3748_v14, %v1975_v13  ;;  %v2109_v32 = vadd.f32 %v2108_v11, %v2046_v31  ;;  %v2051_v31 = vmul.f32 %v3776_v49, %v3776_v49 }
 0x1bd   :  { %v1977_v18 = vadd.f32 %v3759_v28, %v1976_v61  ;;  %v2110_v52 = vadd.f32 %v2109_v32, %v2047_v47  ;;  %v2052_v61 = vmul.f32 %v3787_v60, %v3787_v60 }
 0x1bf   :  { %v1978_v51 = vadd.f32 %v1977_v18, %v3783_v55  ;;  %v2111_v9 = vadd.f32 %v2110_v52, %v2048_v57  ;;  %v2053_v18 = vmul.f32 %v3811_v35, %v3811_v35 }
 0x1c1   :  { %v1979_v7 = vadd.f32 %v1978_v51, %v3794_v5  ;;  %v2112_v4 = vadd.f32 %v2111_v9, %v2049_v27  ;;  %v2054_v51 = vmul.f32 %v3822_v53, %v3822_v53 }
 0x1c3   :  { %v1980_v13 = vadd.f32 %v3776_v49, %v1979_v7  ;;  %v2113_v11 = vadd.f32 %v2112_v4, %v2050_v42  ;;  %v2055_v7 = vmul.f32 %v3804_v17, %v3804_v17 }
 0x1c5   :  { %v1981_v47 = vadd.f32 %v3787_v60, %v1980_v13  ;;  %v2114_v32 = vadd.f32 %v2113_v11, %v2051_v31  ;;  %v2056_v13 = vmul.f32 %v3815_v40, %v3815_v40 }
 0x1c7   :  { %v1982_v57 = vadd.f32 %v1981_v47, %v3811_v35  ;;  %v2115_v52 = vadd.f32 %v2114_v32, %v2052_v61  ;;  %v2057_v61 = vmul.f32 %v3839_v33, %v3839_v33 }
 0x1c9   :  { %v1983_v27 = vadd.f32 %v1982_v57, %v3822_v53  ;;  %v2116_v9 = vadd.f32 %v2115_v52, %v2053_v18  ;;  %v2058_v18 = vmul.f32 %v3850_v37, %v3850_v37 }
 0x1cb   :  { %v1984_v42 = vadd.f32 %v3804_v17, %v1983_v27  ;;  %v2117_v4 = vadd.f32 %v2116_v9, %v2054_v51  ;;  %v2059_v51 = vmul.f32 %v3832_v10, %v3832_v10 }
 0x1cd   :  { %v1985_v31 = vadd.f32 %v3815_v40, %v1984_v42  ;;  %v2118_v11 = vadd.f32 %v2117_v4, %v2055_v7  ;;  %v2060_v7 = vmul.f32 %v3843_v48, %v3843_v48 }
 0x1cf   :  { %v1986_v47 = vadd.f32 %v1985_v31, %v3839_v33  ;;  %v2119_v32 = vadd.f32 %v2118_v11, %v2056_v13  ;;  %v2061_v13 = vmul.f32 %v3867_v62, %v3867_v62 }
 0x1d1   :  { %v1987_v57 = vadd.f32 %v1986_v47, %v3850_v37  ;;  %v2120_v52 = vadd.f32 %v2119_v32, %v2057_v61  ;;  %v2062_v61 = vmul.f32 %v3878_v8, %v3878_v8 }
 0x1d3   :  { %v1988_v27 = vadd.f32 %v3832_v10, %v1987_v57  ;;  %v2121_v9 = vadd.f32 %v2120_v52, %v2058_v18  ;;  %v2063_v18 = vmul.f32 %v3860_v16, %v3860_v16 }
 0x1d5   :  { %v1989_v42 = vadd.f32 %v3843_v48, %v1988_v27  ;;  %v2122_v4 = vadd.f32 %v2121_v9, %v2059_v51  ;;  %v2064_v51 = vmul.f32 %v3871_v3, %v3871_v3 }
 0x1d7   :  { %v1990_v31 = vadd.f32 %v1989_v42, %v3867_v62  ;;  %v2123_v11 = vadd.f32 %v2122_v4, %v2060_v7 }
 0x1d9   :  { %v1991_v47 = vadd.f32 %v1990_v31, %v3878_v8  ;;  %v2124_v32 = vadd.f32 %v2123_v11, %v2061_v13 }
 0x1db   :  { %v1992_v57 = vadd.f32 %v3860_v16, %v1991_v47  ;;  %v2125_v52 = vadd.f32 %v2124_v32, %v2062_v61 }
 0x1dd   :  { %v1993_v27 = vadd.f32 %v3871_v3, %v1992_v57  ;;  %v2126_v9 = vadd.f32 %v2125_v52, %v2063_v18  ;;  %v2146_v18 = vlaneseq }
 0x1df   :  { %v1994_v42 = vrot.slane %v1993_v27, 4  ;;  %v2127_v7 = vadd.f32 %v2126_v9, %v2064_v51  ;;  %v3982_v52 = vshrl.u32 %v2146_v18, 7  ;;  %v4837_v18 = vld [vmem:[#allocation7_spill] sm:$0xff] }
 0x1e1   :  { %v1995_v4 = vadd.f32 %v1994_v42, %v1993_v27  ;;  %v2128_v31 = vrot.slane %v2127_v7, 4  ;;  %v4805_v27 = vsub.s32 0, %v3982_v52 }
 0x1e3   :  { %v1996_v62 = vrot.slane %v1995_v4, 2  ;;  %v2129_v48 = vadd.f32 %v2128_v31, %v2127_v7  ;;  %v4830_v7 = vld [vmem:[#allocation2_spill] sm:$0xff] }
 0x1e4   :  { %v4832_v31 = vld [vmem:[#allocation6_spill] sm:$0xff] }
 0x1e5   :  { %v1997_v8 = vadd.f32 %v1996_v62, %v1995_v4  ;;  %v2130_v13 = vrot.slane %v2129_v48, 2  ;;  %v2138_v62 = vld [vmem:[%s4778_s2] sm:$0x1]  ;;  %v4831_v4 = vld [vmem:[#allocation4_spill] sm:$0xff] }
 0x1e7   :  { %v1998_v11 = vrot.slane %v1997_v8, 1  ;;  %v2131_v47 = vadd.f32 %v2130_v13, %v2129_v48  ;;  %v4833_v13 = vld [vmem:[#allocation3_spill] sm:$0xff] }
 0x1e9   :  { %v1999_v10 = vadd.f32 %v1998_v11, %v1997_v8  ;;  %v2132_v37 = vrot.slane %v2131_v47, 1  ;;  %v4834_v11 = vld [vmem:[#allocation5_spill] sm:$0xff] }
 0x1eb   :  { %v2000_v16 = vmul.f32 0.001953125, %v1999_v10  ;;  %v2133_v61 = vadd.f32 %v2132_v37, %v2131_v47  ;;  %v3991_v37 = vld [vmem:[%s4779_s3] sm:$0x1]  ;;  %v4835_v47 = vld [vmem:[#allocation8_spill] sm:$0xff] }
 0x1ed   :  { %v2134_v32 = vmul.f32 0.001953125, %v2133_v61  ;;  %v2135_v57 = vmul.f32 %v2000_v16, %v2000_v16 }
 0x1ef   :  { %v2136_v33 = vsub.f32 %v2134_v32, %v2135_v57  ;;  %v4836_v32 = vld [vmem:[#allocation11_spill] sm:$0xff] }
 0x1f1   :  { %v2137_v40 = vmax.f32 %v2136_v33, 0.0  ;;  %v4843_v33 = vld [vmem:[#allocation21_spill] sm:$0xff] }
 0x1f3   :  { %v2139_v3 = vadd.f32 1e-05, %v2137_v40 }
 0x1f5   :  { %3205 = vrsqrt.f32 %v2139_v3 }
 0x1ff   :  { %v3206_v48 = vpop.eup %3205 }
 0x200   :  { %v2141_v8 = vmul.f32 %v3206_v48, %v2138_v62  ;;  %v4838_v48 = vld [vmem:[#allocation9_spill] sm:$0xff] }
 0x202   :  { %v3993_v10 = vmul.f32 %v2141_v8, %v2000_v16  ;;  %v3997_v40 = vrot.slane %v2141_v8, %v4805_v27  ;;  %v4844_v27 = vld [vmem:[#allocation24_spill] sm:$0xff] }
 0x204   :  { %v4003_v3 = vmul.f32 %v3997_v40, %v3666_v22  ;;  %v4007_v51 = vmul.f32 %v3997_v40, %v3674_v26  ;;  %v4011_v9 = vmul.f32 %v3662_v20, %v3997_v40  ;;  %v4015_v16 = vmul.f32 %v3670_v24, %v3997_v40 }
 0x205   :  { %v4019_v42 = vmul.f32 %v3997_v40, %v3694_v39  ;;  %v4023_v22 = vmul.f32 %v3997_v40, %v3705_v46  ;;  %v4027_v26 = vmul.f32 %v3689_v36, %v3997_v40  ;;  %v4031_v20 = vmul.f32 %v3701_v44, %v3997_v40 }
 0x206   :  { %v4035_v24 = vmul.f32 %v3997_v40, %v3722_v59  ;;  %v4039_v39 = vmul.f32 %v3997_v40, %v3733_v2  ;;  %v4043_v46 = vmul.f32 %v3717_v56, %v3997_v40  ;;  %v4047_v36 = vmul.f32 %v3729_v0, %v3997_v40 }
 0x207   :  { %v4051_v44 = vmul.f32 %v3997_v40, %v3750_v15  ;;  %v4055_v59 = vmul.f32 %v3997_v40, %v3761_v29  ;;  %v4059_v2 = vmul.f32 %v3745_v12, %v3997_v40  ;;  %v4063_v56 = vmul.f32 %v4830_v7, %v3997_v40  ;;  %v4839_v7 = vld [vmem:[#allocation14_spill] sm:$0xff] }
 0x208   :  { %v4067_v0 = vmul.f32 %v3997_v40, %v4831_v4  ;;  %v4071_v15 = vmul.f32 %v3997_v40, %v4832_v31  ;;  %v4075_v29 = vmul.f32 %v4833_v13, %v3997_v40  ;;  %v4079_v12 = vmul.f32 %v4834_v11, %v3997_v40  ;;  %v4840_v31 = vld [vmem:[#allocation18_spill] sm:$0xff]  ;;  %v4841_v11 = vld [vmem:[#allocation12_spill] sm:$0xff] }
 0x209   :  { %v4083_v61 = vmul.f32 %v3997_v40, %v4835_v47  ;;  %v4087_v57 = vmul.f32 %v3997_v40, %v4836_v32  ;;  %v4091_v62 = vmul.f32 %v4837_v18, %v3997_v40  ;;  %v4095_v8 = vmul.f32 %v4838_v48, %v3997_v40  ;;  %v4842_v32 = vld [vmem:[#allocation16_spill] sm:$0xff] }
 0x20a   :  { %v4099_v4 = vmul.f32 %v3997_v40, %v4839_v7  ;;  %v4103_v13 = vmul.f32 %v3997_v40, %v4840_v31  ;;  %v4107_v47 = vmul.f32 %v4841_v11, %v3997_v40  ;;  %v4111_v18 = vmul.f32 %v4842_v32, %v3997_v40 }
 0x20b   :  { %v4115_v48 = vmul.f32 %v3997_v40, %v4843_v33  ;;  %v4119_v7 = vmul.f32 %v3997_v40, %v4844_v27  ;;  %v4123_v31 = vmul.f32 %v3857_v41, %v3997_v40  ;;  %v4127_v11 = vmul.f32 %v3869_v54, %v3997_v40 }
 0x20c   :  { %v4131_v32 = vmul.f32 %v3997_v40, %v3668_v23  ;;  %v4135_v33 = vmul.f32 %v3997_v40, %v3682_v30  ;;  %v4139_v27 = vmul.f32 %v3664_v21, %v3997_v40  ;;  %v4143_v41 = vmul.f32 %v3672_v25, %v3997_v40 }
 0x20d   :  { %v4147_v54 = vmul.f32 %v3997_v40, %v3699_v43  ;;  %v4151_v23 = vmul.f32 %v3997_v40, %v3710_v50  ;;  %v4155_v30 = vmul.f32 %v3692_v38, %v3997_v40  ;;  %v4159_v21 = vmul.f32 %v3703_v45, %v3997_v40 }
 0x20e   :  { %v4163_v25 = vmul.f32 %v3997_v40, %v3727_v63  ;;  %v4167_v43 = vmul.f32 %v3997_v40, %v3738_v6  ;;  %v4171_v50 = vmul.f32 %v3720_v58, %v3997_v40  ;;  %v4175_v38 = vmul.f32 %v3731_v1, %v3997_v40 }
 0x20f   :  { %v4179_v45 = vmul.f32 %v3997_v40, %v3755_v19  ;;  %v4183_v63 = vmul.f32 %v3997_v40, %v3766_v34  ;;  %v4187_v6 = vmul.f32 %v3748_v14, %v3997_v40  ;;  %v4191_v58 = vmul.f32 %v3759_v28, %v3997_v40 }
 0x210   :  { %v4195_v1 = vmul.f32 %v3997_v40, %v3783_v55  ;;  %v4199_v19 = vmul.f32 %v3997_v40, %v3794_v5  ;;  %v4203_v34 = vmul.f32 %v3776_v49, %v3997_v40  ;;  %v4207_v14 = vmul.f32 %v3787_v60, %v3997_v40 }
 0x211   :  { %v4211_v28 = vmul.f32 %v3997_v40, %v3811_v35  ;;  %v4215_v55 = vmul.f32 %v3997_v40, %v3822_v53  ;;  %v4219_v5 = vmul.f32 %v3804_v17, %v3997_v40 }
 0x212   :  { %4845 = vst [vmem:[#allocation2_spill] sm:$0xff] %v4199_v19  ;;  %4846 = vst [vmem:[#allocation4_spill] sm:$0xff] %v4203_v34  ;;  %v4851_v19 = vld [vmem:[#allocation10_spill] sm:$0xff]  ;;  %v4853_v34 = vld [vmem:[#allocation15_spill] sm:$0xff] }
 0x213   :  { %4847 = vst [vmem:[#allocation6_spill] sm:$0xff] %v4207_v14  ;;  %4848 = vst [vmem:[#allocation3_spill] sm:$0xff] %v4211_v28  ;;  %v4223_v49 = vmul.f32 %v4851_v19, %v3997_v40  ;;  %v4227_v60 = vmul.f32 %v3997_v40, %v4853_v34  ;;  %v4855_v14 = vld [vmem:[#allocation19_spill] sm:$0xff]  ;;  %v4857_v28 = vld [vmem:[#allocation13_spill] sm:$0xff] }
 0x214   :  { %4849 = vst [vmem:[#allocation5_spill] sm:$0xff] %v4215_v55  ;;  %4850 = vst [vmem:[#allocation8_spill] sm:$0xff] %v4219_v5  ;;  %v4231_v35 = vmul.f32 %v3997_v40, %v4855_v14  ;;  %v4235_v53 = vmul.f32 %v4857_v28, %v3997_v40  ;;  %v4859_v55 = vld [vmem:[#allocation17_spill] sm:$0xff]  ;;  %v4861_v5 = vld [vmem:[#allocation22_spill] sm:$0xff] }
 0x215   :  { %4852 = vst [vmem:[#allocation11_spill] sm:$0xff] %v4223_v49  ;;  %4854 = vst [vmem:[#allocation7_spill] sm:$0xff] %v4227_v60  ;;  %v4239_v17 = vmul.f32 %v4859_v55, %v3997_v40  ;;  %v4243_v19 = vmul.f32 %v3997_v40, %v4861_v5  ;;  %v4862_v49 = vld [vmem:[#allocation25_spill] sm:$0xff]  ;;  %v4863_v60 = vld [vmem:[#allocation20_spill] sm:$0xff]  ;;  %v4866_v55 = vsub.f32 %v3991_v37, %v3993_v10 }
 0x216   :  { %4856 = vst [vmem:[#allocation9_spill] sm:$0xff] %v4231_v35  ;;  %4858 = vst [vmem:[#allocation14_spill] sm:$0xff] %v4235_v53  ;;  %v4247_v34 = vmul.f32 %v3997_v40, %v4862_v49  ;;  %v4251_v14 = vmul.f32 %v4863_v60, %v3997_v40  ;;  %v4864_v35 = vld [vmem:[#allocation23_spill] sm:$0xff]  ;;  %v4865_v53 = vsub.s32 0, %v3982_v52 }
 0x217   :  { %4860 = vst [vmem:[#allocation18_spill] sm:$0xff] %v4239_v17  ;;  %v4255_v28 = vmul.f32 %v4864_v35, %v3997_v40 }
 0x218   :  { %v4262_v17 = vrot.slane %v4866_v55, %v4865_v53 }
 0x21a   :  { %v4266_v5 = vadd.f32 %v4262_v17, %v4003_v3  ;;  %v4270_v49 = vadd.f32 %v4262_v17, %v4007_v51  ;;  %v4274_v60 = vadd.f32 %v4262_v17, %v4011_v9  ;;  %v4278_v52 = vadd.f32 %v4262_v17, %v4015_v16  ;;  %v4872_v35 = vld [vmem:[#allocation6_spill] sm:$0xff]  ;;  %v4874_v53 = vld [vmem:[#allocation3_spill] sm:$0xff] }
 0x21b   :  { %v4282_v37 = vadd.f32 %v4262_v17, %v4019_v42  ;;  %v4286_v10 = vadd.f32 %v4262_v17, %v4023_v22  ;;  %v4290_v40 = vadd.f32 %v4262_v17, %v4027_v26  ;;  %v4294_v3 = vadd.f32 %v4262_v17, %v4031_v20  ;;  %v4876_v55 = vld [vmem:[#allocation5_spill] sm:$0xff] }
 0x21c   :  { %v4298_v51 = vadd.f32 %v4262_v17, %v4035_v24  ;;  %v4302_v9 = vadd.f32 %v4262_v17, %v4039_v39  ;;  %v4306_v16 = vadd.f32 %v4262_v17, %v4043_v46  ;;  %v4310_v42 = vadd.f32 %v4262_v17, %v4047_v36 }
 0x21d   :  { %v4314_v22 = vadd.f32 %v4262_v17, %v4051_v44  ;;  %v4318_v26 = vadd.f32 %v4262_v17, %v4055_v59  ;;  %v4322_v20 = vadd.f32 %v4262_v17, %v4059_v2  ;;  %v4326_v24 = vadd.f32 %v4262_v17, %v4063_v56 }
 0x21e   :  { %v4330_v39 = vadd.f32 %v4262_v17, %v4067_v0  ;;  %v4334_v46 = vadd.f32 %v4262_v17, %v4071_v15  ;;  %v4338_v36 = vadd.f32 %v4262_v17, %v4075_v29  ;;  %v4342_v44 = vadd.f32 %v4262_v17, %v4079_v12 }
 0x21f   :  { %v4346_v59 = vadd.f32 %v4262_v17, %v4083_v61  ;;  %v4350_v2 = vadd.f32 %v4262_v17, %v4087_v57  ;;  %v4354_v56 = vadd.f32 %v4262_v17, %v4091_v62  ;;  %v4358_v0 = vadd.f32 %v4262_v17, %v4095_v8 }
 0x220   :  { %v4362_v15 = vadd.f32 %v4262_v17, %v4099_v4  ;;  %v4366_v29 = vadd.f32 %v4262_v17, %v4103_v13  ;;  %v4370_v12 = vadd.f32 %v4262_v17, %v4107_v47  ;;  %v4374_v61 = vadd.f32 %v4262_v17, %v4111_v18 }
 0x221   :  { %v4378_v57 = vadd.f32 %v4262_v17, %v4115_v48  ;;  %v4382_v62 = vadd.f32 %v4262_v17, %v4119_v7  ;;  %v4386_v8 = vadd.f32 %v4262_v17, %v4123_v31  ;;  %v4390_v4 = vadd.f32 %v4262_v17, %v4127_v11 }
 0x222   :  { %v4394_v13 = vadd.f32 %v4262_v17, %v4131_v32  ;;  %v4398_v47 = vadd.f32 %v4262_v17, %v4135_v33  ;;  %v4402_v18 = vadd.f32 %v4262_v17, %v4139_v27  ;;  %v4406_v48 = vadd.f32 %v4262_v17, %v4143_v41 }
 0x223   :  { %v4410_v7 = vadd.f32 %v4262_v17, %v4147_v54  ;;  %v4414_v31 = vadd.f32 %v4262_v17, %v4151_v23  ;;  %v4418_v11 = vadd.f32 %v4262_v17, %v4155_v30  ;;  %v4422_v32 = vadd.f32 %v4262_v17, %v4159_v21 }
 0x224   :  { %v4426_v33 = vadd.f32 %v4262_v17, %v4163_v25  ;;  %v4430_v27 = vadd.f32 %v4262_v17, %v4167_v43  ;;  %v4434_v41 = vadd.f32 %v4262_v17, %v4171_v50  ;;  %v4438_v54 = vadd.f32 %v4262_v17, %v4175_v38  ;;  %v4868_v50 = vld [vmem:[#allocation2_spill] sm:$0xff] }
 0x225   :  { %v4442_v23 = vadd.f32 %v4262_v17, %v4179_v45  ;;  %v4446_v30 = vadd.f32 %v4262_v17, %v4183_v63  ;;  %v4450_v21 = vadd.f32 %v4262_v17, %v4187_v6  ;;  %v4454_v25 = vadd.f32 %v4262_v17, %v4191_v58  ;;  %v4870_v45 = vld [vmem:[#allocation4_spill] sm:$0xff] }
 0x226   :  { %v4458_v43 = vadd.f32 %v4262_v17, %v4195_v1  ;;  %v4462_v38 = vadd.f32 %v4262_v17, %v4868_v50  ;;  %v4466_v63 = vadd.f32 %v4262_v17, %v4870_v45  ;;  %v4470_v6 = vadd.f32 %v4262_v17, %v4872_v35 }
 0x227   :  { %v4474_v58 = vadd.f32 %v4262_v17, %v4874_v53  ;;  %v4478_v1 = vadd.f32 %v4262_v17, %v4876_v55 }
 0x228   :  { %4867 = vst [vmem:[#allocation12_spill] sm:$0xff] %v4458_v43  ;;  %4869 = vst [vmem:[#allocation16_spill] sm:$0xff] %v4462_v38  ;;  %v4878_v43 = vld [vmem:[#allocation8_spill] sm:$0xff]  ;;  %v4879_v38 = vld [vmem:[#allocation11_spill] sm:$0xff] }
 0x229   :  { %4871 = vst [vmem:[#allocation21_spill] sm:$0xff] %v4466_v63  ;;  %4873 = vst [vmem:[#allocation24_spill] sm:$0xff] %v4470_v6  ;;  %v4482_v50 = vadd.f32 %v4262_v17, %v4878_v43  ;;  %v4486_v45 = vadd.f32 %v4262_v17, %v4879_v38  ;;  %v4880_v63 = vld [vmem:[#allocation7_spill] sm:$0xff]  ;;  %v4881_v6 = vld [vmem:[#allocation9_spill] sm:$0xff]  ;;  %v4506_v38 = vadd.f32 %v4262_v17, %v4243_v19  ;;  %v2288_v19 = vmax.f32 %v4278_v52, 0.0 }
 0x22a   :  { %4875 = vst [vmem:[#allocation10_spill] sm:$0xff] %v4474_v58  ;;  %4877 = vst [vmem:[#allocation15_spill] sm:$0xff] %v4478_v1  ;;  %v4490_v35 = vadd.f32 %v4262_v17, %v4880_v63  ;;  %v4494_v53 = vadd.f32 %v4262_v17, %v4881_v6  ;;  %v4882_v58 = vld [vmem:[#allocation14_spill] sm:$0xff]  ;;  %v4510_v63 = vadd.f32 %v4262_v17, %v4247_v34  ;;  %v2290_v34 = vmax.f32 %v4286_v10, 0.0 }
 0x22b   :  { %v4498_v55 = vadd.f32 %v4262_v17, %v4882_v58  ;;  %v4884_v1 = vld [vmem:[#allocation18_spill] sm:$0xff]  ;;  %4886 = vst [vmem:[#allocation17_spill] sm:$0xff] %v4506_v38  ;;  %v4514_v6 = vadd.f32 %v4262_v17, %v4251_v14  ;;  %v4518_v58 = vadd.f32 %v4262_v17, %v4255_v28  ;;  %v2289_v38 = vmax.f32 %v4282_v37, 0.0  ;;  %2352 = vst [vmem:[%s4780_s4 + $0x18] sm:$0xff] %v2288_v19 }
 0x22c   :  { %v4502_v43 = vadd.f32 %v4262_v17, %v4884_v1  ;;  %4887 = vst [vmem:[#allocation22_spill] sm:$0xff] %v4510_v63  ;;  %v2286_v1 = vmax.f32 %v4270_v49, 0.0  ;;  %v2291_v63 = vmax.f32 %v4290_v40, 0.0  ;;  %v2292_v14 = vmax.f32 %v4294_v3, 0.0  ;;  %2354 = vst [vmem:[%s4780_s4 + $0x28] sm:$0xff] %v2290_v34 }
 0x22d   :  { %4883 = vst [vmem:[#allocation19_spill] sm:$0xff] %v4498_v55  ;;  %4888 = vst [vmem:[#allocation25_spill] sm:$0xff] %v4514_v6  ;;  %v2285_v55 = vmax.f32 %v4266_v5, 0.0  ;;  %v2293_v6 = vmax.f32 %v4298_v51, 0.0  ;;  %v2294_v17 = vmax.f32 %v4302_v9, 0.0  ;;  %v2295_v28 = vmax.f32 %v4306_v16, 0.0 }
 0x22e   :  { %4885 = vst [vmem:[#allocation13_spill] sm:$0xff] %v4502_v43  ;;  %v2287_v43 = vmax.f32 %v4274_v60, 0.0  ;;  %v2296_v5 = vmax.f32 %v4310_v42, 0.0  ;;  %2350 = vst [vmem:[%s4780_s4 + $0x8] sm:$0xff] %v2286_v1  ;;  %v2297_v49 = vmax.f32 %v4314_v22, 0.0  ;;  %v2298_v60 = vmax.f32 %v4318_v26, 0.0 }
 0x22f   :  { %2349 = vst [vmem:[%s4780_s4] sm:$0xff] %v2285_v55  ;;  %v2299_v52 = vmax.f32 %v4322_v20, 0.0  ;;  %v2300_v37 = vmax.f32 %v4326_v24, 0.0  ;;  %2353 = vst [vmem:[%s4780_s4 + $0x20] sm:$0xff] %v2289_v38  ;;  %v2301_v10 = vmax.f32 %v4330_v39, 0.0  ;;  %v2302_v40 = vmax.f32 %v4334_v46, 0.0 }
 0x230   :  { %2351 = vst [vmem:[%s4780_s4 + $0x10] sm:$0xff] %v2287_v43  ;;  %2355 = vst [vmem:[%s4780_s4 + $0x30] sm:$0xff] %v2291_v63  ;;  %v2303_v3 = vmax.f32 %v4338_v36, 0.0  ;;  %v2304_v51 = vmax.f32 %v4342_v44, 0.0  ;;  %v2305_v9 = vmax.f32 %v4346_v59, 0.0  ;;  %v2306_v16 = vmax.f32 %v4350_v2, 0.0 }
 0x231   :  { %2356 = vst [vmem:[%s4780_s4 + $0x38] sm:$0xff] %v2292_v14  ;;  %2357 = vst [vmem:[%s4780_s4 + $0x40] sm:$0xff] %v2293_v6  ;;  %v2307_v42 = vmax.f32 %v4354_v56, 0.0  ;;  %v2308_v22 = vmax.f32 %v4358_v0, 0.0  ;;  %v2309_v26 = vmax.f32 %v4362_v15, 0.0  ;;  %v2310_v20 = vmax.f32 %v4366_v29, 0.0 }
 0x232   :  { %2358 = vst [vmem:[%s4780_s4 + $0x48] sm:$0xff] %v2294_v17  ;;  %2359 = vst [vmem:[%s4780_s4 + $0x50] sm:$0xff] %v2295_v28  ;;  %v2311_v24 = vmax.f32 %v4370_v12, 0.0  ;;  %v2312_v39 = vmax.f32 %v4374_v61, 0.0  ;;  %v2313_v46 = vmax.f32 %v4378_v57, 0.0  ;;  %v2314_v36 = vmax.f32 %v4382_v62, 0.0 }
 0x233   :  { %2360 = vst [vmem:[%s4780_s4 + $0x58] sm:$0xff] %v2296_v5  ;;  %2361 = vst [vmem:[%s4780_s4 + $0x60] sm:$0xff] %v2297_v49  ;;  %v2315_v44 = vmax.f32 %v4386_v8, 0.0  ;;  %v2316_v59 = vmax.f32 %v4390_v4, 0.0  ;;  %v2317_v2 = vmax.f32 %v4394_v13, 0.0  ;;  %v2318_v56 = vmax.f32 %v4398_v47, 0.0 }
 0x234   :  { %2362 = vst [vmem:[%s4780_s4 + $0x68] sm:$0xff] %v2298_v60  ;;  %2363 = vst [vmem:[%s4780_s4 + $0x70] sm:$0xff] %v2299_v52  ;;  %v2319_v0 = vmax.f32 %v4402_v18, 0.0  ;;  %v2320_v15 = vmax.f32 %v4406_v48, 0.0  ;;  %v2321_v29 = vmax.f32 %v4410_v7, 0.0  ;;  %v2322_v12 = vmax.f32 %v4414_v31, 0.0 }
 0x235   :  { %2364 = vst [vmem:[%s4780_s4 + $0x78] sm:$0xff] %v2300_v37  ;;  %2365 = vst [vmem:[%s4780_s4 + $0x80] sm:$0xff] %v2301_v10  ;;  %v2323_v61 = vmax.f32 %v4418_v11, 0.0  ;;  %v2324_v57 = vmax.f32 %v4422_v32, 0.0  ;;  %v2325_v62 = vmax.f32 %v4426_v33, 0.0  ;;  %v2326_v8 = vmax.f32 %v4430_v27, 0.0 }
 0x236   :  { %2366 = vst [vmem:[%s4780_s4 + $0x88] sm:$0xff] %v2302_v40  ;;  %2367 = vst [vmem:[%s4780_s4 + $0x90] sm:$0xff] %v2303_v3  ;;  %v2327_v4 = vmax.f32 %v4434_v41, 0.0  ;;  %v2328_v13 = vmax.f32 %v4438_v54, 0.0  ;;  %v2329_v47 = vmax.f32 %v4442_v23, 0.0  ;;  %v2330_v18 = vmax.f32 %v4446_v30, 0.0 }
 0x237   :  { %2368 = vst [vmem:[%s4780_s4 + $0x98] sm:$0xff] %v2304_v51  ;;  %2369 = vst [vmem:[%s4780_s4 + $0xa0] sm:$0xff] %v2305_v9  ;;  %v2331_v48 = vmax.f32 %v4450_v21, 0.0  ;;  %v2332_v7 = vmax.f32 %v4454_v25, 0.0  ;;  %v4889_v31 = vld [vmem:[#allocation12_spill] sm:$0xff]  ;;  %v4891_v27 = vld [vmem:[#allocation21_spill] sm:$0xff] }
 0x238   :  { %2370 = vst [vmem:[%s4780_s4 + $0xa8] sm:$0xff] %v2306_v16  ;;  %2371 = vst [vmem:[%s4780_s4 + $0xb0] sm:$0xff] %v2307_v42  ;;  %v2333_v11 = vmax.f32 %v4889_v31, 0.0  ;;  %v4890_v32 = vld [vmem:[#allocation16_spill] sm:$0xff]  ;;  %v2335_v41 = vmax.f32 %v4891_v27, 0.0  ;;  %v4893_v30 = vld [vmem:[#allocation10_spill] sm:$0xff] }
 0x239   :  { %2372 = vst [vmem:[%s4780_s4 + $0xb8] sm:$0xff] %v2308_v22  ;;  %2373 = vst [vmem:[%s4780_s4 + $0xc0] sm:$0xff] %v2309_v26  ;;  %v2334_v33 = vmax.f32 %v4890_v32, 0.0  ;;  %v4892_v54 = vld [vmem:[#allocation24_spill] sm:$0xff]  ;;  %v2337_v21 = vmax.f32 %v4893_v30, 0.0  ;;  %v4894_v25 = vld [vmem:[#allocation15_spill] sm:$0xff] }
 0x23a   :  { %2374 = vst [vmem:[%s4780_s4 + $0xc8] sm:$0xff] %v2310_v20  ;;  %2375 = vst [vmem:[%s4780_s4 + $0xd0] sm:$0xff] %v2311_v24  ;;  %v2336_v23 = vmax.f32 %v4892_v54, 0.0  ;;  %v2338_v55 = vmax.f32 %v4894_v25, 0.0  ;;  %v2339_v43 = vmax.f32 %v4482_v50, 0.0  ;;  %v2340_v38 = vmax.f32 %v4486_v45, 0.0 }
 0x23b   :  { %2376 = vst [vmem:[%s4780_s4 + $0xd8] sm:$0xff] %v2312_v39  ;;  %2377 = vst [vmem:[%s4780_s4 + $0xe0] sm:$0xff] %v2313_v46  ;;  %v2341_v50 = vmax.f32 %v4490_v35, 0.0  ;;  %v2342_v45 = vmax.f32 %v4494_v53, 0.0  ;;  %v4895_v63 = vld [vmem:[#allocation19_spill] sm:$0xff]  ;;  %v4896_v1 = vld [vmem:[#allocation13_spill] sm:$0xff] }
 0x23c   :  { %2378 = vst [vmem:[%s4780_s4 + $0xe8] sm:$0xff] %v2314_v36  ;;  %2379 = vst [vmem:[%s4780_s4 + $0xf0] sm:$0xff] %v2315_v44  ;;  %v2343_v6 = vmax.f32 %v4895_v63, 0.0  ;;  %v2344_v19 = vmax.f32 %v4896_v1, 0.0  ;;  %v4897_v35 = vld [vmem:[#allocation17_spill] sm:$0xff]  ;;  %v4898_v34 = vld [vmem:[#allocation22_spill] sm:$0xff] }
 0x23d   :  { %2380 = vst [vmem:[%s4780_s4 + $0xf8] sm:$0xff] %v2316_v59  ;;  %2381 = vst [vmem:[%s4780_s4 + $0x100] sm:$0xff] %v2317_v2  ;;  %v2345_v53 = vmax.f32 %v4897_v35, 0.0  ;;  %v2346_v14 = vmax.f32 %v4898_v34, 0.0  ;;  %v4899_v17 = vld [vmem:[#allocation25_spill] sm:$0xff]  ;;  %v2348_v5 = vmax.f32 %v4518_v58, 0.0 }
 0x23e   :  { %2382 = vst [vmem:[%s4780_s4 + $0x108] sm:$0xff] %v2318_v56  ;;  %2383 = vst [vmem:[%s4780_s4 + $0x110] sm:$0xff] %v2319_v0  ;;  %v2347_v28 = vmax.f32 %v4899_v17, 0.0 }
 0x23f   :  { %2384 = vst [vmem:[%s4780_s4 + $0x118] sm:$0xff] %v2320_v15  ;;  %2385 = vst [vmem:[%s4780_s4 + $0x120] sm:$0xff] %v2321_v29 }
 0x240   :  { %2386 = vst [vmem:[%s4780_s4 + $0x128] sm:$0xff] %v2322_v12  ;;  %2387 = vst [vmem:[%s4780_s4 + $0x130] sm:$0xff] %v2323_v61 }
 0x241   :  { %2388 = vst [vmem:[%s4780_s4 + $0x138] sm:$0xff] %v2324_v57  ;;  %2389 = vst [vmem:[%s4780_s4 + $0x140] sm:$0xff] %v2325_v62 }
 0x242   :  { %2390 = vst [vmem:[%s4780_s4 + $0x148] sm:$0xff] %v2326_v8  ;;  %2391 = vst [vmem:[%s4780_s4 + $0x150] sm:$0xff] %v2327_v4 }
 0x243   :  { %2392 = vst [vmem:[%s4780_s4 + $0x158] sm:$0xff] %v2328_v13  ;;  %2393 = vst [vmem:[%s4780_s4 + $0x160] sm:$0xff] %v2329_v47 }
 0x244   :  { %2394 = vst [vmem:[%s4780_s4 + $0x168] sm:$0xff] %v2330_v18  ;;  %2395 = vst [vmem:[%s4780_s4 + $0x170] sm:$0xff] %v2331_v48 }
 0x245   :  { %2396 = vst [vmem:[%s4780_s4 + $0x178] sm:$0xff] %v2332_v7  ;;  %2397 = vst [vmem:[%s4780_s4 + $0x180] sm:$0xff] %v2333_v11 }
 0x246   :  { %2398 = vst [vmem:[%s4780_s4 + $0x188] sm:$0xff] %v2334_v33  ;;  %2399 = vst [vmem:[%s4780_s4 + $0x190] sm:$0xff] %v2335_v41 }
 0x247   :  { %2400 = vst [vmem:[%s4780_s4 + $0x198] sm:$0xff] %v2336_v23  ;;  %2401 = vst [vmem:[%s4780_s4 + $0x1a0] sm:$0xff] %v2337_v21 }
 0x248   :  { %2402 = vst [vmem:[%s4780_s4 + $0x1a8] sm:$0xff] %v2338_v55  ;;  %2403 = vst [vmem:[%s4780_s4 + $0x1b0] sm:$0xff] %v2339_v43 }
 0x249   :  { %2404 = vst [vmem:[%s4780_s4 + $0x1b8] sm:$0xff] %v2340_v38  ;;  %2405 = vst [vmem:[%s4780_s4 + $0x1c0] sm:$0xff] %v2341_v50 }
 0x24a   :  { %2406 = vst [vmem:[%s4780_s4 + $0x1c8] sm:$0xff] %v2342_v45  ;;  %2407 = vst [vmem:[%s4780_s4 + $0x1d0] sm:$0xff] %v2343_v6 }
 0x24b   :  { %2408 = vst [vmem:[%s4780_s4 + $0x1d8] sm:$0xff] %v2344_v19  ;;  %2409 = vst [vmem:[%s4780_s4 + $0x1e0] sm:$0xff] %v2345_v53 }
 0x24c   :  { %2410 = vst [vmem:[%s4780_s4 + $0x1e8] sm:$0xff] %v2346_v14  ;;  %2411 = vst [vmem:[%s4780_s4 + $0x1f0] sm:$0xff] %v2347_v28 }
 0x24d   :  { %2412 = vst [vmem:[%s4780_s4 + $0x1f8] sm:$0xff] %v2348_v5 }

</bundles_post_ra>
